<compile_context>
chip_gen: v7x
topology: tpu7x:2x2x1
jax: 0.10.0
libtpu: 0.0.40
codegen_flags: <defaults>
</compile_context>

<pallas_src>
import jax
import jax.numpy as jnp
from jax.experimental import pallas as pl
from jax.experimental.pallas import tpu as pltpu

BN_EPS = 1e-5


def _vae_forward_kernel(
    x_ref,                                   # (B, org_dim) bf16
    w1_ref, b1_ref, g1_ref, be1_ref,         # fc1 + fcb1
    w1a_ref, b1a_ref, g1a_ref, be1a_ref,     # fc1a + fcb1a
    w2h_ref, b2h_ref,                        # fused [fc21 | fc22]  (neurons, 2L)
    w3s_ref, b3_ref,                         # row-stacked [W3; W3] (2L, neurons)
    w3a_ref, b3a_ref,                        # fc3a
    w4_ref, b4_ref,                          # fc4
    eps_ref,                                 # (B, 2L) f32, eps in lanes L..2L-1
    recon_ref, mulogvar_ref,                 # outputs: (B, org_dim), (B, 2L)
):
    bf16 = jnp.bfloat16
    latent = eps_ref.shape[-1] // 2
    inv_b = 1.0 / x_ref.shape[0]

    # Hoist all (1, N) bias / scale loads once (JAX does not CSE broadcast_in_dim).
    b1, g1, be1 = b1_ref[...], g1_ref[...], be1_ref[...]
    b1a, g1a, be1a = b1a_ref[...], g1a_ref[...], be1a_ref[...]
    b2h = b2h_ref[...]
    b3, b3a, b4 = b3_ref[...], b3a_ref[...], b4_ref[...]

    def linear(h_bf16, w_ref, b):
        # bf16 operands on the MXU, f32 accumulation, f32 bias add.
        return jnp.dot(h_bf16, w_ref[...], preferred_element_type=jnp.float32) + b

    def batchnorm_train(h, g, b):
        # PyTorch BatchNorm1d (training): batch mean, biased variance, eps=1e-5.
        # Two-pass (centered) variance for numerical parity; the affine is folded
        # into one per-feature scale so the per-element application is mul+add.
        mean = jnp.sum(h, axis=0, keepdims=True) * inv_b
        hc = h - mean
        var = jnp.sum(hc * hc, axis=0, keepdims=True) * inv_b
        scale = g * jax.lax.rsqrt(var + BN_EPS)          # (1, N)
        return hc * scale + b

    # ---- encode ----
    h1 = jnp.maximum(linear(x_ref[...], w1_ref, b1), 0.0)            # relu(fc1)
    hb1 = batchnorm_train(h1, g1, be1)                                # fcb1
    h1a = jnp.maximum(linear(hb1.astype(bf16), w1a_ref, b1a), 0.0)    # relu(fc1a)
    hb1a = batchnorm_train(h1a, g1a, be1a)                            # fcb1a
    mulv = linear(hb1a.astype(bf16), w2h_ref, b2h)                    # [mu | logvar]

    # ---- reparameterize + fc3 (lane-dense, no 64-lane slices) ----
    # zpack = [mu | eps*std]; zpack @ [W3; W3] == (mu + eps*std) @ W3 == z @ W3.
    # exp runs on the EUP over the full vreg; the mu-half result is discarded by
    # the select (eps is zero-padded there, so no garbage propagates).
    lane = jax.lax.broadcasted_iota(jnp.int32, mulv.shape, 1)
    zpack = jnp.where(lane >= latent, eps_ref[...] * jnp.exp(0.5 * mulv), mulv)

    # ---- decode ----
    h3 = jnp.maximum(linear(zpack.astype(bf16), w3s_ref, b3), 0.0)    # relu(fc3)
    h4 = jnp.maximum(linear(h3.astype(bf16), w3a_ref, b3a), 0.0)      # relu(fc3a)
    logits = linear(h4.astype(bf16), w4_ref, b4)                      # fc4
    # Exact reciprocal so recon stays strictly inside [0, 1] (BCE-safe); the exp
    # is still an EUP op.
    recon = pl.reciprocal(1.0 + jnp.exp(-logits))

    recon_ref[...] = recon.astype(recon_ref.dtype)
    mulogvar_ref[...] = mulv.astype(mulogvar_ref.dtype)


def init_vae_params(key, org_dim, latent_dim, neurons):
    """Deterministic synthetic parameters (PyTorch-like shapes, kernel layout [in,out])."""
    def lin(k, fan_in, fan_out):
        kw, kb = jax.random.split(k)
        bound = 1.0 / jnp.sqrt(fan_in)
        w = jax.random.uniform(kw, (fan_in, fan_out), jnp.float32, -bound, bound)
        b = jax.random.uniform(kb, (1, fan_out), jnp.float32, -bound, bound)
        return w, b

    ks = jax.random.split(key, 7)
    p = {}
    p["w1"], p["b1"] = lin(ks[0], org_dim, neurons)
    p["g1"], p["be1"] = jnp.ones((1, neurons), jnp.float32), jnp.zeros((1, neurons), jnp.float32)
    p["w1a"], p["b1a"] = lin(ks[1], neurons, neurons)
    p["g1a"], p["be1a"] = jnp.ones((1, neurons), jnp.float32), jnp.zeros((1, neurons), jnp.float32)
    p["w21"], p["b21"] = lin(ks[2], neurons, latent_dim)
    p["w22"], p["b22"] = lin(ks[3], neurons, latent_dim)
    p["w3"], p["b3"] = lin(ks[4], latent_dim, neurons)
    p["w3a"], p["b3a"] = lin(ks[5], neurons, neurons)
    p["w4"], p["b4"] = lin(ks[6], neurons, org_dim)
    return p


def prepare_vae_params(params):
    """One-time prep (do OUTSIDE the jitted step): bf16 weights, fused [fc21|fc22]
    latent head, row-stacked [W3; W3] for the lane-dense reparameterize path."""
    bf16 = jnp.bfloat16
    w2h = jnp.concatenate([params["w21"], params["w22"]], axis=1)   # (neurons, 2L)
    b2h = jnp.concatenate([params["b21"], params["b22"]], axis=1)   # (1, 2L)
    w3s = jnp.concatenate([params["w3"], params["w3"]], axis=0)     # (2L, neurons)
    return {
        "w1": params["w1"].astype(bf16), "b1": params["b1"],
        "g1": params["g1"], "be1": params["be1"],
        "w1a": params["w1a"].astype(bf16), "b1a": params["b1a"],
        "g1a": params["g1a"], "be1a": params["be1a"],
        "w2h": w2h.astype(bf16), "b2h": b2h,
        "w3s": w3s.astype(bf16), "b3": params["b3"],
        "w3a": params["w3a"].astype(bf16), "b3a": params["b3a"],
        "w4": params["w4"].astype(bf16), "b4": params["b4"],
    }


def _build_vae_call(S, B, org_dim, latent_dim, neurons):
    two_latent = 2 * latent_dim

    def step_spec(shape):
        # Per-microbatch block; leading grid dim squeezed out of the kernel ref.
        return pl.BlockSpec((None,) + shape, lambda s: (s,) + (0,) * len(shape))

    def resident_spec(shape):
        # Full array, constant block index -> stays VMEM-resident across steps.
        return pl.BlockSpec(shape, lambda s: (0,) * len(shape))

    in_specs = [
        step_spec((B, org_dim)),                                      # x
        resident_spec((org_dim, neurons)), resident_spec((1, neurons)),
        resident_spec((1, neurons)), resident_spec((1, neurons)),
        resident_spec((neurons, neurons)), resident_spec((1, neurons)),
        resident_spec((1, neurons)), resident_spec((1, neurons)),
        resident_spec((neurons, two_latent)), resident_spec((1, two_latent)),
        resident_spec((two_latent, neurons)), resident_spec((1, neurons)),
        resident_spec((neurons, neurons)), resident_spec((1, neurons)),
        resident_spec((neurons, org_dim)), resident_spec((1, org_dim)),
        step_spec((B, two_latent)),                                   # eps (padded)
    ]
    out_specs = (
        step_spec((B, org_dim)),
        step_spec((B, two_latent)),
    )
    return pl.pallas_call(
        _vae_forward_kernel,
        grid=(S,),
        in_specs=in_specs,
        out_specs=out_specs,
        out_shape=(
            jax.ShapeDtypeStruct((S, B, org_dim), jnp.float32),
            jax.ShapeDtypeStruct((S, B, two_latent), jnp.float32),
        ),
        compiler_params=pltpu.CompilerParams(
            dimension_semantics=("parallel",),        # megacore split on v7x
            vmem_limit_bytes=32 * 1024 * 1024,        # explicit budget (v7x: 64 MiB phys)
        ),
    )


def _vae_apply(xs, prepped, eps):
    """xs: (S, B, org_dim), eps: (S, B, latent). Returns (recon, mu, logvar)."""
    bf16 = jnp.bfloat16
    S, B, org_dim = xs.shape
    latent_dim = eps.shape[-1]
    neurons = prepped["w1"].shape[1]

    # Pad eps into the upper latent lanes so the kernel's reparameterize + fc3
    # path stays lane-dense (full 2*latent-wide vregs, K = 2*latent matmul).
    eps_pad = jnp.concatenate([jnp.zeros_like(eps), eps], axis=-1)

    ordered = [
        xs.astype(bf16),
        prepped["w1"], prepped["b1"], prepped["g1"], prepped["be1"],
        prepped["w1a"], prepped["b1a"], prepped["g1a"], prepped["be1a"],
        prepped["w2h"], prepped["b2h"],
        prepped["w3s"], prepped["b3"],
        prepped["w3a"], prepped["b3a"],
        prepped["w4"], prepped["b4"],
        eps_pad,
    ]
    recon, mulogvar = _build_vae_call(S, B, org_dim, latent_dim, neurons)(*ordered)
    mu = mulogvar[..., :latent_dim]
    logvar = mulogvar[..., latent_dim:]
    return recon, mu, logvar


def vae_forward(x, prepped, eps):
    """Returns (x, recon, mu, logvar) — same as VAE.forward(x, epoch, rejection=0).
    `eps` is the externally supplied standard-normal noise used by reparameterize
    (torch.randn_like replaced by an explicit deterministic input)."""
    org_dim = prepped["w1"].shape[0]
    x2d = x.reshape(-1, org_dim)               # x.view(-1, org_dim)
    recon, mu, logvar = _vae_apply(x2d[None], prepped, eps[None])
    return x, recon[0], mu[0], logvar[0]
    # TODO(synk): rejection_batchwise (rejection=1 path) is data-dependent host-side
    # resampling with a while-loop; not implemented in-kernel.


def vae_forward_microbatched(xs, prepped, eps):
    """S independent forward passes (each with its own batch BN stats) fused into
    one pallas_call with a parallel grid axis: amortizes launch/DMA overhead and
    uses both TensorCores on v7x."""
    return _vae_apply(xs, prepped, eps)


if __name__ == "__main__":
    # Lane-dense shapes: features are multiples of 128 (2*LATENT = 128), batch
    # large enough to amortize fixed per-call overhead and fill MXU rows.
    B, ORG_DIM, LATENT_DIM, NEURONS = 256, 128, 64, 128

    key = jax.random.PRNGKey(0)
    k_param, k_x, k_eps = jax.random.split(key, 3)

    params = init_vae_params(k_param, ORG_DIM, LATENT_DIM, NEURONS)
    prepped = prepare_vae_params(params)      # one-time prep, outside jit

    x = jax.random.uniform(k_x, (B, ORG_DIM), jnp.float32)          # pixel-like [0,1)
    eps = jax.random.normal(k_eps, (B, LATENT_DIM), jnp.float32)    # reparam noise

    fwd = jax.jit(vae_forward)
    x_out, recon, mu, logvar = fwd(x, prepped, eps)
    jax.block_until_ready((x_out, recon, mu, logvar))

    assert x_out.shape == (B, ORG_DIM)
    assert recon.shape == (B, ORG_DIM)
    assert mu.shape == (B, LATENT_DIM)
    assert logvar.shape == (B, LATENT_DIM)
    assert bool(jnp.all(jnp.isfinite(recon)))
    assert bool(jnp.all(jnp.isfinite(mu)))
    assert bool(jnp.all(jnp.isfinite(logvar)))
    assert bool(jnp.all((recon >= 0.0) & (recon <= 1.0 + 1e-6)))

    # Microbatched path: two independent forwards fused into one pallas_call
    # (grid=(2,), parallel semantics). Each grid step must match a standalone call.
    S, MB = 2, 128
    xs = jax.random.uniform(k_x, (S, MB, ORG_DIM), jnp.float32)
    epss = jax.random.normal(k_eps, (S, MB, LATENT_DIM), jnp.float32)
    fwd_mb = jax.jit(vae_forward_microbatched)
    recon_mb, mu_mb, logvar_mb = fwd_mb(xs, prepped, epss)
    jax.block_until_ready((recon_mb, mu_mb, logvar_mb))
    assert recon_mb.shape == (S, MB, ORG_DIM)
    _, r0, m0, lv0 = fwd(xs[0], prepped, epss[0])
    assert bool(jnp.allclose(recon_mb[0], r0, atol=1e-5, rtol=1e-5))
    assert bool(jnp.allclose(mu_mb[0], m0, atol=1e-4, rtol=1e-4))
    assert bool(jnp.allclose(logvar_mb[0], lv0, atol=1e-4, rtol=1e-4))

    print("KERNEL_OK")
</pallas_src>

<mosaic_0001>
module attributes {stable_mosaic.version = 11 : i64} {
  func.func @_vae_forward_kernel(%arg0: i32, %arg1: memref<1x256x128xbf16, #tpu.memory_space<vmem>>, %arg2: memref<128x128xbf16, #tpu.memory_space<vmem>>, %arg3: memref<1x128xf32, #tpu.memory_space<vmem>>, %arg4: memref<1x128xf32, #tpu.memory_space<vmem>>, %arg5: memref<1x128xf32, #tpu.memory_space<vmem>>, %arg6: memref<128x128xbf16, #tpu.memory_space<vmem>>, %arg7: memref<1x128xf32, #tpu.memory_space<vmem>>, %arg8: memref<1x128xf32, #tpu.memory_space<vmem>>, %arg9: memref<1x128xf32, #tpu.memory_space<vmem>>, %arg10: memref<128x128xbf16, #tpu.memory_space<vmem>>, %arg11: memref<1x128xf32, #tpu.memory_space<vmem>>, %arg12: memref<128x128xbf16, #tpu.memory_space<vmem>>, %arg13: memref<1x128xf32, #tpu.memory_space<vmem>>, %arg14: memref<128x128xbf16, #tpu.memory_space<vmem>>, %arg15: memref<1x128xf32, #tpu.memory_space<vmem>>, %arg16: memref<128x128xbf16, #tpu.memory_space<vmem>>, %arg17: memref<1x128xf32, #tpu.memory_space<vmem>>, %arg18: memref<1x256x128xf32, #tpu.memory_space<vmem>>, %arg19: memref<1x256x128xf32, #tpu.memory_space<vmem>>, %arg20: memref<1x256x128xf32, #tpu.memory_space<vmem>>) attributes {dimension_semantics = [#tpu.dimension_semantics<parallel>], iteration_bounds = array<i64: 1>, scalar_prefetch = 0 : i64, scratch_operands = 0 : i64, tpu.core_type = #tpu.core_type<tc>, window_params = [{transform_indices = @transform_0, window_bounds = array<i64: 1, 256, 128>}, {pipeline_mode = #tpu.pipeline_mode<synchronous>, transform_indices = @transform_1, window_bounds = array<i64: 128, 128>}, {pipeline_mode = #tpu.pipeline_mode<synchronous>, transform_indices = @transform_2, window_bounds = array<i64: 1, 128>}, {pipeline_mode = #tpu.pipeline_mode<synchronous>, transform_indices = @transform_3, window_bounds = array<i64: 1, 128>}, {pipeline_mode = #tpu.pipeline_mode<synchronous>, transform_indices = @transform_4, window_bounds = array<i64: 1, 128>}, {pipeline_mode = #tpu.pipeline_mode<synchronous>, transform_indices = @transform_5, window_bounds = array<i64: 128, 128>}, {pipeline_mode = #tpu.pipeline_mode<synchronous>, transform_indices = @transform_6, window_bounds = array<i64: 1, 128>}, {pipeline_mode = #tpu.pipeline_mode<synchronous>, transform_indices = @transform_7, window_bounds = array<i64: 1, 128>}, {pipeline_mode = #tpu.pipeline_mode<synchronous>, transform_indices = @transform_8, window_bounds = array<i64: 1, 128>}, {pipeline_mode = #tpu.pipeline_mode<synchronous>, transform_indices = @transform_9, window_bounds = array<i64: 128, 128>}, {pipeline_mode = #tpu.pipeline_mode<synchronous>, transform_indices = @transform_10, window_bounds = array<i64: 1, 128>}, {pipeline_mode = #tpu.pipeline_mode<synchronous>, transform_indices = @transform_11, window_bounds = array<i64: 128, 128>}, {pipeline_mode = #tpu.pipeline_mode<synchronous>, transform_indices = @transform_12, window_bounds = array<i64: 1, 128>}, {pipeline_mode = #tpu.pipeline_mode<synchronous>, transform_indices = @transform_13, window_bounds = array<i64: 128, 128>}, {pipeline_mode = #tpu.pipeline_mode<synchronous>, transform_indices = @transform_14, window_bounds = array<i64: 1, 128>}, {pipeline_mode = #tpu.pipeline_mode<synchronous>, transform_indices = @transform_15, window_bounds = array<i64: 128, 128>}, {pipeline_mode = #tpu.pipeline_mode<synchronous>, transform_indices = @transform_16, window_bounds = array<i64: 1, 128>}, {transform_indices = @transform_17, window_bounds = array<i64: 1, 256, 128>}, {transform_indices = @transform_18, window_bounds = array<i64: 1, 256, 128>}, {transform_indices = @transform_19, window_bounds = array<i64: 1, 256, 128>}]} {
    %c0 = arith.constant 0 : index
    %c0_0 = arith.constant 0 : index
    %0 = vector.load %arg3[%c0, %c0_0] : memref<1x128xf32, #tpu.memory_space<vmem>>, vector<1x128xf32>
    %c0_1 = arith.constant 0 : index
    %c0_2 = arith.constant 0 : index
    %1 = vector.load %arg4[%c0_1, %c0_2] : memref<1x128xf32, #tpu.memory_space<vmem>>, vector<1x128xf32>
    %c0_3 = arith.constant 0 : index
    %c0_4 = arith.constant 0 : index
    %2 = vector.load %arg5[%c0_3, %c0_4] : memref<1x128xf32, #tpu.memory_space<vmem>>, vector<1x128xf32>
    %c0_5 = arith.constant 0 : index
    %c0_6 = arith.constant 0 : index
    %3 = vector.load %arg7[%c0_5, %c0_6] : memref<1x128xf32, #tpu.memory_space<vmem>>, vector<1x128xf32>
    %c0_7 = arith.constant 0 : index
    %c0_8 = arith.constant 0 : index
    %4 = vector.load %arg8[%c0_7, %c0_8] : memref<1x128xf32, #tpu.memory_space<vmem>>, vector<1x128xf32>
    %c0_9 = arith.constant 0 : index
    %c0_10 = arith.constant 0 : index
    %5 = vector.load %arg9[%c0_9, %c0_10] : memref<1x128xf32, #tpu.memory_space<vmem>>, vector<1x128xf32>
    %c0_11 = arith.constant 0 : index
    %c0_12 = arith.constant 0 : index
    %6 = vector.load %arg11[%c0_11, %c0_12] : memref<1x128xf32, #tpu.memory_space<vmem>>, vector<1x128xf32>
    %c0_13 = arith.constant 0 : index
    %c0_14 = arith.constant 0 : index
    %7 = vector.load %arg13[%c0_13, %c0_14] : memref<1x128xf32, #tpu.memory_space<vmem>>, vector<1x128xf32>
    %c0_15 = arith.constant 0 : index
    %c0_16 = arith.constant 0 : index
    %8 = vector.load %arg15[%c0_15, %c0_16] : memref<1x128xf32, #tpu.memory_space<vmem>>, vector<1x128xf32>
    %c0_17 = arith.constant 0 : index
    %c0_18 = arith.constant 0 : index
    %9 = vector.load %arg17[%c0_17, %c0_18] : memref<1x128xf32, #tpu.memory_space<vmem>>, vector<1x128xf32>
    %c0_19 = arith.constant 0 : index
    %c0_20 = arith.constant 0 : index
    %c0_21 = arith.constant 0 : index
    %10 = vector.load %arg1[%c0_19, %c0_20, %c0_21] : memref<1x256x128xbf16, #tpu.memory_space<vmem>>, vector<1x256x128xbf16>
    %11 = vector.shape_cast %10 : vector<1x256x128xbf16> to vector<256x128xbf16>
    %c0_22 = arith.constant 0 : index
    %c0_23 = arith.constant 0 : index
    %12 = vector.load %arg2[%c0_22, %c0_23] : memref<128x128xbf16, #tpu.memory_space<vmem>>, vector<128x128xbf16>
    %cst = arith.constant dense<0.000000e+00> : vector<256x128xf32>
    %13 = tpu.matmul %11, %12, %cst {dimension_numbers = #tpu.dot_dimension_numbers<[1], [0], [0], [1], [0, 0, 1, 1], [], []>} : vector<256x128xbf16>, vector<128x128xbf16>, vector<256x128xf32> -> vector<256x128xf32>
    %14 = vector.broadcast %0 : vector<1x128xf32> to vector<256x128xf32>
    %15 = arith.addf %13, %14 : vector<256x128xf32>
    %cst_24 = arith.constant 0.000000e+00 : f32
    %16 = vector.broadcast %cst_24 : f32 to vector<256x128xf32>
    %17 = arith.maximumf %15, %16 : vector<256x128xf32>
    %cst_25 = arith.constant dense<0.000000e+00> : vector<128xf32>
    %18 = vector.multi_reduction <add>, %17, %cst_25 [0] : vector<256x128xf32> to vector<128xf32>
    %19 = vector.shape_cast %18 : vector<128xf32> to vector<1x128xf32>
    %cst_26 = arith.constant 3.906250e-03 : f32
    %20 = vector.broadcast %cst_26 : f32 to vector<1x128xf32>
    %21 = arith.mulf %19, %20 : vector<1x128xf32>
    %22 = vector.broadcast %21 : vector<1x128xf32> to vector<256x128xf32>
    %23 = arith.subf %17, %22 : vector<256x128xf32>
    %24 = arith.mulf %23, %23 : vector<256x128xf32>
    %cst_27 = arith.constant dense<0.000000e+00> : vector<128xf32>
    %25 = vector.multi_reduction <add>, %24, %cst_27 [0] : vector<256x128xf32> to vector<128xf32>
    %26 = vector.shape_cast %25 : vector<128xf32> to vector<1x128xf32>
    %cst_28 = arith.constant 3.906250e-03 : f32
    %27 = vector.broadcast %cst_28 : f32 to vector<1x128xf32>
    %28 = arith.mulf %26, %27 : vector<1x128xf32>
    %cst_29 = arith.constant 9.99999974E-6 : f32
    %29 = vector.broadcast %cst_29 : f32 to vector<1x128xf32>
    %30 = arith.addf %28, %29 : vector<1x128xf32>
    %31 = math.rsqrt %30 : vector<1x128xf32>
    %32 = arith.mulf %1, %31 : vector<1x128xf32>
    %33 = vector.broadcast %32 : vector<1x128xf32> to vector<256x128xf32>
    %34 = arith.mulf %23, %33 : vector<256x128xf32>
    %35 = vector.broadcast %2 : vector<1x128xf32> to vector<256x128xf32>
    %36 = arith.addf %34, %35 : vector<256x128xf32>
    %37 = arith.truncf %36 : vector<256x128xf32> to vector<256x128xbf16>
    %c0_30 = arith.constant 0 : index
    %c0_31 = arith.constant 0 : index
    %38 = vector.load %arg6[%c0_30, %c0_31] : memref<128x128xbf16, #tpu.memory_space<vmem>>, vector<128x128xbf16>
    %cst_32 = arith.constant dense<0.000000e+00> : vector<256x128xf32>
    %39 = tpu.matmul %37, %38, %cst_32 {dimension_numbers = #tpu.dot_dimension_numbers<[1], [0], [0], [1], [0, 0, 1, 1], [], []>} : vector<256x128xbf16>, vector<128x128xbf16>, vector<256x128xf32> -> vector<256x128xf32>
    %40 = vector.broadcast %3 : vector<1x128xf32> to vector<256x128xf32>
    %41 = arith.addf %39, %40 : vector<256x128xf32>
    %cst_33 = arith.constant 0.000000e+00 : f32
    %42 = vector.broadcast %cst_33 : f32 to vector<256x128xf32>
    %43 = arith.maximumf %41, %42 : vector<256x128xf32>
    %cst_34 = arith.constant dense<0.000000e+00> : vector<128xf32>
    %44 = vector.multi_reduction <add>, %43, %cst_34 [0] : vector<256x128xf32> to vector<128xf32>
    %45 = vector.shape_cast %44 : vector<128xf32> to vector<1x128xf32>
    %cst_35 = arith.constant 3.906250e-03 : f32
    %46 = vector.broadcast %cst_35 : f32 to vector<1x128xf32>
    %47 = arith.mulf %45, %46 : vector<1x128xf32>
    %48 = vector.broadcast %47 : vector<1x128xf32> to vector<256x128xf32>
    %49 = arith.subf %43, %48 : vector<256x128xf32>
    %50 = arith.mulf %49, %49 : vector<256x128xf32>
    %cst_36 = arith.constant dense<0.000000e+00> : vector<128xf32>
    %51 = vector.multi_reduction <add>, %50, %cst_36 [0] : vector<256x128xf32> to vector<128xf32>
    %52 = vector.shape_cast %51 : vector<128xf32> to vector<1x128xf32>
    %cst_37 = arith.constant 3.906250e-03 : f32
    %53 = vector.broadcast %cst_37 : f32 to vector<1x128xf32>
    %54 = arith.mulf %52, %53 : vector<1x128xf32>
    %cst_38 = arith.constant 9.99999974E-6 : f32
    %55 = vector.broadcast %cst_38 : f32 to vector<1x128xf32>
    %56 = arith.addf %54, %55 : vector<1x128xf32>
    %57 = math.rsqrt %56 : vector<1x128xf32>
    %58 = arith.mulf %4, %57 : vector<1x128xf32>
    %59 = vector.broadcast %58 : vector<1x128xf32> to vector<256x128xf32>
    %60 = arith.mulf %49, %59 : vector<256x128xf32>
    %61 = vector.broadcast %5 : vector<1x128xf32> to vector<256x128xf32>
    %62 = arith.addf %60, %61 : vector<256x128xf32>
    %63 = arith.truncf %62 : vector<256x128xf32> to vector<256x128xbf16>
    %c0_39 = arith.constant 0 : index
    %c0_40 = arith.constant 0 : index
    %64 = vector.load %arg10[%c0_39, %c0_40] : memref<128x128xbf16, #tpu.memory_space<vmem>>, vector<128x128xbf16>
    %cst_41 = arith.constant dense<0.000000e+00> : vector<256x128xf32>
    %65 = tpu.matmul %63, %64, %cst_41 {dimension_numbers = #tpu.dot_dimension_numbers<[1], [0], [0], [1], [0, 0, 1, 1], [], []>} : vector<256x128xbf16>, vector<128x128xbf16>, vector<256x128xf32> -> vector<256x128xf32>
    %66 = vector.broadcast %6 : vector<1x128xf32> to vector<256x128xf32>
    %67 = arith.addf %65, %66 : vector<256x128xf32>
    %68 = tpu.iota {dimensions = array<i32: 1>} : vector<256x128xi32>
    %c64_i32 = arith.constant 64 : i32
    %69 = vector.broadcast %c64_i32 : i32 to vector<256x128xi32>
    %70 = arith.cmpi sge, %68, %69 : vector<256x128xi32>
    %c0_42 = arith.constant 0 : index
    %c0_43 = arith.constant 0 : index
    %c0_44 = arith.constant 0 : index
    %71 = vector.load %arg18[%c0_42, %c0_43, %c0_44] : memref<1x256x128xf32, #tpu.memory_space<vmem>>, vector<1x256x128xf32>
    %72 = vector.shape_cast %71 : vector<1x256x128xf32> to vector<256x128xf32>
    %cst_45 = arith.constant 5.000000e-01 : f32
    %73 = vector.broadcast %cst_45 : f32 to vector<256x128xf32>
    %74 = arith.mulf %73, %67 : vector<256x128xf32>
    %75 = math.exp %74 : vector<256x128xf32>
    %76 = arith.mulf %72, %75 : vector<256x128xf32>
    %77 = arith.select %70, %76, %67 : vector<256x128xi1>, vector<256x128xf32>
    %78 = arith.truncf %77 : vector<256x128xf32> to vector<256x128xbf16>
    %c0_46 = arith.constant 0 : index
    %c0_47 = arith.constant 0 : index
    %79 = vector.load %arg12[%c0_46, %c0_47] : memref<128x128xbf16, #tpu.memory_space<vmem>>, vector<128x128xbf16>
    %cst_48 = arith.constant dense<0.000000e+00> : vector<256x128xf32>
    %80 = tpu.matmul %78, %79, %cst_48 {dimension_numbers = #tpu.dot_dimension_numbers<[1], [0], [0], [1], [0, 0, 1, 1], [], []>} : vector<256x128xbf16>, vector<128x128xbf16>, vector<256x128xf32> -> vector<256x128xf32>
    %81 = vector.broadcast %7 : vector<1x128xf32> to vector<256x128xf32>
    %82 = arith.addf %80, %81 : vector<256x128xf32>
    %cst_49 = arith.constant 0.000000e+00 : f32
    %83 = vector.broadcast %cst_49 : f32 to vector<256x128xf32>
    %84 = arith.maximumf %82, %83 : vector<256x128xf32>
    %85 = arith.truncf %84 : vector<256x128xf32> to vector<256x128xbf16>
    %c0_50 = arith.constant 0 : index
    %c0_51 = arith.constant 0 : index
    %86 = vector.load %arg14[%c0_50, %c0_51] : memref<128x128xbf16, #tpu.memory_space<vmem>>, vector<128x128xbf16>
    %cst_52 = arith.constant dense<0.000000e+00> : vector<256x128xf32>
    %87 = tpu.matmul %85, %86, %cst_52 {dimension_numbers = #tpu.dot_dimension_numbers<[1], [0], [0], [1], [0, 0, 1, 1], [], []>} : vector<256x128xbf16>, vector<128x128xbf16>, vector<256x128xf32> -> vector<256x128xf32>
    %88 = vector.broadcast %8 : vector<1x128xf32> to vector<256x128xf32>
    %89 = arith.addf %87, %88 : vector<256x128xf32>
    %cst_53 = arith.constant 0.000000e+00 : f32
    %90 = vector.broadcast %cst_53 : f32 to vector<256x128xf32>
    %91 = arith.maximumf %89, %90 : vector<256x128xf32>
    %92 = arith.truncf %91 : vector<256x128xf32> to vector<256x128xbf16>
    %c0_54 = arith.constant 0 : index
    %c0_55 = arith.constant 0 : index
    %93 = vector.load %arg16[%c0_54, %c0_55] : memref<128x128xbf16, #tpu.memory_space<vmem>>, vector<128x128xbf16>
    %cst_56 = arith.constant dense<0.000000e+00> : vector<256x128xf32>
    %94 = tpu.matmul %92, %93, %cst_56 {dimension_numbers = #tpu.dot_dimension_numbers<[1], [0], [0], [1], [0, 0, 1, 1], [], []>} : vector<256x128xbf16>, vector<128x128xbf16>, vector<256x128xf32> -> vector<256x128xf32>
    %95 = vector.broadcast %9 : vector<1x128xf32> to vector<256x128xf32>
    %96 = arith.addf %94, %95 : vector<256x128xf32>
    %cst_57 = arith.constant 0.000000e+00 : f32
    %97 = vector.broadcast %cst_57 : f32 to vector<256x128xf32>
    %98 = arith.subf %97, %96 : vector<256x128xf32>
    %99 = math.exp %98 : vector<256x128xf32>
    %cst_58 = arith.constant 1.000000e+00 : f32
    %100 = vector.broadcast %cst_58 : f32 to vector<256x128xf32>
    %101 = arith.addf %100, %99 : vector<256x128xf32>
    %102 = tpu.reciprocal %101 : vector<256x128xf32> -> vector<256x128xf32>
    %c0_59 = arith.constant 0 : index
    %c0_60 = arith.constant 0 : index
    %c0_61 = arith.constant 0 : index
    %103 = vector.load %arg19[%c0_59, %c0_60, %c0_61] : memref<1x256x128xf32, #tpu.memory_space<vmem>>, vector<1x256x128xf32>
    %104 = vector.shape_cast %103 : vector<1x256x128xf32> to vector<256x128xf32>
    %105 = vector.shape_cast %102 : vector<256x128xf32> to vector<1x256x128xf32>
    tpu.vector_store %arg19[%c0_59, %c0_60, %c0_61], %105 {strides = array<i32>} : memref<1x256x128xf32, #tpu.memory_space<vmem>>, vector<1x256x128xf32>,
    %c0_62 = arith.constant 0 : index
    %c0_63 = arith.constant 0 : index
    %c0_64 = arith.constant 0 : index
    %106 = vector.load %arg20[%c0_62, %c0_63, %c0_64] : memref<1x256x128xf32, #tpu.memory_space<vmem>>, vector<1x256x128xf32>
    %107 = vector.shape_cast %106 : vector<1x256x128xf32> to vector<256x128xf32>
    %108 = vector.shape_cast %67 : vector<256x128xf32> to vector<1x256x128xf32>
    tpu.vector_store %arg20[%c0_62, %c0_63, %c0_64], %108 {strides = array<i32>} : memref<1x256x128xf32, #tpu.memory_space<vmem>>, vector<1x256x128xf32>,
    return
  }
  func.func @transform_0(%arg0: i32) -> (i32, i32, i32) {
    %c0_i32 = arith.constant 0 : i32
    %c0_i32_0 = arith.constant 0 : i32
    %c0_i32_1 = arith.constant 0 : i32
    return %arg0, %c0_i32, %c0_i32_0 : i32, i32, i32
  }
  func.func @transform_1(%arg0: i32) -> (i32, i32) {
    %c0_i32 = arith.constant 0 : i32
    %c0_i32_0 = arith.constant 0 : i32
    %c0_i32_1 = arith.constant 0 : i32
    return %c0_i32, %c0_i32_0 : i32, i32
  }
  func.func @transform_2(%arg0: i32) -> (i32, i32) {
    %c0_i32 = arith.constant 0 : i32
    %c0_i32_0 = arith.constant 0 : i32
    %c0_i32_1 = arith.constant 0 : i32
    return %c0_i32, %c0_i32_0 : i32, i32
  }
  func.func @transform_3(%arg0: i32) -> (i32, i32) {
    %c0_i32 = arith.constant 0 : i32
    %c0_i32_0 = arith.constant 0 : i32
    %c0_i32_1 = arith.constant 0 : i32
    return %c0_i32, %c0_i32_0 : i32, i32
  }
  func.func @transform_4(%arg0: i32) -> (i32, i32) {
    %c0_i32 = arith.constant 0 : i32
    %c0_i32_0 = arith.constant 0 : i32
    %c0_i32_1 = arith.constant 0 : i32
    return %c0_i32, %c0_i32_0 : i32, i32
  }
  func.func @transform_5(%arg0: i32) -> (i32, i32) {
    %c0_i32 = arith.constant 0 : i32
    %c0_i32_0 = arith.constant 0 : i32
    %c0_i32_1 = arith.constant 0 : i32
    return %c0_i32, %c0_i32_0 : i32, i32
  }
  func.func @transform_6(%arg0: i32) -> (i32, i32) {
    %c0_i32 = arith.constant 0 : i32
    %c0_i32_0 = arith.constant 0 : i32
    %c0_i32_1 = arith.constant 0 : i32
    return %c0_i32, %c0_i32_0 : i32, i32
  }
  func.func @transform_7(%arg0: i32) -> (i32, i32) {
    %c0_i32 = arith.constant 0 : i32
    %c0_i32_0 = arith.constant 0 : i32
    %c0_i32_1 = arith.constant 0 : i32
    return %c0_i32, %c0_i32_0 : i32, i32
  }
  func.func @transform_8(%arg0: i32) -> (i32, i32) {
    %c0_i32 = arith.constant 0 : i32
    %c0_i32_0 = arith.constant 0 : i32
    %c0_i32_1 = arith.constant 0 : i32
    return %c0_i32, %c0_i32_0 : i32, i32
  }
  func.func @transform_9(%arg0: i32) -> (i32, i32) {
    %c0_i32 = arith.constant 0 : i32
    %c0_i32_0 = arith.constant 0 : i32
    %c0_i32_1 = arith.constant 0 : i32
    return %c0_i32, %c0_i32_0 : i32, i32
  }
  func.func @transform_10(%arg0: i32) -> (i32, i32) {
    %c0_i32 = arith.constant 0 : i32
    %c0_i32_0 = arith.constant 0 : i32
    %c0_i32_1 = arith.constant 0 : i32
    return %c0_i32, %c0_i32_0 : i32, i32
  }
  func.func @transform_11(%arg0: i32) -> (i32, i32) {
    %c0_i32 = arith.constant 0 : i32
    %c0_i32_0 = arith.constant 0 : i32
    %c0_i32_1 = arith.constant 0 : i32
    return %c0_i32, %c0_i32_0 : i32, i32
  }
  func.func @transform_12(%arg0: i32) -> (i32, i32) {
    %c0_i32 = arith.constant 0 : i32
    %c0_i32_0 = arith.constant 0 : i32
    %c0_i32_1 = arith.constant 0 : i32
    return %c0_i32, %c0_i32_0 : i32, i32
  }
  func.func @transform_13(%arg0: i32) -> (i32, i32) {
    %c0_i32 = arith.constant 0 : i32
    %c0_i32_0 = arith.constant 0 : i32
    %c0_i32_1 = arith.constant 0 : i32
    return %c0_i32, %c0_i32_0 : i32, i32
  }
  func.func @transform_14(%arg0: i32) -> (i32, i32) {
    %c0_i32 = arith.constant 0 : i32
    %c0_i32_0 = arith.constant 0 : i32
    %c0_i32_1 = arith.constant 0 : i32
    return %c0_i32, %c0_i32_0 : i32, i32
  }
  func.func @transform_15(%arg0: i32) -> (i32, i32) {
    %c0_i32 = arith.constant 0 : i32
    %c0_i32_0 = arith.constant 0 : i32
    %c0_i32_1 = arith.constant 0 : i32
    return %c0_i32, %c0_i32_0 : i32, i32
  }
  func.func @transform_16(%arg0: i32) -> (i32, i32) {
    %c0_i32 = arith.constant 0 : i32
    %c0_i32_0 = arith.constant 0 : i32
    %c0_i32_1 = arith.constant 0 : i32
    return %c0_i32, %c0_i32_0 : i32, i32
  }
  func.func @transform_17(%arg0: i32) -> (i32, i32, i32) {
    %c0_i32 = arith.constant 0 : i32
    %c0_i32_0 = arith.constant 0 : i32
    %c0_i32_1 = arith.constant 0 : i32
    return %arg0, %c0_i32, %c0_i32_0 : i32, i32, i32
  }
  func.func @transform_18(%arg0: i32) -> (i32, i32, i32) {
    %c0_i32 = arith.constant 0 : i32
    %c0_i32_0 = arith.constant 0 : i32
    %c0_i32_1 = arith.constant 0 : i32
    return %arg0, %c0_i32, %c0_i32_0 : i32, i32, i32
  }
  func.func @transform_19(%arg0: i32) -> (i32, i32, i32) {
    %c0_i32 = arith.constant 0 : i32
    %c0_i32_0 = arith.constant 0 : i32
    %c0_i32_1 = arith.constant 0 : i32
    return %arg0, %c0_i32, %c0_i32_0 : i32, i32, i32
  }
}

</mosaic_0001>

<bundles_post_ra>
// kernel: vae_forward.1
= control target key start
LH: loop header
LB: loop body
LE: loop exit
PB: predicated region body
PF: predicated region fallthrough
CT: control target
= control target key end

     0   :  { %s5259_s0 = inlined_call_operand.vmem [shape: bf16[1,256,128], index: 0, kind: input, shape index: {}]   ;;  %s5260_s1 = inlined_call_operand.vmem [shape: bf16[128,128], index: 1, kind: input, shape index: {}]   ;;  %s5261_s2 = inlined_call_operand.vmem [shape: f32[1,128], index: 2, kind: input, shape index: {}]   ;;  %s5262_s3 = inlined_call_operand.vmem [shape: f32[1,128], index: 3, kind: input, shape index: {}]   ;;  %s5263_s4 = inlined_call_operand.vmem [shape: f32[1,128], index: 4, kind: input, shape index: {}]   ;;  %s5264_s5 = inlined_call_operand.vmem [shape: bf16[128,128], index: 5, kind: input, shape index: {}]   ;;  %s5265_s6 = inlined_call_operand.vmem [shape: f32[1,128], index: 6, kind: input, shape index: {}]   ;;  %s5266_s7 = inlined_call_operand.vmem [shape: f32[1,128], index: 7, kind: input, shape index: {}]   ;;  %s5267_s8 = inlined_call_operand.vmem [shape: f32[1,128], index: 8, kind: input, shape index: {}]   ;;  %s5268_s9 = inlined_call_operand.vmem [shape: bf16[128,128], index: 9, kind: input, shape index: {}]   ;;  %s5269_s10 = inlined_call_operand.vmem [shape: f32[1,128], index: 10, kind: input, shape index: {}]   ;;  %s5270_s11 = inlined_call_operand.vmem [shape: bf16[128,128], index: 11, kind: input, shape index: {}]   ;;  %s5271_s12 = inlined_call_operand.vmem [shape: f32[1,128], index: 12, kind: input, shape index: {}]   ;;  %s5272_s13 = inlined_call_operand.vmem [shape: bf16[128,128], index: 13, kind: input, shape index: {}]   ;;  %s5273_s14 = inlined_call_operand.vmem [shape: f32[1,128], index: 14, kind: input, shape index: {}]   ;;  %s5274_s15 = inlined_call_operand.vmem [shape: bf16[128,128], index: 15, kind: input, shape index: {}]   ;;  %s5275_s16 = inlined_call_operand.vmem [shape: f32[1,128], index: 16, kind: input, shape index: {}]   ;;  %s5276_s17 = inlined_call_operand.vmem [shape: f32[1,256,128], index: 17, kind: input, shape index: {}]   ;;  %s5277_s18 = inlined_call_operand.hbm [shape: f32[1,256,128], index: 18, kind: output, shape index: {0}]   ;;  %s5278_s19 = inlined_call_operand.vmem [shape: f32[1,256,128], index: 19, kind: output, shape index: {1}]  }
   0x1   :  { %5298 = sst [smem:[#allocation5_spill]] %s5259_s0 }
   0x2   :  { %5299 = sst [smem:[#allocation6_spill]] %s5260_s1 }
   0x3   :  { %5300 = sst [smem:[#allocation7_spill]] %s5261_s2 }
   0x4   :  { %5301 = sst [smem:[#allocation8_spill]] %s5262_s3 }
   0x5   :  { %s5302_s20 = sld [smem:[#allocation6_spill]]  ;;  %s5303_s26 = sld [smem:[#allocation5_spill]] }
   0xb   :  { %v3179_v0 = vld [vmem:[%s5302_s20] sm:$0xff]   ;;  %v3180_v1 = vld [vmem:[%s5302_s20 + $0x8] sm:$0xff]   ;;  %v3181_v2 = vld [vmem:[%s5302_s20 + $0x10] sm:$0xff]  }
   0xc   :  { %2888 = vmatprep.subr.bf16.mxu0 %v3179_v0  ;;  %v3182_v3 = vld [vmem:[%s5302_s20 + $0x18] sm:$0xff]   ;;  %v3187_v4 = vld [vmem:[%s5303_s26] sm:$0xff]   ;;  %v3184_v6 = vld [vmem:[%s5302_s20 + $0x28] sm:$0xff]  }
   0xd   :  { %2889 = vmatpush3.bf16.msra.mxu0 %v3179_v0  ;;  %2904 = vmatprep.mubr.bf16.mxu0 %v3187_v4  ;;  %v3183_v5 = vld [vmem:[%s5302_s20 + $0x20] sm:$0xff]   ;;  %v3185_v7 = vld [vmem:[%s5302_s20 + $0x30] sm:$0xff]   ;;  %v3186_v8 = vld [vmem:[%s5302_s20 + $0x38] sm:$0xff]  }
   0xe   :  { %2890 = vmatprep.subr.bf16.mxu0 %v3180_v1  ;;  %v3188_v9 = vld [vmem:[%s5303_s26 + $0x8] sm:$0xff]   ;;  %v3189_v10 = vld [vmem:[%s5303_s26 + $0x10] sm:$0xff]   ;;  %v3190_v11 = vld [vmem:[%s5303_s26 + $0x18] sm:$0xff]  }
   0xf   :  { %v3191_v12 = vld [vmem:[%s5303_s26 + $0x20] sm:$0xff]   ;;  %v3192_v13 = vld [vmem:[%s5303_s26 + $0x28] sm:$0xff]   ;;  %v3193_v14 = vld [vmem:[%s5303_s26 + $0x30] sm:$0xff]  }
  0x11   :  { %2891 = vmatpush3.bf16.msra.mxu0 %v3180_v1 }
  0x12   :  { %2892 = vmatprep.subr.bf16.mxu0 %v3181_v2 }
  0x15   :  { %2893 = vmatpush3.bf16.msra.mxu0 %v3181_v2 }
  0x16   :  { %2894 = vmatprep.subr.bf16.mxu0 %v3182_v3 }
  0x19   :  { %2895 = vmatpush3.bf16.msra.mxu0 %v3182_v3 }
  0x1a   :  { %2896 = vmatprep.subr.bf16.mxu0 %v3183_v5 }
  0x1d   :  { %2897 = vmatpush3.bf16.msra.mxu0 %v3183_v5 }
  0x1e   :  { %2898 = vmatprep.subr.bf16.mxu0 %v3184_v6 }
  0x21   :  { %2899 = vmatpush3.bf16.msra.mxu0 %v3184_v6 }
  0x22   :  { %2900 = vmatprep.subr.bf16.mxu0 %v3185_v7 }
  0x25   :  { %2901 = vmatpush3.bf16.msra.mxu0 %v3185_v7 }
  0x26   :  { %2902 = vmatprep.subr.bf16.mxu0 %v3186_v8 }
  0x29   :  { %2903 = vmatpush3.bf16.msra.mxu0 %v3186_v8 }
  0x2c   :  { %2905 = vmatmul.mubr.bf16.vlgmr.msra.gmra.mrb[0].mxu0 %v3188_v9 }
  0x2d   :  { %2908 = vmatprep.mubr.bf16.mxu0 %v3189_v10 }
  0x34   :  { %2909 = vmatmul.mubr.bf16.gmra.mrb[4].mxu0 %v3190_v11 }
  0x35   :  { %2912 = vmatprep.mubr.bf16.mxu0 %v3191_v12 }
  0x3c   :  { %2913 = vmatmul.mubr.bf16.gmra.mrb[8].mxu0 %v3192_v13 }
  0x3d   :  { %25 = vsyncpa [#allocation3], 0  ;;  %2916 = vmatprep.mubr.bf16.mxu0 %v3193_v14  ;;  %v3194_v15 = vld [vmem:[%s5303_s26 + $0x38] sm:$0xff]   ;;  %v3195_v16 = vld [vmem:[%s5303_s26 + $0x40] sm:$0xff]   ;;  %s5304_s3 = sld [smem:[#allocation7_spill]]  ;;  %s5312_s28 = sld [smem:[#allocation8_spill]] }
  0x3e   :  { %v3196_v17 = vld [vmem:[%s5303_s26 + $0x48] sm:$0xff]   ;;  %v3197_v18 = vld [vmem:[%s5303_s26 + $0x50] sm:$0xff]   ;;  %v3198_v19 = vld [vmem:[%s5303_s26 + $0x58] sm:$0xff]  }
  0x3f   :  { %v3199_v20 = vld [vmem:[%s5303_s26 + $0x60] sm:$0xff]   ;;  %v3200_v21 = vld [vmem:[%s5303_s26 + $0x68] sm:$0xff]   ;;  %v3201_v22 = vld [vmem:[%s5303_s26 + $0x70] sm:$0xff]  }
  0x40   :  { %v3202_v23 = vld [vmem:[%s5303_s26 + $0x78] sm:$0xff]  }
  0x43   :  { %v3641_v24 = vld [vmem:[%s5304_s3] ss:$0 sm:$0xff] }
  0x44   :  { %2917 = vmatmul.mubr.bf16.gmra.mrb[12].mxu0 %v3194_v15 }
  0x45   :  { %2920 = vmatprep.mubr.bf16.mxu0 %v3195_v16 }
  0x4c   :  { %2921 = vmatmul.mubr.bf16.gmra.mrb[16].mxu0 %v3196_v17 }
  0x4d   :  { %2924 = vmatprep.mubr.bf16.mxu0 %v3197_v18 }
  0x54   :  { %2925 = vmatmul.mubr.bf16.gmra.mrb[20].mxu0 %v3198_v19 }
  0x55   :  { %2928 = vmatprep.mubr.bf16.mxu0 %v3199_v20 }
  0x5c   :  { %2929 = vmatmul.mubr.bf16.gmra.mrb[24].mxu0 %v3200_v21 }
  0x5d   :  { %2932 = vmatprep.mubr.bf16.mxu0 %v3201_v22 }
  0x64   :  { %2933 = vmatmul.mubr.bf16.gmra.mrb[28].mxu0 %v3202_v23 }
  0xff   :  { %v2906_v25 = vpop.f32.mrb[0].mxu0 }
 0x100   :  { %v305_v26 = vpop.f32.mrb[1].mxu0  ;;  %v3647_v30 = vadd.f32 %v2906_v25, %v3641_v24 }
 0x101   :  { %v3644_v27 = vadd.f32 %v3641_v24, %v305_v26  ;;  %v2907_v28 = vpop.f32.mrb[2].mxu0 }
 0x102   :  { %v308_v29 = vpop.f32.mrb[3].mxu0  ;;  %v3654_v33 = vadd.f32 %v2907_v28, %v3641_v24  ;;  %v5286_v35 = vmax.f32 %v3647_v30, 0.0 }
 0x103   :  { %v3650_v31 = vadd.f32 %v3641_v24, %v308_v29  ;;  %v432_v32 = vmax.f32 %v3644_v27, 0.0 }
 0x104   :  { %v5285_v39 = vmax.f32 %v3654_v33, 0.0 }
 0x105   :  { %v5287_v34 = vmax.f32 %v3650_v31, 0.0 }
 0x107   :  { %v464_v36 = vadd.f32 %v5287_v34, %v432_v32  ;;  %v2910_v37 = vpop.f32.mrb[4].mxu0 }
 0x108   :  { %v321_v38 = vpop.f32.mrb[5].mxu0  ;;  %v3669_v44 = vadd.f32 %v2910_v37, %v3641_v24 }
 0x109   :  { %v465_v40 = vadd.f32 %v464_v36, %v5286_v35  ;;  %v3666_v41 = vadd.f32 %v3641_v24, %v321_v38  ;;  %v2911_v42 = vpop.f32.mrb[6].mxu0 }
 0x10a   :  { %v324_v43 = vpop.f32.mrb[7].mxu0  ;;  %v3680_v49 = vadd.f32 %v2911_v42, %v3641_v24  ;;  %v5282_v51 = vmax.f32 %v3669_v44, 0.0 }
 0x10b   :  { %v5284_v45 = vmax.f32 %v3666_v41, 0.0  ;;  %v466_v46 = vadd.f32 %v465_v40, %v5285_v39  ;;  %v3675_v47 = vadd.f32 %v3641_v24, %v324_v43  ;;  %v5308_v27 = vmax.f32 %v3666_v41, 0.0 }
 0x10c   :  { %v5281_v55 = vmax.f32 %v3680_v49, 0.0 }
 0x10d   :  { %v467_v48 = vadd.f32 %v466_v46, %v5284_v45  ;;  %v5283_v50 = vmax.f32 %v3675_v47, 0.0 }
 0x10f   :  { %v468_v52 = vadd.f32 %v467_v48, %v5283_v50  ;;  %v2914_v53 = vpop.f32.mrb[8].mxu0 }
 0x110   :  { %v337_v54 = vpop.f32.mrb[9].mxu0  ;;  %v3693_v60 = vadd.f32 %v2914_v53, %v3641_v24 }
 0x111   :  { %v469_v56 = vadd.f32 %v468_v52, %v5282_v51  ;;  %v3690_v57 = vadd.f32 %v3641_v24, %v337_v54  ;;  %v2915_v58 = vpop.f32.mrb[10].mxu0 }
 0x112   :  { %v340_v59 = vpop.f32.mrb[11].mxu0  ;;  %v3704_v1 = vadd.f32 %v2915_v58, %v3641_v24  ;;  %v442_v3 = vmax.f32 %v3693_v60, 0.0 }
 0x113   :  { %v440_v61 = vmax.f32 %v3690_v57, 0.0  ;;  %v470_v62 = vadd.f32 %v469_v56, %v5281_v55  ;;  %v3699_v63 = vadd.f32 %v3641_v24, %v340_v59 }
 0x114   :  { %v443_v7 = vmax.f32 %v3704_v1, 0.0 }
 0x115   :  { %v471_v0 = vadd.f32 %v470_v62, %v440_v61  ;;  %v441_v2 = vmax.f32 %v3699_v63, 0.0 }
 0x117   :  { %v472_v4 = vadd.f32 %v471_v0, %v441_v2  ;;  %v2918_v5 = vpop.f32.mrb[12].mxu0 }
 0x118   :  { %v353_v6 = vpop.f32.mrb[13].mxu0  ;;  %v3717_v12 = vadd.f32 %v2918_v5, %v3641_v24 }
 0x119   :  { %v473_v8 = vadd.f32 %v472_v4, %v442_v3  ;;  %v3714_v9 = vadd.f32 %v3641_v24, %v353_v6  ;;  %v2919_v10 = vpop.f32.mrb[14].mxu0 }
 0x11a   :  { %v356_v11 = vpop.f32.mrb[15].mxu0  ;;  %v3728_v17 = vadd.f32 %v2919_v10, %v3641_v24  ;;  %v446_v19 = vmax.f32 %v3717_v12, 0.0  ;;  %v3203_v10 = vld [vmem:[%s5264_s5] sm:$0xff]  }
 0x11b   :  { %v444_v13 = vmax.f32 %v3714_v9, 0.0  ;;  %v474_v14 = vadd.f32 %v473_v8, %v443_v7  ;;  %v3723_v15 = vadd.f32 %v3641_v24, %v356_v11  ;;  %2936 = vmatprep.subr.bf16.mxu1 %v3203_v10 }
 0x11c   :  { %v447_v23 = vmax.f32 %v3728_v17, 0.0  ;;  %2937 = vmatpush3.bf16.msra.mxu1 %v3203_v10 }
 0x11d   :  { %v475_v16 = vadd.f32 %v474_v14, %v444_v13  ;;  %v445_v18 = vmax.f32 %v3723_v15, 0.0 }
 0x11f   :  { %v476_v20 = vadd.f32 %v475_v16, %v445_v18  ;;  %v2922_v21 = vpop.f32.mrb[16].mxu0 }
 0x120   :  { %v369_v22 = vpop.f32.mrb[17].mxu0  ;;  %v3741_v36 = vadd.f32 %v2922_v21, %v3641_v24 }
 0x121   :  { %v477_v25 = vadd.f32 %v476_v20, %v446_v19  ;;  %v3738_v26 = vadd.f32 %v3641_v24, %v369_v22  ;;  %v2923_v28 = vpop.f32.mrb[18].mxu0 }
 0x122   :  { %v372_v29 = vpop.f32.mrb[19].mxu0  ;;  %v3752_v43 = vadd.f32 %v2923_v28, %v3641_v24  ;;  %v450_v48 = vmax.f32 %v3741_v36, 0.0  ;;  %v3204_v28 = vld [vmem:[%s5264_s5 + $0x8] sm:$0xff]  }
 0x123   :  { %v448_v37 = vmax.f32 %v3738_v26, 0.0  ;;  %v478_v38 = vadd.f32 %v477_v25, %v447_v23  ;;  %v3747_v40 = vadd.f32 %v3641_v24, %v372_v29  ;;  %2938 = vmatprep.subr.bf16.mxu1 %v3204_v28 }
 0x124   :  { %v451_v56 = vmax.f32 %v3752_v43, 0.0  ;;  %2939 = vmatpush3.bf16.msra.mxu1 %v3204_v28  ;;  %v5305_v43 = vmax.f32 %v3650_v31, 0.0 }
 0x125   :  { %v479_v42 = vadd.f32 %v478_v38, %v448_v37  ;;  %v449_v46 = vmax.f32 %v3747_v40, 0.0 }
 0x127   :  { %v480_v52 = vadd.f32 %v479_v42, %v449_v46  ;;  %v2926_v53 = vpop.f32.mrb[20].mxu0 }
 0x128   :  { %v385_v54 = vpop.f32.mrb[21].mxu0  ;;  %v3765_v4 = vadd.f32 %v2926_v53, %v3641_v24 }
 0x129   :  { %v481_v58 = vadd.f32 %v480_v52, %v450_v48  ;;  %v3762_v59 = vadd.f32 %v3641_v24, %v385_v54  ;;  %v2927_v62 = vpop.f32.mrb[22].mxu0 }
 0x12a   :  { %v388_v0 = vpop.f32.mrb[23].mxu0  ;;  %v3779_v14 = vadd.f32 %v2927_v62, %v3641_v24  ;;  %v454_v20 = vmax.f32 %v3765_v4, 0.0  ;;  %v5307_v4 = vmax.f32 %v3654_v33, 0.0  ;;  %v5310_v33 = vmax.f32 %v3669_v44, 0.0 }
 0x12b   :  { %v452_v5 = vmax.f32 %v3762_v59, 0.0  ;;  %v482_v6 = vadd.f32 %v481_v58, %v451_v56  ;;  %v3771_v8 = vadd.f32 %v3641_v24, %v388_v0 }
 0x12c   :  { %v455_v29 = vmax.f32 %v3779_v14, 0.0 }
 0x12d   :  { %v483_v11 = vadd.f32 %v482_v6, %v452_v5  ;;  %v453_v16 = vmax.f32 %v3771_v8, 0.0  ;;  %v3205_v6 = vld [vmem:[%s5264_s5 + $0x10] sm:$0xff]   ;;  %v5309_v8 = vmax.f32 %v3675_v47, 0.0 }
 0x12e   :  { %2940 = vmatprep.subr.bf16.mxu1 %v3205_v6 }
 0x12f   :  { %v484_v21 = vadd.f32 %v483_v11, %v453_v16  ;;  %v2930_v22 = vpop.f32.mrb[24].mxu0  ;;  %2941 = vmatpush3.bf16.msra.mxu1 %v3205_v6  ;;  %v3207_v6 = vld [vmem:[%s5264_s5 + $0x20] sm:$0xff]  }
 0x130   :  { %v401_v25 = vpop.f32.mrb[25].mxu0  ;;  %v3795_v54 = vadd.f32 %v2930_v22, %v3641_v24 }
 0x131   :  { %v485_v38 = vadd.f32 %v484_v21, %v454_v20  ;;  %v3792_v42 = vadd.f32 %v3641_v24, %v401_v25  ;;  %v2931_v52 = vpop.f32.mrb[26].mxu0 }
 0x132   :  { %v404_v53 = vpop.f32.mrb[27].mxu0  ;;  %v3809_v11 = vadd.f32 %v2931_v52, %v3641_v24  ;;  %v458_v22 = vmax.f32 %v3795_v54, 0.0 }
 0x133   :  { %v456_v58 = vmax.f32 %v3792_v42, 0.0  ;;  %v486_v62 = vadd.f32 %v485_v38, %v455_v29  ;;  %v3801_v0 = vadd.f32 %v3641_v24, %v404_v53  ;;  %v3206_v53 = vld [vmem:[%s5264_s5 + $0x18] sm:$0xff]  }
 0x134   :  { %2942 = vmatprep.subr.bf16.mxu1 %v3206_v53 }
 0x135   :  { %v487_v10 = vadd.f32 %v486_v62, %v456_v58  ;;  %v457_v21 = vmax.f32 %v3801_v0, 0.0  ;;  %v459_v62 = vmax.f32 %v3809_v11, 0.0  ;;  %2943 = vmatpush3.bf16.msra.mxu1 %v3206_v53 }
 0x136   :  { %2944 = vmatprep.subr.bf16.mxu1 %v3207_v6 }
 0x137   :  { %v488_v25 = vadd.f32 %v487_v10, %v457_v21  ;;  %v2934_v38 = vpop.f32.mrb[28].mxu0 }
 0x138   :  { %v417_v28 = vpop.f32.mrb[29].mxu0  ;;  %v426_v54 = vadd.f32 %v2934_v38, %v3641_v24  ;;  %v3208_v38 = vld [vmem:[%s5264_s5 + $0x28] sm:$0xff]  }
 0x139   :  { %v489_v55 = vadd.f32 %v488_v25, %v458_v22  ;;  %v418_v52 = vadd.f32 %v3641_v24, %v417_v28  ;;  %v2935_v51 = vpop.f32.mrb[30].mxu0  ;;  %2945 = vmatpush3.bf16.msra.mxu1 %v3207_v6 }
 0x13a   :  { %v420_v50 = vpop.f32.mrb[31].mxu0  ;;  %v429_v11 = vadd.f32 %v2935_v51, %v3641_v24  ;;  %v462_v28 = vmax.f32 %v426_v54, 0.0  ;;  %2946 = vmatprep.subr.bf16.mxu1 %v3208_v38 }
 0x13b   :  { %v460_v45 = vmax.f32 %v418_v52, 0.0  ;;  %v490_v39 = vadd.f32 %v489_v55, %v459_v62  ;;  %v421_v10 = vadd.f32 %v3641_v24, %v420_v50 }
 0x13c   :  { %v463_v55 = vmax.f32 %v429_v11, 0.0 }
 0x13d   :  { %v491_v35 = vadd.f32 %v490_v39, %v460_v45  ;;  %v461_v25 = vmax.f32 %v421_v10, 0.0  ;;  %2947 = vmatpush3.bf16.msra.mxu1 %v3208_v38  ;;  %v3209_v39 = vld [vmem:[%s5264_s5 + $0x30] sm:$0xff]  }
 0x13e   :  { %2948 = vmatprep.subr.bf16.mxu1 %v3209_v39 }
 0x13f   :  { %v492_v34 = vadd.f32 %v491_v35, %v461_v25  ;;  %v3210_v35 = vld [vmem:[%s5264_s5 + $0x38] sm:$0xff]  }
 0x141   :  { %v493_v52 = vadd.f32 %v492_v34, %v462_v28  ;;  %2949 = vmatpush3.bf16.msra.mxu1 %v3209_v39 }
 0x142   :  { %2950 = vmatprep.subr.bf16.mxu1 %v3210_v35 }
 0x143   :  { %v494_v50 = vadd.f32 %v493_v52, %v463_v55 }
 0x145   :  { %v495_v53 = vrot.slane %v494_v50, 4  ;;  %2951 = vmatpush3.bf16.msra.mxu1 %v3210_v35 }
 0x147   :  { %v496_v24 = vadd.f32 %v495_v53, %v494_v50 }
 0x149   :  { %v497_v51 = vrot.slane %v496_v24, 2 }
 0x14b   :  { %v498_v54 = vadd.f32 %v497_v51, %v496_v24 }
 0x14d   :  { %v499_v34 = vrot.slane %v498_v54, 1 }
 0x14f   :  { %v500_v10 = vadd.f32 %v499_v34, %v498_v54 }
 0x151   :  { %v501_v6 = vmul.f32 0.00390625, %v500_v10 }
 0x153   :  { %v3837_v11 = vsub.f32 %v440_v61, %v501_v6  ;;  %v3841_v38 = vsub.f32 %v441_v2, %v501_v6  ;;  %v3845_v52 = vsub.f32 %v442_v3, %v501_v6  ;;  %v3849_v50 = vsub.f32 %v443_v7, %v501_v6 }
 0x154   :  { %v3853_v39 = vsub.f32 %v444_v13, %v501_v6  ;;  %v3857_v57 = vsub.f32 %v445_v18, %v501_v6  ;;  %v3861_v61 = vsub.f32 %v446_v19, %v501_v6  ;;  %v3865_v60 = vsub.f32 %v447_v23, %v501_v6 }
 0x155   :  { %v3869_v63 = vsub.f32 %v448_v37, %v501_v6  ;;  %v3873_v1 = vsub.f32 %v449_v46, %v501_v6  ;;  %v3877_v2 = vsub.f32 %v450_v48, %v501_v6  ;;  %v3881_v3 = vsub.f32 %v451_v56, %v501_v6 }
 0x156   :  { %v3885_v7 = vsub.f32 %v452_v5, %v501_v6  ;;  %v3889_v9 = vsub.f32 %v453_v16, %v501_v6  ;;  %v3893_v12 = vsub.f32 %v454_v20, %v501_v6  ;;  %v3897_v13 = vsub.f32 %v455_v29, %v501_v6 }
 0x157   :  { %v3901_v15 = vsub.f32 %v456_v58, %v501_v6  ;;  %v3905_v17 = vsub.f32 %v457_v21, %v501_v6  ;;  %v3907_v18 = vsub.f32 %v458_v22, %v501_v6  ;;  %v3909_v19 = vsub.f32 %v459_v62, %v501_v6 }
 0x158   :  { %v3911_v23 = vsub.f32 %v460_v45, %v501_v6  ;;  %v3913_v26 = vsub.f32 %v461_v25, %v501_v6  ;;  %v3915_v36 = vsub.f32 %v462_v28, %v501_v6  ;;  %v3917_v37 = vsub.f32 %v463_v55, %v501_v6 }
 0x159   :  { %v3921_v40 = vsub.f32 %v432_v32, %v501_v6  ;;  %v3925_v46 = vsub.f32 %v5305_v43, %v501_v6  ;;  %v5306_v48 = vmax.f32 %v3647_v30, 0.0  ;;  %v3937_v5 = vsub.f32 %v5307_v4, %v501_v6 }
 0x15a   :  { %v3941_v32 = vsub.f32 %v5308_v27, %v501_v6  ;;  %v3947_v14 = vsub.f32 %v5309_v8, %v501_v6  ;;  %v3953_v29 = vsub.f32 %v5310_v33, %v501_v6  ;;  %v5311_v58 = vmax.f32 %v3680_v49, 0.0 }
 0x15b   :  { %v3929_v56 = vsub.f32 %v5306_v48, %v501_v6  ;;  %v534_v45 = vmul.f32 %v3921_v40, %v3921_v40  ;;  %v535_v59 = vmul.f32 %v3925_v46, %v3925_v46  ;;  %v537_v16 = vmul.f32 %v3937_v5, %v3937_v5 }
 0x15c   :  { %v538_v41 = vmul.f32 %v3941_v32, %v3941_v32  ;;  %v3959_v0 = vsub.f32 %v5311_v58, %v501_v6  ;;  %v539_v47 = vmul.f32 %v3947_v14, %v3947_v14  ;;  %v540_v22 = vmul.f32 %v3953_v29, %v3953_v29 }
 0x15d   :  { %v536_v31 = vmul.f32 %v3929_v56, %v3929_v56  ;;  %v566_v30 = vadd.f32 %v535_v59, %v534_v45  ;;  %v542_v28 = vmul.f32 %v3837_v11, %v3837_v11  ;;  %v543_v49 = vmul.f32 %v3841_v38, %v3841_v38 }
 0x15e   :  { %v541_v44 = vmul.f32 %v3959_v0, %v3959_v0  ;;  %v544_v24 = vmul.f32 %v3845_v52, %v3845_v52  ;;  %v545_v51 = vmul.f32 %v3849_v50, %v3849_v50  ;;  %v546_v34 = vmul.f32 %v3853_v39, %v3853_v39 }
 0x15f   :  { %v567_v20 = vadd.f32 %v566_v30, %v536_v31  ;;  %v547_v6 = vmul.f32 %v3857_v57, %v3857_v57  ;;  %v548_v48 = vmul.f32 %v3861_v61, %v3861_v61  ;;  %v549_v59 = vmul.f32 %v3865_v60, %v3865_v60 }
 0x160   :  { %v550_v27 = vmul.f32 %v3869_v63, %v3869_v63  ;;  %v551_v30 = vmul.f32 %v3873_v1, %v3873_v1  ;;  %v553_v33 = vmul.f32 %v3881_v3, %v3881_v3 }
 0x161   :  { %v568_v42 = vadd.f32 %v567_v20, %v537_v16  ;;  %v552_v16 = vmul.f32 %v3877_v2, %v3877_v2 }
 0x163   :  { %v569_v21 = vadd.f32 %v568_v42, %v538_v41  ;;  %v554_v42 = vmul.f32 %v3885_v7, %v3885_v7 }
 0x165   :  { %v570_v62 = vadd.f32 %v569_v21, %v539_v47  ;;  %v555_v47 = vmul.f32 %v3889_v9, %v3889_v9 }
 0x167   :  { %v571_v25 = vadd.f32 %v570_v62, %v540_v22  ;;  %v556_v22 = vmul.f32 %v3893_v12, %v3893_v12 }
 0x169   :  { %v572_v55 = vadd.f32 %v571_v25, %v541_v44  ;;  %v557_v44 = vmul.f32 %v3897_v13, %v3897_v13 }
 0x16b   :  { %v573_v53 = vadd.f32 %v572_v55, %v542_v28  ;;  %v558_v28 = vmul.f32 %v3901_v15, %v3901_v15 }
 0x16d   :  { %v574_v35 = vadd.f32 %v573_v53, %v543_v49  ;;  %v559_v49 = vmul.f32 %v3905_v17, %v3905_v17 }
 0x16f   :  { %v575_v54 = vadd.f32 %v574_v35, %v544_v24  ;;  %v560_v24 = vmul.f32 %v3907_v18, %v3907_v18 }
 0x171   :  { %v576_v10 = vadd.f32 %v575_v54, %v545_v51  ;;  %v561_v51 = vmul.f32 %v3909_v19, %v3909_v19 }
 0x173   :  { %v577_v43 = vadd.f32 %v576_v10, %v546_v34  ;;  %v562_v34 = vmul.f32 %v3911_v23, %v3911_v23 }
 0x175   :  { %v578_v45 = vadd.f32 %v577_v43, %v547_v6  ;;  %v563_v6 = vmul.f32 %v3913_v26, %v3913_v26 }
 0x177   :  { %v579_v4 = vadd.f32 %v578_v45, %v548_v48  ;;  %v564_v48 = vmul.f32 %v3915_v36, %v3915_v36 }
 0x179   :  { %v580_v31 = vadd.f32 %v579_v4, %v549_v59  ;;  %v565_v59 = vmul.f32 %v3917_v37, %v3917_v37 }
 0x17b   :  { %v581_v8 = vadd.f32 %v580_v31, %v550_v27 }
 0x17d   :  { %v582_v20 = vadd.f32 %v581_v8, %v551_v30 }
 0x17f   :  { %v583_v41 = vadd.f32 %v582_v20, %v552_v16 }
 0x181   :  { %v584_v58 = vadd.f32 %v583_v41, %v553_v33 }
 0x183   :  { %v585_v21 = vadd.f32 %v584_v58, %v554_v42  ;;  %v5288_v58 = vlaneseq }
 0x185   :  { %v586_v62 = vadd.f32 %v585_v21, %v555_v47  ;;  %v4016_v47 = vshrl.u32 %v5288_v58, 7  ;;  %v64_v21 = vld [vmem:[%s5312_s28] sm:$0x1] }
 0x187   :  { %v587_v25 = vadd.f32 %v586_v62, %v556_v22 }
 0x189   :  { %v588_v55 = vadd.f32 %v587_v25, %v557_v44  ;;  %v5289_v44 = vsub.s32 0, %v4016_v47 }
 0x18b   :  { %v589_v53 = vadd.f32 %v588_v55, %v558_v28 }
 0x18d   :  { %v590_v35 = vadd.f32 %v589_v53, %v559_v49 }
 0x18f   :  { %v591_v54 = vadd.f32 %v590_v35, %v560_v24  ;;  %v4037_v24 = vld [vmem:[%s5263_s4] ss:$0 sm:$0xff] }
 0x191   :  { %v592_v10 = vadd.f32 %v591_v54, %v561_v51 }
 0x193   :  { %v593_v43 = vadd.f32 %v592_v10, %v562_v34 }
 0x195   :  { %v594_v45 = vadd.f32 %v593_v43, %v563_v6 }
 0x197   :  { %v595_v4 = vadd.f32 %v594_v45, %v564_v48 }
 0x199   :  { %v596_v27 = vadd.f32 %v595_v4, %v565_v59 }
 0x19b   :  { %v597_v31 = vrot.slane %v596_v27, 4 }
 0x19d   :  { %v598_v30 = vadd.f32 %v597_v31, %v596_v27 }
 0x19f   :  { %v599_v8 = vrot.slane %v598_v30, 2 }
 0x1a1   :  { %v600_v16 = vadd.f32 %v599_v8, %v598_v30 }
 0x1a3   :  { %v601_v20 = vrot.slane %v600_v16, 1 }
 0x1a5   :  { %v602_v33 = vadd.f32 %v601_v20, %v600_v16 }
 0x1a7   :  { %v603_v41 = vmul.f32 0.00390625, %v602_v33 }
 0x1a9   :  { %v604_v42 = vadd.f32 1e-05, %v603_v41 }
 0x1ab   :  { %3243 = vrsqrt.f32 %v604_v42 }
 0x1b5   :  { %v3244_v22 = vpop.eup %3243 }
 0x1b6   :  { %v606_v62 = vmul.f32 %v3244_v22, %v64_v21 }
 0x1b8   :  { %v4024_v25 = vrot.slane %v606_v62, %v5289_v44 }
 0x1ba   :  { %v615_v28 = vmul.f32 %v4024_v25, %v3929_v56  ;;  %v616_v55 = vmul.f32 %v4024_v25, %v3937_v5  ;;  %v617_v49 = vmul.f32 %v4024_v25, %v3941_v32  ;;  %v618_v53 = vmul.f32 %v4024_v25, %v3947_v14 }
 0x1bb   :  { %v613_v35 = vmul.f32 %v4024_v25, %v3921_v40  ;;  %v614_v56 = vmul.f32 %v4024_v25, %v3925_v46  ;;  %v619_v40 = vmul.f32 %v4024_v25, %v3953_v29  ;;  %v620_v46 = vmul.f32 %v4024_v25, %v3959_v0 }
 0x1bc   :  { %v653_v51 = vadd.f32 %v4037_v24, %v615_v28  ;;  %v654_v5 = vadd.f32 %v4037_v24, %v616_v55  ;;  %v655_v14 = vadd.f32 %v4037_v24, %v617_v49  ;;  %v656_v34 = vadd.f32 %v4037_v24, %v618_v53 }
 0x1bd   :  { %v651_v32 = vadd.f32 %v4037_v24, %v613_v35  ;;  %v652_v54 = vadd.f32 %v4037_v24, %v614_v56  ;;  %v621_v43 = vmul.f32 %v4024_v25, %v3837_v11  ;;  %v622_v48 = vmul.f32 %v4024_v25, %v3841_v38 }
 0x1be   :  { %v684_v10 = vpack.c.bf16 %v654_v5, %v653_v51  ;;  %v685_v45 = vpack.c.bf16 %v656_v34, %v655_v14  ;;  %v657_v59 = vadd.f32 %v4037_v24, %v619_v40  ;;  %v658_v4 = vadd.f32 %v4037_v24, %v620_v46 }
 0x1bf   :  { %v683_v6 = vpack.c.bf16 %v652_v54, %v651_v32  ;;  %v659_v27 = vadd.f32 %v4037_v24, %v621_v43  ;;  %v660_v29 = vadd.f32 %v4037_v24, %v622_v48  ;;  %v623_v0 = vmul.f32 %v4024_v25, %v3845_v52 }
 0x1c0   :  { %v624_v11 = vmul.f32 %v4024_v25, %v3849_v50  ;;  %v686_v31 = vpack.c.bf16 %v658_v4, %v657_v59  ;;  %v625_v38 = vmul.f32 %v4024_v25, %v3853_v39  ;;  %v626_v30 = vmul.f32 %v4024_v25, %v3857_v57 }
 0x1c1   :  { %2952 = vmatprep.mubr.bf16.mxu1 %v683_v6  ;;  %v687_v8 = vpack.c.bf16 %v660_v29, %v659_v27  ;;  %v661_v16 = vadd.f32 %v4037_v24, %v623_v0  ;;  %v627_v50 = vmul.f32 %v4024_v25, %v3861_v61  ;;  %v628_v39 = vmul.f32 %v4024_v25, %v3865_v60  ;;  %v4130_v0 = vld [vmem:[%s5265_s6] ss:$0 sm:$0xff] }
 0x1c2   :  { %2953 = vmatmul.mubr.bf16.vlgmr.msra.gmra.mrb[0].mxu1 %v684_v10  ;;  %v662_v20 = vadd.f32 %v4037_v24, %v624_v11  ;;  %v663_v33 = vadd.f32 %v4037_v24, %v625_v38  ;;  %v664_v52 = vadd.f32 %v4037_v24, %v626_v30  ;;  %v629_v57 = vmul.f32 %v4024_v25, %v3869_v63 }
 0x1c3   :  { %2956 = vmatprep.mubr.bf16.mxu1 %v685_v45  ;;  %v630_v42 = vmul.f32 %v4024_v25, %v3873_v1  ;;  %v665_v22 = vadd.f32 %v4037_v24, %v627_v50  ;;  %v666_v62 = vadd.f32 %v4037_v24, %v628_v39  ;;  %v631_v60 = vmul.f32 %v4024_v25, %v3877_v2 }
 0x1c4   :  { %v688_v41 = vpack.c.bf16 %v662_v20, %v661_v16  ;;  %v689_v21 = vpack.c.bf16 %v664_v52, %v663_v33  ;;  %v667_v28 = vadd.f32 %v4037_v24, %v629_v57  ;;  %v632_v63 = vmul.f32 %v4024_v25, %v3881_v3 }
 0x1c5   :  { %v668_v61 = vadd.f32 %v4037_v24, %v630_v42  ;;  %v690_v55 = vpack.c.bf16 %v666_v62, %v665_v22  ;;  %v633_v1 = vmul.f32 %v4024_v25, %v3885_v7  ;;  %v634_v49 = vmul.f32 %v4024_v25, %v3889_v9 }
 0x1c6   :  { %v669_v35 = vadd.f32 %v4037_v24, %v631_v60  ;;  %v670_v56 = vadd.f32 %v4037_v24, %v632_v63  ;;  %v635_v3 = vmul.f32 %v4024_v25, %v3893_v12  ;;  %v636_v7 = vmul.f32 %v4024_v25, %v3897_v13 }
 0x1c7   :  { %v691_v53 = vpack.c.bf16 %v668_v61, %v667_v28  ;;  %v671_v51 = vadd.f32 %v4037_v24, %v633_v1  ;;  %v672_v2 = vadd.f32 %v4037_v24, %v634_v49  ;;  %v637_v9 = vmul.f32 %v4024_v25, %v3901_v15 }
 0x1c8   :  { %v692_v5 = vpack.c.bf16 %v670_v56, %v669_v35  ;;  %v638_v32 = vmul.f32 %v4024_v25, %v3905_v17  ;;  %v673_v14 = vadd.f32 %v4037_v24, %v635_v3  ;;  %v674_v34 = vadd.f32 %v4037_v24, %v636_v7 }
 0x1c9   :  { %v693_v54 = vpack.c.bf16 %v672_v2, %v671_v51  ;;  %v675_v10 = vadd.f32 %v4037_v24, %v637_v9  ;;  %v639_v13 = vmul.f32 %v4024_v25, %v3907_v18  ;;  %v640_v15 = vmul.f32 %v4024_v25, %v3909_v19 }
 0x1ca   :  { %2957 = vmatmul.mubr.bf16.gmra.mrb[4].mxu1 %v686_v31  ;;  %v676_v12 = vadd.f32 %v4037_v24, %v638_v32  ;;  %v694_v6 = vpack.c.bf16 %v674_v34, %v673_v14  ;;  %v642_v17 = vmul.f32 %v4024_v25, %v3913_v26  ;;  %v641_v40 = vmul.f32 %v4024_v25, %v3911_v23 }
 0x1cb   :  { %2960 = vmatprep.mubr.bf16.mxu1 %v687_v8  ;;  %v677_v43 = vadd.f32 %v4037_v24, %v639_v13  ;;  %v678_v48 = vadd.f32 %v4037_v24, %v640_v15  ;;  %v643_v19 = vmul.f32 %v4024_v25, %v3915_v36  ;;  %v644_v26 = vmul.f32 %v4024_v25, %v3917_v37 }
 0x1cc   :  { %v695_v46 = vpack.c.bf16 %v676_v12, %v675_v10  ;;  %v679_v45 = vadd.f32 %v4037_v24, %v641_v40  ;;  %v680_v18 = vadd.f32 %v4037_v24, %v642_v17 }
 0x1cd   :  { %v696_v59 = vpack.c.bf16 %v678_v48, %v677_v43  ;;  %v681_v23 = vadd.f32 %v4037_v24, %v643_v19  ;;  %v682_v27 = vadd.f32 %v4037_v24, %v644_v26 }
 0x1ce   :  { %v697_v4 = vpack.c.bf16 %v680_v18, %v679_v45 }
 0x1cf   :  { %v698_v29 = vpack.c.bf16 %v682_v27, %v681_v23 }
 0x1d2   :  { %2961 = vmatmul.mubr.bf16.gmra.mrb[8].mxu1 %v688_v41 }
 0x1d3   :  { %2964 = vmatprep.mubr.bf16.mxu1 %v689_v21 }
 0x1da   :  { %2965 = vmatmul.mubr.bf16.gmra.mrb[12].mxu1 %v690_v55 }
 0x1db   :  { %2968 = vmatprep.mubr.bf16.mxu1 %v691_v53 }
 0x1e2   :  { %2969 = vmatmul.mubr.bf16.gmra.mrb[16].mxu1 %v692_v5 }
 0x1e3   :  { %2972 = vmatprep.mubr.bf16.mxu1 %v693_v54 }
 0x1ea   :  { %2973 = vmatmul.mubr.bf16.gmra.mrb[20].mxu1 %v694_v6 }
 0x1eb   :  { %2976 = vmatprep.mubr.bf16.mxu1 %v695_v46 }
 0x1f2   :  { %2977 = vmatmul.mubr.bf16.gmra.mrb[24].mxu1 %v696_v59 }
 0x1f3   :  { %2980 = vmatprep.mubr.bf16.mxu1 %v697_v4 }
 0x1fa   :  { %2981 = vmatmul.mubr.bf16.gmra.mrb[28].mxu1 %v698_v29 }
 0x295   :  { %v2954_v11 = vpop.f32.mrb[0].mxu1 }
 0x296   :  { %v803_v36 = vpop.f32.mrb[1].mxu1  ;;  %v4136_v38 = vadd.f32 %v2954_v11, %v4130_v0 }
 0x297   :  { %v4133_v31 = vadd.f32 %v4130_v0, %v803_v36  ;;  %v2955_v37 = vpop.f32.mrb[2].mxu1 }
 0x298   :  { %v806_v25 = vpop.f32.mrb[3].mxu1  ;;  %v4143_v8 = vadd.f32 %v2955_v37, %v4130_v0  ;;  %v5295_v20 = vmax.f32 %v4136_v38, 0.0 }
 0x299   :  { %v4139_v30 = vadd.f32 %v4130_v0, %v806_v25  ;;  %v5297_v24 = vmax.f32 %v4133_v31, 0.0 }
 0x29a   :  { %v5294_v39 = vmax.f32 %v4143_v8, 0.0 }
 0x29b   :  { %v5296_v16 = vmax.f32 %v4139_v30, 0.0 }
 0x29d   :  { %v962_v33 = vadd.f32 %v5296_v16, %v5297_v24  ;;  %v2958_v52 = vpop.f32.mrb[4].mxu1 }
 0x29e   :  { %v819_v50 = vpop.f32.mrb[5].mxu1  ;;  %v4158_v22 = vadd.f32 %v2958_v52, %v4130_v0 }
 0x29f   :  { %v963_v41 = vadd.f32 %v962_v33, %v5295_v20  ;;  %v4155_v57 = vadd.f32 %v4130_v0, %v819_v50  ;;  %v2959_v42 = vpop.f32.mrb[6].mxu1 }
 0x2a0   :  { %v822_v21 = vpop.f32.mrb[7].mxu1  ;;  %v4169_v63 = vadd.f32 %v2959_v42, %v4130_v0  ;;  %v5291_v1 = vmax.f32 %v4158_v22, 0.0 }
 0x2a1   :  { %v5293_v62 = vmax.f32 %v4155_v57, 0.0  ;;  %v964_v28 = vadd.f32 %v963_v41, %v5294_v39  ;;  %v4164_v61 = vadd.f32 %v4130_v0, %v822_v21 }
 0x2a2   :  { %v5290_v56 = vmax.f32 %v4169_v63, 0.0 }
 0x2a3   :  { %v965_v60 = vadd.f32 %v964_v28, %v5293_v62  ;;  %v5292_v55 = vmax.f32 %v4164_v61, 0.0 }
 0x2a5   :  { %v966_v49 = vadd.f32 %v965_v60, %v5292_v55  ;;  %v2962_v53 = vpop.f32.mrb[8].mxu1 }
 0x2a6   :  { %v835_v35 = vpop.f32.mrb[9].mxu1  ;;  %v4182_v5 = vadd.f32 %v2962_v53, %v4130_v0 }
 0x2a7   :  { %v967_v51 = vadd.f32 %v966_v49, %v5291_v1  ;;  %v4179_v2 = vadd.f32 %v4130_v0, %v835_v35  ;;  %v2963_v3 = vpop.f32.mrb[10].mxu1 }
 0x2a8   :  { %v838_v7 = vpop.f32.mrb[11].mxu1  ;;  %v4193_v34 = vadd.f32 %v2963_v3, %v4130_v0  ;;  %v940_v12 = vmax.f32 %v4182_v5, 0.0 }
 0x2a9   :  { %v938_v9 = vmax.f32 %v4179_v2, 0.0  ;;  %v968_v32 = vadd.f32 %v967_v51, %v5290_v56  ;;  %v4188_v54 = vadd.f32 %v4130_v0, %v838_v7  ;;  %v3214_v56 = vld [vmem:[%s5268_s9 + $0x18] sm:$0xff]  }
 0x2aa   :  { %v941_v17 = vmax.f32 %v4193_v34, 0.0 }
 0x2ab   :  { %v969_v14 = vadd.f32 %v968_v32, %v938_v9  ;;  %v939_v10 = vmax.f32 %v4188_v54, 0.0 }
 0x2ad   :  { %v970_v13 = vadd.f32 %v969_v14, %v939_v10  ;;  %v2966_v15 = vpop.f32.mrb[12].mxu1 }
 0x2ae   :  { %v851_v6 = vpop.f32.mrb[13].mxu1  ;;  %v4206_v45 = vadd.f32 %v2966_v15, %v4130_v0 }
 0x2af   :  { %v971_v40 = vadd.f32 %v970_v13, %v940_v12  ;;  %v4203_v46 = vadd.f32 %v4130_v0, %v851_v6  ;;  %v2967_v43 = vpop.f32.mrb[14].mxu1 }
 0x2b0   :  { %v854_v48 = vpop.f32.mrb[15].mxu1  ;;  %v4217_v4 = vadd.f32 %v2967_v43, %v4130_v0  ;;  %v944_v27 = vmax.f32 %v4206_v45, 0.0 }
 0x2b1   :  { %v942_v18 = vmax.f32 %v4203_v46, 0.0  ;;  %v972_v19 = vadd.f32 %v971_v40, %v941_v17  ;;  %v4212_v26 = vadd.f32 %v4130_v0, %v854_v48 }
 0x2b2   :  { %v945_v37 = vmax.f32 %v4217_v4, 0.0 }
 0x2b3   :  { %v973_v59 = vadd.f32 %v972_v19, %v942_v18  ;;  %v943_v23 = vmax.f32 %v4212_v26, 0.0 }
 0x2b5   :  { %v974_v29 = vadd.f32 %v973_v59, %v943_v23  ;;  %v2970_v11 = vpop.f32.mrb[16].mxu1  ;;  %v3211_v59 = vld [vmem:[%s5268_s9] sm:$0xff]  }
 0x2b6   :  { %v867_v36 = vpop.f32.mrb[17].mxu1  ;;  %v4230_v41 = vadd.f32 %v2970_v11, %v4130_v0  ;;  %2984 = vmatprep.subr.bf16.mxu0 %v3211_v59 }
 0x2b7   :  { %v975_v25 = vadd.f32 %v974_v29, %v944_v27  ;;  %v4227_v33 = vadd.f32 %v4130_v0, %v867_v36  ;;  %v2971_v52 = vpop.f32.mrb[18].mxu1  ;;  %2985 = vmatpush3.bf16.msra.mxu0 %v3211_v59 }
 0x2b8   :  { %v870_v50 = vpop.f32.mrb[19].mxu1  ;;  %v4241_v49 = vadd.f32 %v2971_v52, %v4130_v0  ;;  %v948_v35 = vmax.f32 %v4230_v41, 0.0 }
 0x2b9   :  { %v946_v42 = vmax.f32 %v4227_v33, 0.0  ;;  %v976_v21 = vadd.f32 %v975_v25, %v945_v37  ;;  %v4236_v28 = vadd.f32 %v4130_v0, %v870_v50 }
 0x2ba   :  { %v949_v32 = vmax.f32 %v4241_v49, 0.0 }
 0x2bb   :  { %v977_v60 = vadd.f32 %v976_v21, %v946_v42  ;;  %v947_v53 = vmax.f32 %v4236_v28, 0.0  ;;  %v5313_v28 = vmax.f32 %v4133_v31, 0.0  ;;  %v5317_v31 = vmax.f32 %v4155_v57, 0.0 }
 0x2bd   :  { %v978_v51 = vadd.f32 %v977_v60, %v947_v53  ;;  %v2974_v3 = vpop.f32.mrb[20].mxu1  ;;  %v3212_v60 = vld [vmem:[%s5268_s9 + $0x8] sm:$0xff]  }
 0x2be   :  { %v883_v7 = vpop.f32.mrb[21].mxu1  ;;  %v4254_v40 = vadd.f32 %v2974_v3, %v4130_v0  ;;  %2986 = vmatprep.subr.bf16.mxu0 %v3212_v60 }
 0x2bf   :  { %v979_v14 = vadd.f32 %v978_v51, %v948_v35  ;;  %v4251_v13 = vadd.f32 %v4130_v0, %v883_v7  ;;  %v2975_v15 = vpop.f32.mrb[22].mxu1  ;;  %2987 = vmatpush3.bf16.msra.mxu0 %v3212_v60 }
 0x2c0   :  { %v886_v6 = vpop.f32.mrb[23].mxu1  ;;  %v4268_v11 = vadd.f32 %v2975_v15, %v4130_v0  ;;  %v952_v25 = vmax.f32 %v4254_v40, 0.0  ;;  %v5316_v40 = vmax.f32 %v4143_v8, 0.0  ;;  %v5319_v8 = vmax.f32 %v4158_v22, 0.0 }
 0x2c1   :  { %v950_v43 = vmax.f32 %v4251_v13, 0.0  ;;  %v980_v48 = vadd.f32 %v979_v14, %v949_v32  ;;  %v4260_v19 = vadd.f32 %v4130_v0, %v886_v6 }
 0x2c2   :  { %v953_v51 = vmax.f32 %v4268_v11, 0.0  ;;  %v5318_v11 = vmax.f32 %v4164_v61, 0.0 }
 0x2c3   :  { %v981_v29 = vadd.f32 %v980_v48, %v950_v43  ;;  %v951_v36 = vmax.f32 %v4260_v19, 0.0 }
 0x2c5   :  { %v982_v52 = vadd.f32 %v981_v29, %v951_v36  ;;  %v2978_v50 = vpop.f32.mrb[24].mxu1 }
 0x2c6   :  { %v899_v21 = vpop.f32.mrb[25].mxu1  ;;  %v4284_v6 = vadd.f32 %v2978_v50, %v4130_v0 }
 0x2c7   :  { %v983_v3 = vadd.f32 %v982_v52, %v952_v25  ;;  %v4281_v7 = vadd.f32 %v4130_v0, %v899_v21  ;;  %v2979_v14 = vpop.f32.mrb[26].mxu1  ;;  %v3213_v52 = vld [vmem:[%s5268_s9 + $0x10] sm:$0xff]  }
 0x2c8   :  { %v902_v15 = vpop.f32.mrb[27].mxu1  ;;  %v4298_v58 = vadd.f32 %v2979_v14, %v4130_v0  ;;  %2988 = vmatprep.subr.bf16.mxu0 %v3213_v52  ;;  %v956_v44 = vmax.f32 %v4284_v6, 0.0 }
 0x2c9   :  { %v954_v48 = vmax.f32 %v4281_v7, 0.0  ;;  %v984_v59 = vadd.f32 %v983_v3, %v953_v51  ;;  %v4290_v29 = vadd.f32 %v4130_v0, %v902_v15  ;;  %2989 = vmatpush3.bf16.msra.mxu0 %v3213_v52  ;;  %v3215_v52 = vld [vmem:[%s5268_s9 + $0x20] sm:$0xff]  }
 0x2ca   :  { %2990 = vmatprep.subr.bf16.mxu0 %v3214_v56 }
 0x2cb   :  { %v985_v21 = vadd.f32 %v984_v59, %v954_v48  ;;  %v955_v50 = vmax.f32 %v4290_v29, 0.0  ;;  %v957_v59 = vmax.f32 %v4298_v58, 0.0  ;;  %v5320_v29 = vmax.f32 %v4169_v63, 0.0 }
 0x2cd   :  { %v986_v3 = vadd.f32 %v985_v21, %v955_v50  ;;  %v2982_v15 = vpop.f32.mrb[28].mxu1  ;;  %2991 = vmatpush3.bf16.msra.mxu0 %v3214_v56 }
 0x2ce   :  { %v915_v60 = vpop.f32.mrb[29].mxu1  ;;  %v924_v6 = vadd.f32 %v2982_v15, %v4130_v0  ;;  %2992 = vmatprep.subr.bf16.mxu0 %v3215_v52  ;;  %v3216_v15 = vld [vmem:[%s5268_s9 + $0x28] sm:$0xff]  }
 0x2cf   :  { %v987_v1 = vadd.f32 %v986_v3, %v956_v44  ;;  %v916_v14 = vadd.f32 %v4130_v0, %v915_v60  ;;  %v2983_v55 = vpop.f32.mrb[30].mxu1 }
 0x2d0   :  { %v918_v62 = vpop.f32.mrb[31].mxu1  ;;  %v927_v58 = vadd.f32 %v2983_v55, %v4130_v0  ;;  %v960_v60 = vmax.f32 %v924_v6, 0.0 }
 0x2d1   :  { %v958_v39 = vmax.f32 %v916_v14, 0.0  ;;  %v988_v20 = vadd.f32 %v987_v1, %v957_v59  ;;  %v919_v21 = vadd.f32 %v4130_v0, %v918_v62  ;;  %2993 = vmatpush3.bf16.msra.mxu0 %v3215_v52 }
 0x2d2   :  { %v961_v1 = vmax.f32 %v927_v58, 0.0  ;;  %2994 = vmatprep.subr.bf16.mxu0 %v3216_v15 }
 0x2d3   :  { %v989_v16 = vadd.f32 %v988_v20, %v958_v39  ;;  %v959_v3 = vmax.f32 %v919_v21, 0.0  ;;  %v3217_v20 = vld [vmem:[%s5268_s9 + $0x30] sm:$0xff]  }
 0x2d5   :  { %v990_v24 = vadd.f32 %v989_v16, %v959_v3  ;;  %2995 = vmatpush3.bf16.msra.mxu0 %v3216_v15  ;;  %v3218_v16 = vld [vmem:[%s5268_s9 + $0x38] sm:$0xff]  }
 0x2d6   :  { %2996 = vmatprep.subr.bf16.mxu0 %v3217_v20 }
 0x2d7   :  { %v991_v14 = vadd.f32 %v990_v24, %v960_v60 }
 0x2d9   :  { %v992_v62 = vadd.f32 %v991_v14, %v961_v1  ;;  %2997 = vmatpush3.bf16.msra.mxu0 %v3217_v20 }
 0x2da   :  { %2998 = vmatprep.subr.bf16.mxu0 %v3218_v16 }
 0x2db   :  { %v993_v56 = vrot.slane %v992_v62, 4 }
 0x2dd   :  { %v994_v0 = vadd.f32 %v993_v56, %v992_v62  ;;  %2999 = vmatpush3.bf16.msra.mxu0 %v3218_v16 }
 0x2df   :  { %v995_v55 = vrot.slane %v994_v0, 2 }
 0x2e1   :  { %v996_v6 = vadd.f32 %v995_v55, %v994_v0 }
 0x2e3   :  { %v997_v24 = vrot.slane %v996_v6, 1 }
 0x2e5   :  { %v998_v21 = vadd.f32 %v997_v24, %v996_v6 }
 0x2e7   :  { %v999_v52 = vmul.f32 0.00390625, %v998_v21 }
 0x2e9   :  { %v4326_v58 = vsub.f32 %v938_v9, %v999_v52  ;;  %v4330_v15 = vsub.f32 %v939_v10, %v999_v52  ;;  %v4334_v14 = vsub.f32 %v940_v12, %v999_v52  ;;  %v4338_v62 = vsub.f32 %v941_v17, %v999_v52 }
 0x2ea   :  { %v4342_v20 = vsub.f32 %v942_v18, %v999_v52  ;;  %v4346_v2 = vsub.f32 %v943_v23, %v999_v52  ;;  %v4350_v9 = vsub.f32 %v944_v27, %v999_v52  ;;  %v4354_v5 = vsub.f32 %v945_v37, %v999_v52 }
 0x2eb   :  { %v4358_v54 = vsub.f32 %v946_v42, %v999_v52  ;;  %v4362_v34 = vsub.f32 %v947_v53, %v999_v52  ;;  %v4366_v10 = vsub.f32 %v948_v35, %v999_v52  ;;  %v4370_v12 = vsub.f32 %v949_v32, %v999_v52 }
 0x2ec   :  { %v4374_v17 = vsub.f32 %v950_v43, %v999_v52  ;;  %v4378_v46 = vsub.f32 %v951_v36, %v999_v52  ;;  %v4382_v45 = vsub.f32 %v952_v25, %v999_v52  ;;  %v4386_v18 = vsub.f32 %v953_v51, %v999_v52 }
 0x2ed   :  { %v4390_v26 = vsub.f32 %v954_v48, %v999_v52  ;;  %v4394_v4 = vsub.f32 %v955_v50, %v999_v52  ;;  %v4396_v23 = vsub.f32 %v956_v44, %v999_v52  ;;  %v4398_v27 = vsub.f32 %v957_v59, %v999_v52 }
 0x2ee   :  { %v4400_v37 = vsub.f32 %v958_v39, %v999_v52  ;;  %v4402_v33 = vsub.f32 %v959_v3, %v999_v52  ;;  %v4404_v41 = vsub.f32 %v960_v60, %v999_v52  ;;  %v4406_v42 = vsub.f32 %v961_v1, %v999_v52 }
 0x2ef   :  { %v4410_v49 = vsub.f32 %v5313_v28, %v999_v52  ;;  %v5314_v53 = vmax.f32 %v4139_v30, 0.0  ;;  %v5315_v44 = vmax.f32 %v4136_v38, 0.0  ;;  %v4426_v43 = vsub.f32 %v5316_v40, %v999_v52 }
 0x2f0   :  { %v4430_v19 = vsub.f32 %v5317_v31, %v999_v52  ;;  %v4436_v36 = vsub.f32 %v5318_v11, %v999_v52  ;;  %v4442_v7 = vsub.f32 %v5319_v8, %v999_v52  ;;  %v4448_v50 = vsub.f32 %v5320_v29, %v999_v52  ;;  %v3219_v29 = vld [vmem:[%s5270_s11] sm:$0xff]  }
 0x2f1   :  { %v4414_v35 = vsub.f32 %v5314_v53, %v999_v52  ;;  %v4418_v32 = vsub.f32 %v5315_v44, %v999_v52  ;;  %v1032_v39 = vmul.f32 %v4410_v49, %v4410_v49  ;;  %v1035_v25 = vmul.f32 %v4426_v43, %v4426_v43  ;;  %3032 = vmatprep.subr.bf16.mxu1 %v3219_v29 }
 0x2f2   :  { %v1036_v57 = vmul.f32 %v4430_v19, %v4430_v19  ;;  %v1037_v61 = vmul.f32 %v4436_v36, %v4436_v36  ;;  %v1038_v3 = vmul.f32 %v4442_v7, %v4442_v7  ;;  %v1039_v22 = vmul.f32 %v4448_v50, %v4448_v50  ;;  %3033 = vmatpush3.bf16.msra.mxu1 %v3219_v29 }
 0x2f3   :  { %v1033_v13 = vmul.f32 %v4414_v35, %v4414_v35  ;;  %v1034_v30 = vmul.f32 %v4418_v32, %v4418_v32  ;;  %v1040_v56 = vmul.f32 %v4326_v58, %v4326_v58  ;;  %v1041_v63 = vmul.f32 %v4330_v15, %v4330_v15 }
 0x2f4   :  { %v1042_v55 = vmul.f32 %v4334_v14, %v4334_v14  ;;  %v1043_v24 = vmul.f32 %v4338_v62, %v4338_v62  ;;  %v1044_v52 = vmul.f32 %v4342_v20, %v4342_v20  ;;  %v1045_v53 = vmul.f32 %v4346_v2, %v4346_v2 }
 0x2f5   :  { %v1064_v38 = vadd.f32 %v1033_v13, %v1032_v39  ;;  %v1046_v39 = vmul.f32 %v4350_v9, %v4350_v9  ;;  %v1047_v40 = vmul.f32 %v4354_v5, %v4354_v5  ;;  %v1049_v11 = vmul.f32 %v4362_v34, %v4362_v34 }
 0x2f7   :  { %v1065_v51 = vadd.f32 %v1064_v38, %v1034_v30  ;;  %v1048_v30 = vmul.f32 %v4358_v54, %v4358_v54 }
 0x2f9   :  { %v1066_v48 = vadd.f32 %v1065_v51, %v1035_v25  ;;  %v1050_v51 = vmul.f32 %v4366_v10, %v4366_v10 }
 0x2fb   :  { %v1067_v59 = vadd.f32 %v1066_v48, %v1036_v57  ;;  %v1051_v57 = vmul.f32 %v4370_v12, %v4370_v12 }
 0x2fd   :  { %v1068_v60 = vadd.f32 %v1067_v59, %v1037_v61  ;;  %v3220_v61 = vld [vmem:[%s5270_s11 + $0x8] sm:$0xff]   ;;  %v1052_v59 = vmul.f32 %v4374_v17, %v4374_v17 }
 0x2fe   :  { %3034 = vmatprep.subr.bf16.mxu1 %v3220_v61 }
 0x2ff   :  { %v1069_v1 = vadd.f32 %v1068_v60, %v1038_v3  ;;  %v1053_v60 = vmul.f32 %v4378_v46, %v4378_v46  ;;  %3035 = vmatpush3.bf16.msra.mxu1 %v3220_v61 }
 0x301   :  { %v1070_v0 = vadd.f32 %v1069_v1, %v1039_v22  ;;  %v3221_v1 = vld [vmem:[%s5270_s11 + $0x10] sm:$0xff]  }
 0x302   :  { %3036 = vmatprep.subr.bf16.mxu1 %v3221_v1 }
 0x303   :  { %v1071_v16 = vadd.f32 %v1070_v0, %v1040_v56  ;;  %v1054_v56 = vmul.f32 %v4382_v45, %v4382_v45  ;;  %3037 = vmatpush3.bf16.msra.mxu1 %v3221_v1 }
 0x305   :  { %v1072_v6 = vadd.f32 %v1071_v16, %v1041_v63  ;;  %v1055_v63 = vmul.f32 %v4386_v18, %v4386_v18 }
 0x307   :  { %v1073_v21 = vadd.f32 %v1072_v6, %v1042_v55  ;;  %v3222_v55 = vld [vmem:[%s5270_s11 + $0x18] sm:$0xff]   ;;  %v1056_v6 = vmul.f32 %v4390_v26, %v4390_v26 }
 0x308   :  { %3038 = vmatprep.subr.bf16.mxu1 %v3222_v55 }
 0x309   :  { %v1074_v28 = vadd.f32 %v1073_v21, %v1043_v24  ;;  %v1057_v21 = vmul.f32 %v4394_v4, %v4394_v4  ;;  %3039 = vmatpush3.bf16.msra.mxu1 %v3222_v55 }
 0x30b   :  { %v1075_v44 = vadd.f32 %v1074_v28, %v1044_v52  ;;  %v3223_v28 = vld [vmem:[%s5270_s11 + $0x20] sm:$0xff]  }
 0x30c   :  { %3040 = vmatprep.subr.bf16.mxu1 %v3223_v28 }
 0x30d   :  { %v1076_v13 = vadd.f32 %v1075_v44, %v1045_v53  ;;  %v1058_v53 = vmul.f32 %v4396_v23, %v4396_v23  ;;  %3041 = vmatpush3.bf16.msra.mxu1 %v3223_v28  ;;  %v4537_v28 = vld [vmem:[%s5267_s8] ss:$0 sm:$0xff] }
 0x30f   :  { %v1077_v31 = vadd.f32 %v1076_v13, %v1046_v39  ;;  %v1059_v39 = vmul.f32 %v4398_v27, %v4398_v27 }
 0x311   :  { %v1078_v38 = vadd.f32 %v1077_v31, %v1047_v40  ;;  %v1060_v40 = vmul.f32 %v4400_v37, %v4400_v37 }
 0x313   :  { %v1079_v25 = vadd.f32 %v1078_v38, %v1048_v30  ;;  %v1061_v30 = vmul.f32 %v4402_v33, %v4402_v33 }
 0x315   :  { %v1080_v8 = vadd.f32 %v1079_v25, %v1049_v11  ;;  %v1062_v11 = vmul.f32 %v4404_v41, %v4404_v41 }
 0x317   :  { %v1081_v48 = vadd.f32 %v1080_v8, %v1050_v51  ;;  %v1063_v51 = vmul.f32 %v4406_v42, %v4406_v42 }
 0x319   :  { %v1082_v3 = vadd.f32 %v1081_v48, %v1051_v57 }
 0x31b   :  { %v1083_v22 = vadd.f32 %v1082_v3, %v1052_v59 }
 0x31d   :  { %v1084_v0 = vadd.f32 %v1083_v22, %v1053_v60 }
 0x31f   :  { %v1085_v16 = vadd.f32 %v1084_v0, %v1054_v56  ;;  %v67_v56 = vld [vmem:[%s5266_s7] sm:$0x1] }
 0x321   :  { %v1086_v24 = vadd.f32 %v1085_v16, %v1055_v63  ;;  %v5321_v16 = vsub.s32 0, %v4016_v47 }
 0x323   :  { %v1087_v52 = vadd.f32 %v1086_v24, %v1056_v6 }
 0x325   :  { %v1088_v44 = vadd.f32 %v1087_v52, %v1057_v21 }
 0x327   :  { %v1089_v13 = vadd.f32 %v1088_v44, %v1058_v53 }
 0x329   :  { %v1090_v31 = vadd.f32 %v1089_v13, %v1059_v39 }
 0x32b   :  { %v1091_v38 = vadd.f32 %v1090_v31, %v1060_v40 }
 0x32d   :  { %v1092_v25 = vadd.f32 %v1091_v38, %v1061_v30 }
 0x32f   :  { %v1093_v8 = vadd.f32 %v1092_v25, %v1062_v11 }
 0x331   :  { %v1094_v57 = vadd.f32 %v1093_v8, %v1063_v51 }
 0x333   :  { %v1095_v48 = vrot.slane %v1094_v57, 4 }
 0x335   :  { %v1096_v29 = vadd.f32 %v1095_v48, %v1094_v57 }
 0x337   :  { %v1097_v61 = vrot.slane %v1096_v29, 2 }
 0x339   :  { %v1098_v59 = vadd.f32 %v1097_v61, %v1096_v29 }
 0x33b   :  { %v1099_v3 = vrot.slane %v1098_v59, 1 }
 0x33d   :  { %v1100_v60 = vadd.f32 %v1099_v3, %v1098_v59 }
 0x33f   :  { %v1101_v22 = vmul.f32 0.00390625, %v1100_v60 }
 0x341   :  { %v1102_v1 = vadd.f32 1e-05, %v1101_v22 }
 0x343   :  { %3245 = vrsqrt.f32 %v1102_v1 }
 0x34d   :  { %v3246_v0 = vpop.eup %3245 }
 0x34e   :  { %v1104_v63 = vmul.f32 %v3246_v0, %v67_v56 }
 0x350   :  { %v4524_v55 = vrot.slane %v1104_v63, %v5321_v16 }
 0x352   :  { %v1111_v6 = vmul.f32 %v4524_v55, %v4410_v49  ;;  %v1112_v24 = vmul.f32 %v4524_v55, %v4414_v35  ;;  %v1113_v21 = vmul.f32 %v4524_v55, %v4418_v32  ;;  %v1114_v52 = vmul.f32 %v4524_v55, %v4426_v43 }
 0x353   :  { %v1115_v47 = vmul.f32 %v4524_v55, %v4430_v19  ;;  %v1116_v49 = vmul.f32 %v4524_v55, %v4436_v36  ;;  %v1117_v19 = vmul.f32 %v4524_v55, %v4442_v7  ;;  %v1118_v36 = vmul.f32 %v4524_v55, %v4448_v50 }
 0x354   :  { %v1151_v53 = vadd.f32 %v4537_v28, %v1113_v21  ;;  %v1152_v35 = vadd.f32 %v4537_v28, %v1114_v52  ;;  %v1149_v32 = vadd.f32 %v4537_v28, %v1111_v6  ;;  %v1150_v44 = vadd.f32 %v4537_v28, %v1112_v24 }
 0x355   :  { %v1153_v43 = vadd.f32 %v4537_v28, %v1115_v47  ;;  %v1154_v39 = vadd.f32 %v4537_v28, %v1116_v49  ;;  %v1119_v31 = vmul.f32 %v4524_v55, %v4326_v58  ;;  %v1120_v30 = vmul.f32 %v4524_v55, %v4330_v15 }
 0x356   :  { %v1182_v13 = vpack.c.bf16 %v1152_v35, %v1151_v53  ;;  %v1181_v40 = vpack.c.bf16 %v1150_v44, %v1149_v32  ;;  %v1155_v11 = vadd.f32 %v4537_v28, %v1117_v19  ;;  %v1156_v25 = vadd.f32 %v4537_v28, %v1118_v36 }
 0x357   :  { %v1183_v38 = vpack.c.bf16 %v1154_v39, %v1153_v43  ;;  %v1157_v51 = vadd.f32 %v4537_v28, %v1119_v31  ;;  %v1158_v7 = vadd.f32 %v4537_v28, %v1120_v30  ;;  %v1121_v50 = vmul.f32 %v4524_v55, %v4334_v14 }
 0x358   :  { %3000 = vmatprep.mubr.bf16.mxu0 %v1181_v40  ;;  %v1122_v58 = vmul.f32 %v4524_v55, %v4338_v62  ;;  %v1184_v8 = vpack.c.bf16 %v1156_v25, %v1155_v11  ;;  %v1123_v15 = vmul.f32 %v4524_v55, %v4342_v20  ;;  %v1124_v57 = vmul.f32 %v4524_v55, %v4346_v2  ;;  %v3224_v25 = vld [vmem:[%s5270_s11 + $0x28] sm:$0xff]  }
 0x359   :  { %3001 = vmatmul.mubr.bf16.vlgmr.msra.gmra.mrb[32].mxu0 %v1182_v13  ;;  %v1185_v48 = vpack.c.bf16 %v1158_v7, %v1157_v51  ;;  %v1159_v29 = vadd.f32 %v4537_v28, %v1121_v50  ;;  %v1125_v62 = vmul.f32 %v4524_v55, %v4350_v9  ;;  %v1126_v20 = vmul.f32 %v4524_v55, %v4354_v5  ;;  %v3229_v51 = vld [vmem:[%s5272_s13 + $0x10] sm:$0xff]   ;;  %v3230_v7 = vld [vmem:[%s5272_s13 + $0x18] sm:$0xff]   ;;  %v3231_v50 = vld [vmem:[%s5272_s13 + $0x20] sm:$0xff]  }
 0x35a   :  { %3004 = vmatprep.mubr.bf16.mxu0 %v1183_v38  ;;  %v1160_v61 = vadd.f32 %v4537_v28, %v1122_v58  ;;  %v1161_v59 = vadd.f32 %v4537_v28, %v1123_v15  ;;  %v1162_v14 = vadd.f32 %v4537_v28, %v1124_v57  ;;  %v1127_v2 = vmul.f32 %v4524_v55, %v4358_v54  ;;  %v3232_v58 = vld [vmem:[%s5272_s13 + $0x28] sm:$0xff]   ;;  %v4660_v15 = vld [vmem:[%s5269_s10] ss:$0 sm:$0xff] }
 0x35b   :  { %v1128_v60 = vmul.f32 %v4524_v55, %v4362_v34  ;;  %v1163_v1 = vadd.f32 %v4537_v28, %v1125_v62  ;;  %v1164_v56 = vadd.f32 %v4537_v28, %v1126_v20  ;;  %v1129_v5 = vmul.f32 %v4524_v55, %v4366_v10  ;;  %3042 = vmatprep.subr.bf16.mxu1 %v3224_v25 }
 0x35c   :  { %v1186_v3 = vpack.c.bf16 %v1160_v61, %v1159_v29  ;;  %v1187_v22 = vpack.c.bf16 %v1162_v14, %v1161_v59  ;;  %v1165_v0 = vadd.f32 %v4537_v28, %v1127_v2  ;;  %v1130_v54 = vmul.f32 %v4524_v55, %v4370_v12  ;;  %3043 = vmatpush3.bf16.msra.mxu1 %v3224_v25 }
 0x35d   :  { %v1166_v9 = vadd.f32 %v4537_v28, %v1128_v60  ;;  %v1188_v63 = vpack.c.bf16 %v1164_v56, %v1163_v1  ;;  %v1131_v34 = vmul.f32 %v4524_v55, %v4374_v17  ;;  %v1132_v16 = vmul.f32 %v4524_v55, %v4378_v46 }
 0x35e   :  { %v1167_v24 = vadd.f32 %v4537_v28, %v1129_v5  ;;  %v1168_v21 = vadd.f32 %v4537_v28, %v1130_v54  ;;  %v1133_v12 = vmul.f32 %v4524_v55, %v4382_v45  ;;  %v1134_v17 = vmul.f32 %v4524_v55, %v4386_v18 }
 0x35f   :  { %v1189_v6 = vpack.c.bf16 %v1166_v9, %v1165_v0  ;;  %v1169_v52 = vadd.f32 %v4537_v28, %v1131_v34  ;;  %v1170_v10 = vadd.f32 %v4537_v28, %v1132_v16  ;;  %v1135_v46 = vmul.f32 %v4524_v55, %v4390_v26 }
 0x360   :  { %v1190_v47 = vpack.c.bf16 %v1168_v21, %v1167_v24  ;;  %v1136_v49 = vmul.f32 %v4524_v55, %v4394_v4  ;;  %v1171_v35 = vadd.f32 %v4537_v28, %v1133_v12  ;;  %v1172_v32 = vadd.f32 %v4537_v28, %v1134_v17 }
 0x361   :  { %3005 = vmatmul.mubr.bf16.gmra.mrb[36].mxu0 %v1184_v8  ;;  %v1191_v53 = vpack.c.bf16 %v1170_v10, %v1169_v52  ;;  %v1173_v44 = vadd.f32 %v4537_v28, %v1135_v46  ;;  %v1137_v18 = vmul.f32 %v4524_v55, %v4396_v23  ;;  %v1138_v26 = vmul.f32 %v4524_v55, %v4398_v27  ;;  %v3233_v8 = vld [vmem:[%s5272_s13 + $0x30] sm:$0xff]  }
 0x362   :  { %3008 = vmatprep.mubr.bf16.mxu0 %v1185_v48  ;;  %v1174_v45 = vadd.f32 %v4537_v28, %v1136_v49  ;;  %v1192_v43 = vpack.c.bf16 %v1172_v32, %v1171_v35  ;;  %v1140_v4 = vmul.f32 %v4524_v55, %v4402_v33  ;;  %v1139_v39 = vmul.f32 %v4524_v55, %v4400_v37  ;;  %v1433_v35 = vld [vmem:[%s5276_s17 + $0x10] sm:$0xff] }
 0x363   :  { %v1175_v40 = vadd.f32 %v4537_v28, %v1137_v18  ;;  %v1176_v19 = vadd.f32 %v4537_v28, %v1138_v26  ;;  %v1141_v27 = vmul.f32 %v4524_v55, %v4404_v41  ;;  %v1142_v33 = vmul.f32 %v4524_v55, %v4406_v42  ;;  %v3225_v41 = vld [vmem:[%s5270_s11 + $0x30] sm:$0xff]   ;;  %v3226_v42 = vld [vmem:[%s5270_s11 + $0x38] sm:$0xff]   ;;  %v3227_v55 = vld [vmem:[%s5272_s13] sm:$0xff]  }
 0x364   :  { %v1193_v13 = vpack.c.bf16 %v1174_v45, %v1173_v44  ;;  %v1177_v36 = vadd.f32 %v4537_v28, %v1139_v39  ;;  %v1178_v23 = vadd.f32 %v4537_v28, %v1140_v4  ;;  %3044 = vmatprep.subr.bf16.mxu1 %v3225_v41  ;;  %3080 = vmatprep.subr.bf16.mxu0 %v3227_v55  ;;  %v1431_v18 = vld [vmem:[%s5276_s17] sm:$0xff] }
 0x365   :  { %v1194_v31 = vpack.c.bf16 %v1176_v19, %v1175_v40  ;;  %v1179_v37 = vadd.f32 %v4537_v28, %v1141_v27  ;;  %v1180_v38 = vadd.f32 %v4537_v28, %v1142_v33  ;;  %3045 = vmatpush3.bf16.msra.mxu1 %v3225_v41  ;;  %v3228_v28 = vld [vmem:[%s5272_s13 + $0x8] sm:$0xff]   ;;  %3081 = vmatpush3.bf16.msra.mxu0 %v3227_v55 }
 0x366   :  { %v1195_v30 = vpack.c.bf16 %v1178_v23, %v1177_v36  ;;  %3046 = vmatprep.subr.bf16.mxu1 %v3226_v42  ;;  %3082 = vmatprep.subr.bf16.mxu0 %v3228_v28  ;;  %v1432_v23 = vld [vmem:[%s5276_s17 + $0x8] sm:$0xff] }
 0x367   :  { %v1196_v11 = vpack.c.bf16 %v1180_v38, %v1179_v37 }
 0x369   :  { %3009 = vmatmul.mubr.bf16.gmra.mrb[40].mxu0 %v1186_v3  ;;  %3047 = vmatpush3.bf16.msra.mxu1 %v3226_v42 }
 0x36a   :  { %3012 = vmatprep.mubr.bf16.mxu0 %v1187_v22  ;;  %3083 = vmatpush3.bf16.msra.mxu0 %v3228_v28 }
 0x36b   :  { %3084 = vmatprep.subr.bf16.mxu0 %v3229_v51 }
 0x36e   :  { %3085 = vmatpush3.bf16.msra.mxu0 %v3229_v51 }
 0x36f   :  { %3086 = vmatprep.subr.bf16.mxu0 %v3230_v7 }
 0x371   :  { %3013 = vmatmul.mubr.bf16.gmra.mrb[44].mxu0 %v1188_v63 }
 0x372   :  { %3016 = vmatprep.mubr.bf16.mxu0 %v1189_v6  ;;  %3087 = vmatpush3.bf16.msra.mxu0 %v3230_v7 }
 0x373   :  { %3088 = vmatprep.subr.bf16.mxu0 %v3231_v50 }
 0x376   :  { %3089 = vmatpush3.bf16.msra.mxu0 %v3231_v50 }
 0x377   :  { %3090 = vmatprep.subr.bf16.mxu0 %v3232_v58 }
 0x379   :  { %3017 = vmatmul.mubr.bf16.gmra.mrb[48].mxu0 %v1190_v47  ;;  %v5322_v47 = vlaneseq }
 0x37a   :  { %3020 = vmatprep.mubr.bf16.mxu0 %v1191_v53  ;;  %3091 = vmatpush3.bf16.msra.mxu0 %v3232_v58 }
 0x37b   :  { %3092 = vmatprep.subr.bf16.mxu0 %v3233_v8  ;;  %v4722_v46 = vand.u32 127, %v5322_v47 }
 0x37d   :  { %vm1430_vm0 = vcmp.ge.s32.totalorder %v4722_v46, 64  ;;  %v3237_v46 = vld [vmem:[%s5274_s15 + $0x10] sm:$0xff]  }
 0x37e   :  { %3093 = vmatpush3.bf16.msra.mxu0 %v3233_v8 }
 0x381   :  { %3021 = vmatmul.mubr.bf16.gmra.mrb[52].mxu0 %v1192_v43  ;;  %v1434_v43 = vld [vmem:[%s5276_s17 + $0x18] sm:$0xff] }
 0x382   :  { %3024 = vmatprep.mubr.bf16.mxu0 %v1193_v13 }
 0x389   :  { %3025 = vmatmul.mubr.bf16.gmra.mrb[56].mxu0 %v1194_v31 }
 0x38a   :  { %3028 = vmatprep.mubr.bf16.mxu0 %v1195_v30 }
 0x391   :  { %3029 = vmatmul.mubr.bf16.gmra.mrb[60].mxu0 %v1196_v11 }
 0x42c   :  { %v3002_v57 = vpop.f32.mrb[32].mxu0 }
 0x42d   :  { %v4663_v48 = vadd.f32 %v3002_v57, %v4660_v15  ;;  %v1301_v29 = vpop.f32.mrb[33].mxu0 }
 0x42e   :  { %v4666_v61 = vadd.f32 %v4660_v15, %v1301_v29  ;;  %v3003_v59 = vpop.f32.mrb[34].mxu0 }
 0x42f   :  { %v1465_v14 = vmul.f32 0.5, %v4663_v48  ;;  %2622 = vst [vmem:[%s5278_s19 + $0x10] sm:$0xff] %v4663_v48  ;;  %v4674_v62 = vadd.f32 %v3003_v59, %v4660_v15  ;;  %v1304_v20 = vpop.f32.mrb[35].mxu0  ;;  %v1437_v59 = vld [vmem:[%s5276_s17 + $0x30] sm:$0xff] }
 0x430   :  { %v1463_v3 = vmul.f32 0.5, %v4666_v61  ;;  %2620 = vst [vmem:[%s5278_s19] sm:$0xff] %v4666_v61  ;;  %v4682_v2 = vadd.f32 %v4660_v15, %v1304_v20 }
 0x431   :  { %v1499_v60 = vmul.f32 1.442695, %v1465_v14  ;;  %v1466_v22 = vmul.f32 0.5, %v4674_v62  ;;  %2623 = vst [vmem:[%s5278_s19 + $0x18] sm:$0xff] %v4674_v62 }
 0x432   :  { %v1495_v1 = vmul.f32 1.442695, %v1463_v3  ;;  %v1464_v56 = vmul.f32 0.5, %v4682_v2  ;;  %2621 = vst [vmem:[%s5278_s19 + $0x8] sm:$0xff] %v4682_v2  ;;  %v1435_v3 = vld [vmem:[%s5276_s17 + $0x20] sm:$0xff] }
 0x433   :  { %3247 = vpow2.f32 %v1499_v60  ;;  %v1501_v0 = vmul.f32 1.442695, %v1466_v22 }
 0x434   :  { %3249 = vpow2.f32 %v1495_v1  ;;  %v1497_v9 = vmul.f32 1.442695, %v1464_v56  ;;  %v3006_v5 = vpop.f32.mrb[36].mxu0 }
 0x435   :  { %3251 = vpow2.f32 %v1501_v0  ;;  %v4695_v54 = vadd.f32 %v3006_v5, %v4660_v15  ;;  %v1317_v63 = vpop.f32.mrb[37].mxu0 }
 0x436   :  { %3253 = vpow2.f32 %v1497_v9  ;;  %v4698_v34 = vadd.f32 %v4660_v15, %v1317_v63  ;;  %v3007_v16 = vpop.f32.mrb[38].mxu0  ;;  %v1436_v9 = vld [vmem:[%s5276_s17 + $0x28] sm:$0xff] }
 0x437   :  { %v1469_v6 = vmul.f32 0.5, %v4695_v54  ;;  %2626 = vst [vmem:[%s5278_s19 + $0x30] sm:$0xff] %v4695_v54  ;;  %v4706_v24 = vadd.f32 %v3007_v16, %v4660_v15  ;;  %v1320_v21 = vpop.f32.mrb[39].mxu0 }
 0x438   :  { %v1467_v52 = vmul.f32 0.5, %v4698_v34  ;;  %2624 = vst [vmem:[%s5278_s19 + $0x20] sm:$0xff] %v4698_v34  ;;  %v4714_v10 = vadd.f32 %v4660_v15, %v1320_v21 }
 0x439   :  { %v1507_v12 = vmul.f32 1.442695, %v1469_v6  ;;  %v1470_v17 = vmul.f32 0.5, %v4706_v24  ;;  %2627 = vst [vmem:[%s5278_s19 + $0x38] sm:$0xff] %v4706_v24 }
 0x43a   :  { %v1503_v49 = vmul.f32 1.442695, %v1467_v52  ;;  %v1468_v53 = vmul.f32 0.5, %v4714_v10  ;;  %2625 = vst [vmem:[%s5278_s19 + $0x28] sm:$0xff] %v4714_v10 }
 0x43b   :  { %3255 = vpow2.f32 %v1507_v12  ;;  %v1509_v32 = vmul.f32 1.442695, %v1470_v17 }
 0x43c   :  { %3257 = vpow2.f32 %v1503_v49  ;;  %v1505_v44 = vmul.f32 1.442695, %v1468_v53  ;;  %v3010_v45 = vpop.f32.mrb[40].mxu0 }
 0x43d   :  { %v3248_v26 = vpop.eup %3247  ;;  %3259 = vpow2.f32 %v1509_v32  ;;  %v4739_v4 = vadd.f32 %v3010_v45, %v4660_v15  ;;  %v1333_v39 = vpop.f32.mrb[41].mxu0 }
 0x43e   :  { %v3250_v13 = vpop.eup %3249  ;;  %v1561_v40 = vmul.f32 %v3248_v26, %v1433_v35  ;;  %3261 = vpow2.f32 %v1505_v44  ;;  %v4743_v19 = vadd.f32 %v4660_v15, %v1333_v39  ;;  %v3011_v36 = vpop.f32.mrb[42].mxu0 }
 0x43f   :  { %v3252_v27 = vpop.eup %3251  ;;  %v1473_v33 = vmul.f32 0.5, %v4739_v4  ;;  %2630 = vst [vmem:[%s5278_s19 + $0x50] sm:$0xff] %v4739_v4  ;;  %v4754_v31 = vadd.f32 %v3011_v36, %v4660_v15  ;;  %v1336_v30 = vpop.f32.mrb[43].mxu0  ;;  %v1559_v37 = vmul.f32 %v3250_v13, %v1431_v18 }
 0x440   :  { %v3254_v38 = vpop.eup %3253  ;;  %v1562_v11 = vmul.f32 %v3252_v27, %v1434_v43  ;;  %v1471_v25 = vmul.f32 0.5, %v4743_v19  ;;  %2628 = vst [vmem:[%s5278_s19 + $0x40] sm:$0xff] %v4743_v19  ;;  %v4762_v41 = vadd.f32 %v4660_v15, %v1336_v30  ;;  %v1593_v42 = vsel %vm1430_vm0, %v1561_v40, %v4663_v48  ;;  %v1441_v40 = vld [vmem:[%s5276_s17 + $0x50] sm:$0xff] }
 0x441   :  { %v1515_v55 = vmul.f32 1.442695, %v1473_v33  ;;  %v1474_v28 = vmul.f32 0.5, %v4754_v31  ;;  %2631 = vst [vmem:[%s5278_s19 + $0x58] sm:$0xff] %v4754_v31  ;;  %v1560_v51 = vmul.f32 %v3254_v38, %v1432_v23  ;;  %v1591_v8 = vsel %vm1430_vm0, %v1559_v37, %v4666_v61 }
 0x442   :  { %v1594_v7 = vsel %vm1430_vm0, %v1562_v11, %v4674_v62  ;;  %v1511_v50 = vmul.f32 1.442695, %v1471_v25  ;;  %v1472_v58 = vmul.f32 0.5, %v4762_v41  ;;  %2629 = vst [vmem:[%s5278_s19 + $0x48] sm:$0xff] %v4762_v41  ;;  %v1440_v25 = vld [vmem:[%s5276_s17 + $0x48] sm:$0xff] }
 0x443   :  { %v1624_v57 = vpack.c.bf16 %v1594_v7, %v1593_v42  ;;  %3263 = vpow2.f32 %v1515_v55  ;;  %v1517_v48 = vmul.f32 1.442695, %v1474_v28  ;;  %v1592_v29 = vsel %vm1430_vm0, %v1560_v51, %v4682_v2  ;;  %v1438_v2 = vld [vmem:[%s5276_s17 + $0x38] sm:$0xff] }
 0x444   :  { %3265 = vpow2.f32 %v1511_v50  ;;  %v1513_v14 = vmul.f32 1.442695, %v1472_v58  ;;  %v3014_v62 = vpop.f32.mrb[44].mxu0  ;;  %v1623_v20 = vpack.c.bf16 %v1592_v29, %v1591_v8 }
 0x445   :  { %v3256_v61 = vpop.eup %3255  ;;  %3267 = vpow2.f32 %v1517_v48  ;;  %v4793_v60 = vadd.f32 %v3014_v62, %v4660_v15  ;;  %v1349_v22 = vpop.f32.mrb[45].mxu0 }
 0x446   :  { %v3258_v1 = vpop.eup %3257  ;;  %3269 = vpow2.f32 %v1513_v14  ;;  %v4799_v56 = vadd.f32 %v4660_v15, %v1349_v22  ;;  %v3015_v0 = vpop.f32.mrb[46].mxu0  ;;  %3048 = vmatprep.mubr.bf16.mxu1 %v1623_v20  ;;  %v1565_v5 = vmul.f32 %v3256_v61, %v1437_v59 }
 0x447   :  { %v3260_v63 = vpop.eup %3259  ;;  %v1477_v16 = vmul.f32 0.5, %v4793_v60  ;;  %2634 = vst [vmem:[%s5278_s19 + $0x70] sm:$0xff] %v4793_v60  ;;  %v4810_v6 = vadd.f32 %v3015_v0, %v4660_v15  ;;  %v1352_v21 = vpop.f32.mrb[47].mxu0  ;;  %3049 = vmatmul.mubr.bf16.vlgmr.msra.gmra.mrb[32].mxu1 %v1624_v57  ;;  %v1563_v52 = vmul.f32 %v3258_v1, %v1435_v3  ;;  %v1445_v0 = vld [vmem:[%s5276_s17 + $0x70] sm:$0xff] }
 0x448   :  { %v3262_v12 = vpop.eup %3261  ;;  %v1475_v17 = vmul.f32 0.5, %v4799_v56  ;;  %2632 = vst [vmem:[%s5278_s19 + $0x60] sm:$0xff] %v4799_v56  ;;  %v4818_v47 = vadd.f32 %v4660_v15, %v1352_v21  ;;  %v1566_v49 = vmul.f32 %v3260_v63, %v1438_v2  ;;  %v1597_v44 = vsel %vm1430_vm0, %v1565_v5, %v4695_v54 }
 0x449   :  { %v1523_v53 = vmul.f32 1.442695, %v1477_v16  ;;  %v1478_v35 = vmul.f32 0.5, %v4810_v6  ;;  %2635 = vst [vmem:[%s5278_s19 + $0x78] sm:$0xff] %v4810_v6  ;;  %v1564_v32 = vmul.f32 %v3262_v12, %v1436_v9  ;;  %v1595_v26 = vsel %vm1430_vm0, %v1563_v52, %v4698_v34  ;;  %v1439_v34 = vld [vmem:[%s5276_s17 + $0x40] sm:$0xff] }
 0x44a   :  { %v1519_v45 = vmul.f32 1.442695, %v1475_v17  ;;  %v1476_v18 = vmul.f32 0.5, %v4818_v47  ;;  %2633 = vst [vmem:[%s5278_s19 + $0x68] sm:$0xff] %v4818_v47  ;;  %v1598_v43 = vsel %vm1430_vm0, %v1566_v49, %v4706_v24  ;;  %v1444_v49 = vld [vmem:[%s5276_s17 + $0x68] sm:$0xff] }
 0x44b   :  { %3271 = vpow2.f32 %v1523_v53  ;;  %v1525_v39 = vmul.f32 1.442695, %v1478_v35  ;;  %v1596_v54 = vsel %vm1430_vm0, %v1564_v32, %v4714_v10  ;;  %v1626_v13 = vpack.c.bf16 %v1598_v43, %v1597_v44  ;;  %v1442_v10 = vld [vmem:[%s5276_s17 + $0x58] sm:$0xff] }
 0x44c   :  { %3273 = vpow2.f32 %v1519_v45  ;;  %v1521_v36 = vmul.f32 1.442695, %v1476_v18  ;;  %v3018_v23 = vpop.f32.mrb[48].mxu0  ;;  %v1625_v27 = vpack.c.bf16 %v1596_v54, %v1595_v26 }
 0x44d   :  { %v3264_v24 = vpop.eup %3263  ;;  %3275 = vpow2.f32 %v1525_v39  ;;  %v4849_v33 = vadd.f32 %v3018_v23, %v4660_v15  ;;  %v1365_v30 = vpop.f32.mrb[49].mxu0 }
 0x44e   :  { %v3266_v37 = vpop.eup %3265  ;;  %3277 = vpow2.f32 %v1521_v36  ;;  %v4855_v38 = vadd.f32 %v4660_v15, %v1365_v30  ;;  %v3019_v11 = vpop.f32.mrb[50].mxu0  ;;  %3052 = vmatprep.mubr.bf16.mxu1 %v1625_v27  ;;  %v1569_v42 = vmul.f32 %v3264_v24, %v1441_v40 }
 0x44f   :  { %v3268_v55 = vpop.eup %3267  ;;  %v1481_v28 = vmul.f32 0.5, %v4849_v33  ;;  %2638 = vst [vmem:[%s5278_s19 + $0x90] sm:$0xff] %v4849_v33  ;;  %v4866_v51 = vadd.f32 %v3019_v11, %v4660_v15  ;;  %v1368_v7 = vpop.f32.mrb[51].mxu0  ;;  %3053 = vmatmul.mubr.bf16.gmra.mrb[36].mxu1 %v1626_v13  ;;  %v1567_v50 = vmul.f32 %v3266_v37, %v1439_v34  ;;  %v1449_v11 = vld [vmem:[%s5276_s17 + $0x90] sm:$0xff] }
 0x450   :  { %v3270_v58 = vpop.eup %3269  ;;  %v1479_v8 = vmul.f32 0.5, %v4855_v38  ;;  %2636 = vst [vmem:[%s5278_s19 + $0x80] sm:$0xff] %v4855_v38  ;;  %v4874_v57 = vadd.f32 %v4660_v15, %v1368_v7  ;;  %v1570_v48 = vmul.f32 %v3268_v55, %v1442_v10  ;;  %v1601_v62 = vsel %vm1430_vm0, %v1569_v42, %v4739_v4 }
 0x451   :  { %v1531_v29 = vmul.f32 1.442695, %v1481_v28  ;;  %v1482_v59 = vmul.f32 0.5, %v4866_v51  ;;  %2639 = vst [vmem:[%s5278_s19 + $0x98] sm:$0xff] %v4866_v51  ;;  %v1568_v14 = vmul.f32 %v3270_v58, %v1440_v25  ;;  %v1599_v61 = vsel %vm1430_vm0, %v1567_v50, %v4743_v19  ;;  %v1443_v19 = vld [vmem:[%s5276_s17 + $0x60] sm:$0xff] }
 0x452   :  { %v1527_v20 = vmul.f32 1.442695, %v1479_v8  ;;  %v1480_v3 = vmul.f32 0.5, %v4874_v57  ;;  %2637 = vst [vmem:[%s5278_s19 + $0x88] sm:$0xff] %v4874_v57  ;;  %v1602_v22 = vsel %vm1430_vm0, %v1570_v48, %v4754_v31  ;;  %v1448_v48 = vld [vmem:[%s5276_s17 + $0x88] sm:$0xff] }
 0x453   :  { %3279 = vpow2.f32 %v1531_v29  ;;  %v1533_v2 = vmul.f32 1.442695, %v1482_v59  ;;  %v1600_v4 = vsel %vm1430_vm0, %v1568_v14, %v4762_v41  ;;  %v1628_v1 = vpack.c.bf16 %v1602_v22, %v1601_v62  ;;  %v1446_v41 = vld [vmem:[%s5276_s17 + $0x78] sm:$0xff] }
 0x454   :  { %3281 = vpow2.f32 %v1527_v20  ;;  %v1529_v9 = vmul.f32 1.442695, %v1480_v3  ;;  %v3022_v5 = vpop.f32.mrb[52].mxu0  ;;  %v1627_v63 = vpack.c.bf16 %v1600_v4, %v1599_v61 }
 0x455   :  { %v3272_v31 = vpop.eup %3271  ;;  %3283 = vpow2.f32 %v1533_v2  ;;  %v4905_v16 = vadd.f32 %v3022_v5, %v4660_v15  ;;  %v1381_v21 = vpop.f32.mrb[53].mxu0 }
 0x456   :  { %v3274_v52 = vpop.eup %3273  ;;  %3285 = vpow2.f32 %v1529_v9  ;;  %v4911_v12 = vadd.f32 %v4660_v15, %v1381_v21  ;;  %v3023_v17 = vpop.f32.mrb[54].mxu0  ;;  %3056 = vmatprep.mubr.bf16.mxu1 %v1627_v63  ;;  %v1573_v53 = vmul.f32 %v3272_v31, %v1445_v0 }
 0x457   :  { %v3276_v35 = vpop.eup %3275  ;;  %v1485_v32 = vmul.f32 0.5, %v4905_v16  ;;  %2642 = vst [vmem:[%s5278_s19 + $0xb0] sm:$0xff] %v4905_v16  ;;  %v4922_v44 = vadd.f32 %v3023_v17, %v4660_v15  ;;  %v1384_v45 = vpop.f32.mrb[55].mxu0  ;;  %3057 = vmatmul.mubr.bf16.gmra.mrb[40].mxu1 %v1628_v1  ;;  %v1571_v18 = vmul.f32 %v3274_v52, %v1443_v19  ;;  %v1453_v17 = vld [vmem:[%s5276_s17 + $0xb0] sm:$0xff] }
 0x458   :  { %v3278_v26 = vpop.eup %3277  ;;  %v1483_v43 = vmul.f32 0.5, %v4911_v12  ;;  %2640 = vst [vmem:[%s5278_s19 + $0xa0] sm:$0xff] %v4911_v12  ;;  %v4930_v39 = vadd.f32 %v4660_v15, %v1384_v45  ;;  %v1574_v54 = vmul.f32 %v3276_v35, %v1446_v41  ;;  %v1605_v23 = vsel %vm1430_vm0, %v1573_v53, %v4793_v60 }
 0x459   :  { %v1539_v13 = vmul.f32 1.442695, %v1485_v32  ;;  %v1486_v40 = vmul.f32 0.5, %v4922_v44  ;;  %2643 = vst [vmem:[%s5278_s19 + $0xb8] sm:$0xff] %v4922_v44  ;;  %v1572_v36 = vmul.f32 %v3278_v26, %v1444_v49  ;;  %v1603_v24 = vsel %vm1430_vm0, %v1571_v18, %v4799_v56  ;;  %v1447_v56 = vld [vmem:[%s5276_s17 + $0x80] sm:$0xff] }
 0x45a   :  { %v1535_v27 = vmul.f32 1.442695, %v1483_v43  ;;  %v1484_v34 = vmul.f32 0.5, %v4930_v39  ;;  %2641 = vst [vmem:[%s5278_s19 + $0xa8] sm:$0xff] %v4930_v39  ;;  %v1606_v30 = vsel %vm1430_vm0, %v1574_v54, %v4810_v6  ;;  %v1452_v54 = vld [vmem:[%s5276_s17 + $0xa8] sm:$0xff] }
 0x45b   :  { %3287 = vpow2.f32 %v1539_v13  ;;  %v1541_v10 = vmul.f32 1.442695, %v1486_v40  ;;  %v1604_v60 = vsel %vm1430_vm0, %v1572_v36, %v4818_v47  ;;  %v1630_v37 = vpack.c.bf16 %v1606_v30, %v1605_v23  ;;  %v1450_v47 = vld [vmem:[%s5276_s17 + $0x98] sm:$0xff] }
 0x45c   :  { %3289 = vpow2.f32 %v1535_v27  ;;  %v1537_v25 = vmul.f32 1.442695, %v1484_v34  ;;  %v3026_v42 = vpop.f32.mrb[56].mxu0  ;;  %v1629_v55 = vpack.c.bf16 %v1604_v60, %v1603_v24 }
 0x45d   :  { %v3280_v6 = vpop.eup %3279  ;;  %3291 = vpow2.f32 %v1541_v10  ;;  %v4961_v28 = vadd.f32 %v3026_v42, %v4660_v15  ;;  %v1397_v7 = vpop.f32.mrb[57].mxu0 }
 0x45e   :  { %v3282_v50 = vpop.eup %3281  ;;  %3293 = vpow2.f32 %v1537_v25  ;;  %v4967_v58 = vadd.f32 %v4660_v15, %v1397_v7  ;;  %v3027_v8 = vpop.f32.mrb[58].mxu0  ;;  %3060 = vmatprep.mubr.bf16.mxu1 %v1629_v55  ;;  %v1577_v29 = vmul.f32 %v3280_v6, %v1449_v11 }
 0x45f   :  { %v3284_v59 = vpop.eup %3283  ;;  %v1489_v14 = vmul.f32 0.5, %v4961_v28  ;;  %2646 = vst [vmem:[%s5278_s19 + $0xd0] sm:$0xff] %v4961_v28  ;;  %v4978_v62 = vadd.f32 %v3027_v8, %v4660_v15  ;;  %v1400_v20 = vpop.f32.mrb[59].mxu0  ;;  %3061 = vmatmul.mubr.bf16.gmra.mrb[44].mxu1 %v1630_v37  ;;  %v1575_v3 = vmul.f32 %v3282_v50, %v1447_v56  ;;  %v1457_v50 = vld [vmem:[%s5276_s17 + $0xd0] sm:$0xff] }
 0x460   :  { %v3286_v61 = vpop.eup %3285  ;;  %v1487_v22 = vmul.f32 0.5, %v4967_v58  ;;  %2644 = vst [vmem:[%s5278_s19 + $0xc0] sm:$0xff] %v4967_v58  ;;  %v4986_v2 = vadd.f32 %v4660_v15, %v1400_v20  ;;  %v1578_v4 = vmul.f32 %v3284_v59, %v1450_v47  ;;  %v1609_v5 = vsel %vm1430_vm0, %v1577_v29, %v4849_v33 }
 0x461   :  { %v1547_v1 = vmul.f32 1.442695, %v1489_v14  ;;  %v1490_v0 = vmul.f32 0.5, %v4978_v62  ;;  %2647 = vst [vmem:[%s5278_s19 + $0xd8] sm:$0xff] %v4978_v62  ;;  %v1576_v9 = vmul.f32 %v3286_v61, %v1448_v48  ;;  %v1607_v31 = vsel %vm1430_vm0, %v1575_v3, %v4855_v38  ;;  %v1451_v38 = vld [vmem:[%s5276_s17 + $0xa0] sm:$0xff] }
 0x462   :  { %v1543_v63 = vmul.f32 1.442695, %v1487_v22  ;;  %v1488_v19 = vmul.f32 0.5, %v4986_v2  ;;  %2645 = vst [vmem:[%s5278_s19 + $0xc8] sm:$0xff] %v4986_v2  ;;  %v1610_v21 = vsel %vm1430_vm0, %v1578_v4, %v4866_v51 }
 0x463   :  { %3295 = vpow2.f32 %v1547_v1  ;;  %v1549_v41 = vmul.f32 1.442695, %v1490_v0  ;;  %v1608_v33 = vsel %vm1430_vm0, %v1576_v9, %v4874_v57  ;;  %v1632_v52 = vpack.c.bf16 %v1610_v21, %v1609_v5  ;;  %v1454_v57 = vld [vmem:[%s5276_s17 + $0xb8] sm:$0xff] }
 0x464   :  { %3297 = vpow2.f32 %v1543_v63  ;;  %v1545_v49 = vmul.f32 1.442695, %v1488_v19  ;;  %v3030_v53 = vpop.f32.mrb[60].mxu0  ;;  %v1631_v35 = vpack.c.bf16 %v1608_v33, %v1607_v31  ;;  %v1461_v19 = vld [vmem:[%s5276_s17 + $0xf0] sm:$0xff] }
 0x465   :  { %v3288_v51 = vpop.eup %3287  ;;  %3299 = vpow2.f32 %v1549_v41  ;;  %v5017_v32 = vadd.f32 %v3030_v53, %v4660_v15  ;;  %v1413_v45 = vpop.f32.mrb[61].mxu0 }
 0x466   :  { %v3290_v18 = vpop.eup %3289  ;;  %3301 = vpow2.f32 %v1545_v49  ;;  %v5023_v26 = vadd.f32 %v4660_v15, %v1413_v45  ;;  %v3031_v43 = vpop.f32.mrb[62].mxu0  ;;  %3064 = vmatprep.mubr.bf16.mxu1 %v1631_v35  ;;  %v1581_v13 = vmul.f32 %v3288_v51, %v1453_v17 }
 0x467   :  { %v3292_v40 = vpop.eup %3291  ;;  %v1493_v36 = vmul.f32 0.5, %v5017_v32  ;;  %2650 = vst [vmem:[%s5278_s19 + $0xf0] sm:$0xff] %v5017_v32  ;;  %v5034_v23 = vadd.f32 %v3031_v43, %v4660_v15  ;;  %v1416_v27 = vpop.f32.mrb[63].mxu0  ;;  %3065 = vmatmul.mubr.bf16.gmra.mrb[48].mxu1 %v1632_v52  ;;  %v1579_v34 = vmul.f32 %v3290_v18, %v1451_v38  ;;  %v3234_v43 = vld [vmem:[%s5272_s13 + $0x38] sm:$0xff]  }
 0x468   :  { %v3294_v24 = vpop.eup %3293  ;;  %v1491_v30 = vmul.f32 0.5, %v5023_v26  ;;  %2648 = vst [vmem:[%s5278_s19 + $0xe0] sm:$0xff] %v5023_v26  ;;  %v1417_v10 = vadd.f32 %v4660_v15, %v1416_v27  ;;  %v1582_v60 = vmul.f32 %v3292_v40, %v1454_v57  ;;  %v1613_v42 = vsel %vm1430_vm0, %v1581_v13, %v4905_v16  ;;  %3094 = vmatprep.subr.bf16.mxu0 %v3234_v43  ;;  %v3239_v13 = vld [vmem:[%s5274_s15 + $0x20] sm:$0xff]   ;;  %v3240_v40 = vld [vmem:[%s5274_s15 + $0x28] sm:$0xff]  }
 0x469   :  { %v1555_v37 = vmul.f32 1.442695, %v1493_v36  ;;  %v1494_v11 = vmul.f32 0.5, %v5034_v23  ;;  %2651 = vst [vmem:[%s5278_s19 + $0xf8] sm:$0xff] %v5034_v23  ;;  %v1580_v25 = vmul.f32 %v3294_v24, %v1452_v54  ;;  %v1611_v15 = vsel %vm1430_vm0, %v1579_v34, %v4911_v12  ;;  %v1455_v12 = vld [vmem:[%s5276_s17 + $0xc0] sm:$0xff]  ;;  %3095 = vmatpush3.bf16.msra.mxu0 %v3234_v43  ;;  %v3238_v54 = vld [vmem:[%s5274_s15 + $0x18] sm:$0xff]  }
 0x46a   :  { %v1551_v55 = vmul.f32 1.442695, %v1491_v30  ;;  %v1492_v56 = vmul.f32 0.5, %v1417_v10  ;;  %2649 = vst [vmem:[%s5278_s19 + $0xe8] sm:$0xff] %v1417_v10  ;;  %v1614_v6 = vsel %vm1430_vm0, %v1582_v60, %v4922_v44  ;;  %v1458_v44 = vld [vmem:[%s5276_s17 + $0xd8] sm:$0xff]  ;;  %v3241_v36 = vld [vmem:[%s5274_s15 + $0x30] sm:$0xff]  }
 0x46b   :  { %3303 = vpow2.f32 %v1555_v37  ;;  %v1557_v7 = vmul.f32 1.442695, %v1494_v11  ;;  %v1612_v16 = vsel %vm1430_vm0, %v1580_v25, %v4930_v39  ;;  %v1634_v47 = vpack.c.bf16 %v1614_v6, %v1613_v42  ;;  %v1456_v39 = vld [vmem:[%s5276_s17 + $0xc8] sm:$0xff] }
 0x46c   :  { %3305 = vpow2.f32 %v1551_v55  ;;  %v1553_v8 = vmul.f32 1.442695, %v1492_v56  ;;  %v1633_v48 = vpack.c.bf16 %v1612_v16, %v1611_v15 }
 0x46d   :  { %v3296_v29 = vpop.eup %3295  ;;  %3307 = vpow2.f32 %v1557_v7 }
 0x46e   :  { %v3298_v59 = vpop.eup %3297  ;;  %3309 = vpow2.f32 %v1553_v8  ;;  %3068 = vmatprep.mubr.bf16.mxu1 %v1633_v48  ;;  %v1585_v14 = vmul.f32 %v3296_v29, %v1457_v50 }
 0x46f   :  { %v3300_v20 = vpop.eup %3299  ;;  %3069 = vmatmul.mubr.bf16.gmra.mrb[52].mxu1 %v1634_v47  ;;  %v1583_v3 = vmul.f32 %v3298_v59, %v1455_v12 }
 0x470   :  { %v3302_v61 = vpop.eup %3301  ;;  %v1586_v22 = vmul.f32 %v3300_v20, %v1458_v44  ;;  %v1617_v1 = vsel %vm1430_vm0, %v1585_v14, %v4961_v28  ;;  %v1459_v28 = vld [vmem:[%s5276_s17 + $0xe0] sm:$0xff] }
 0x471   :  { %v1584_v4 = vmul.f32 %v3302_v61, %v1456_v39  ;;  %v1615_v9 = vsel %vm1430_vm0, %v1583_v3, %v4967_v58 }
 0x472   :  { %v1618_v0 = vsel %vm1430_vm0, %v1586_v22, %v4978_v62  ;;  %v1462_v62 = vld [vmem:[%s5276_s17 + $0xf8] sm:$0xff] }
 0x473   :  { %v1616_v5 = vsel %vm1430_vm0, %v1584_v4, %v4986_v2  ;;  %v1636_v63 = vpack.c.bf16 %v1618_v0, %v1617_v1  ;;  %v1460_v2 = vld [vmem:[%s5276_s17 + $0xe8] sm:$0xff] }
 0x474   :  { %v1635_v31 = vpack.c.bf16 %v1616_v5, %v1615_v9 }
 0x475   :  { %v3304_v21 = vpop.eup %3303 }
 0x476   :  { %v3306_v58 = vpop.eup %3305  ;;  %3072 = vmatprep.mubr.bf16.mxu1 %v1635_v31  ;;  %v1589_v41 = vmul.f32 %v3304_v21, %v1461_v19 }
 0x477   :  { %v3308_v33 = vpop.eup %3307  ;;  %3073 = vmatmul.mubr.bf16.gmra.mrb[56].mxu1 %v1636_v63  ;;  %v1587_v52 = vmul.f32 %v3306_v58, %v1459_v28 }
 0x478   :  { %v3310_v17 = vpop.eup %3309  ;;  %v1590_v49 = vmul.f32 %v3308_v33, %v1462_v62  ;;  %v1621_v35 = vsel %vm1430_vm0, %v1589_v41, %v5017_v32  ;;  %v3235_v32 = vld [vmem:[%s5274_s15] sm:$0xff]  }
 0x479   :  { %v1588_v53 = vmul.f32 %v3310_v17, %v1460_v2  ;;  %v1619_v51 = vsel %vm1430_vm0, %v1587_v52, %v5023_v26  ;;  %v3236_v26 = vld [vmem:[%s5274_s15 + $0x8] sm:$0xff]   ;;  %3128 = vmatprep.subr.bf16.mxu1 %v3235_v32 }
 0x47a   :  { %v1622_v38 = vsel %vm1430_vm0, %v1590_v49, %v5034_v23  ;;  %3129 = vmatpush3.bf16.msra.mxu1 %v3235_v32  ;;  %v5136_v23 = vld [vmem:[%s5271_s12] ss:$0 sm:$0xff] }
 0x47b   :  { %v1620_v45 = vsel %vm1430_vm0, %v1588_v53, %v1417_v10  ;;  %v1638_v57 = vpack.c.bf16 %v1622_v38, %v1621_v35  ;;  %3130 = vmatprep.subr.bf16.mxu1 %v3236_v26 }
 0x47c   :  { %v1637_v18 = vpack.c.bf16 %v1620_v45, %v1619_v51 }
 0x47e   :  { %3076 = vmatprep.mubr.bf16.mxu1 %v1637_v18  ;;  %3131 = vmatpush3.bf16.msra.mxu1 %v3236_v26 }
 0x47f   :  { %3077 = vmatmul.mubr.bf16.gmra.mrb[60].mxu1 %v1638_v57  ;;  %3132 = vmatprep.subr.bf16.mxu1 %v3237_v46 }
 0x482   :  { %3133 = vmatpush3.bf16.msra.mxu1 %v3237_v46 }
 0x483   :  { %3134 = vmatprep.subr.bf16.mxu1 %v3238_v54 }
 0x486   :  { %3135 = vmatpush3.bf16.msra.mxu1 %v3238_v54 }
 0x487   :  { %3136 = vmatprep.subr.bf16.mxu1 %v3239_v13 }
 0x48a   :  { %3137 = vmatpush3.bf16.msra.mxu1 %v3239_v13 }
 0x48b   :  { %3138 = vmatprep.subr.bf16.mxu1 %v3240_v40 }
 0x48e   :  { %3139 = vmatpush3.bf16.msra.mxu1 %v3240_v40 }
 0x48f   :  { %3140 = vmatprep.subr.bf16.mxu1 %v3241_v36 }
 0x492   :  { %3141 = vmatpush3.bf16.msra.mxu1 %v3241_v36 }
 0x51a   :  { %v3050_v27 = vpop.f32.mrb[32].mxu1 }
 0x51b   :  { %v1752_v34 = vadd.f32 %v3050_v27, %v5136_v23  ;;  %v1743_v24 = vpop.f32.mrb[33].mxu1 }
 0x51c   :  { %v1744_v30 = vadd.f32 %v5136_v23, %v1743_v24  ;;  %v3051_v10 = vpop.f32.mrb[34].mxu1 }
 0x51d   :  { %v1755_v60 = vadd.f32 %v3051_v10, %v5136_v23  ;;  %v1746_v37 = vpop.f32.mrb[35].mxu1  ;;  %v1872_v25 = vmax.f32 %v1752_v34, 0.0 }
 0x51e   :  { %v1747_v11 = vadd.f32 %v5136_v23, %v1746_v37  ;;  %v1870_v55 = vmax.f32 %v1744_v30, 0.0 }
 0x51f   :  { %v1873_v42 = vmax.f32 %v1755_v60, 0.0 }
 0x520   :  { %v1871_v56 = vmax.f32 %v1747_v11, 0.0 }
 0x521   :  { %v1903_v15 = vpack.c.bf16 %v1873_v42, %v1872_v25 }
 0x522   :  { %v1902_v6 = vpack.c.bf16 %v1871_v56, %v1870_v55  ;;  %v3054_v7 = vpop.f32.mrb[36].mxu1 }
 0x523   :  { %v1768_v16 = vadd.f32 %v3054_v7, %v5136_v23  ;;  %v1759_v47 = vpop.f32.mrb[37].mxu1 }
 0x524   :  { %v1760_v50 = vadd.f32 %v5136_v23, %v1759_v47  ;;  %v3055_v8 = vpop.f32.mrb[38].mxu1  ;;  %3096 = vmatprep.mubr.bf16.mxu0 %v1902_v6 }
 0x525   :  { %v1771_v48 = vadd.f32 %v3055_v8, %v5136_v23  ;;  %v1762_v12 = vpop.f32.mrb[39].mxu1  ;;  %3097 = vmatmul.mubr.bf16.vlgmr.msra.gmra.mrb[64].mxu0 %v1903_v15  ;;  %v1876_v44 = vmax.f32 %v1768_v16, 0.0 }
 0x526   :  { %v1763_v29 = vadd.f32 %v5136_v23, %v1762_v12  ;;  %v1874_v39 = vmax.f32 %v1760_v50, 0.0 }
 0x527   :  { %v1877_v59 = vmax.f32 %v1771_v48, 0.0 }
 0x528   :  { %v1875_v14 = vmax.f32 %v1763_v29, 0.0 }
 0x529   :  { %v1905_v20 = vpack.c.bf16 %v1877_v59, %v1876_v44 }
 0x52a   :  { %v1904_v3 = vpack.c.bf16 %v1875_v14, %v1874_v39  ;;  %v3058_v61 = vpop.f32.mrb[40].mxu1 }
 0x52b   :  { %v1784_v22 = vadd.f32 %v3058_v61, %v5136_v23  ;;  %v1775_v4 = vpop.f32.mrb[41].mxu1 }
 0x52c   :  { %v1776_v1 = vadd.f32 %v5136_v23, %v1775_v4  ;;  %v3059_v0 = vpop.f32.mrb[42].mxu1  ;;  %3100 = vmatprep.mubr.bf16.mxu0 %v1904_v3 }
 0x52d   :  { %v1787_v9 = vadd.f32 %v3059_v0, %v5136_v23  ;;  %v1778_v5 = vpop.f32.mrb[43].mxu1  ;;  %3101 = vmatmul.mubr.bf16.gmra.mrb[68].mxu0 %v1905_v20  ;;  %v1880_v19 = vmax.f32 %v1784_v22, 0.0 }
 0x52e   :  { %v1779_v63 = vadd.f32 %v5136_v23, %v1778_v5  ;;  %v1878_v28 = vmax.f32 %v1776_v1, 0.0 }
 0x52f   :  { %v1881_v31 = vmax.f32 %v1787_v9, 0.0 }
 0x530   :  { %v1879_v21 = vmax.f32 %v1779_v63, 0.0 }
 0x531   :  { %v1907_v62 = vpack.c.bf16 %v1881_v31, %v1880_v19 }
 0x532   :  { %v1906_v58 = vpack.c.bf16 %v1879_v21, %v1878_v28  ;;  %v3062_v2 = vpop.f32.mrb[44].mxu1 }
 0x533   :  { %v1800_v41 = vadd.f32 %v3062_v2, %v5136_v23  ;;  %v1791_v33 = vpop.f32.mrb[45].mxu1 }
 0x534   :  { %v1792_v52 = vadd.f32 %v5136_v23, %v1791_v33  ;;  %v3063_v17 = vpop.f32.mrb[46].mxu1  ;;  %3104 = vmatprep.mubr.bf16.mxu0 %v1906_v58 }
 0x535   :  { %v1803_v49 = vadd.f32 %v3063_v17, %v5136_v23  ;;  %v1794_v53 = vpop.f32.mrb[47].mxu1  ;;  %3105 = vmatmul.mubr.bf16.gmra.mrb[72].mxu0 %v1907_v62  ;;  %v1884_v38 = vmax.f32 %v1800_v41, 0.0 }
 0x536   :  { %v1795_v35 = vadd.f32 %v5136_v23, %v1794_v53  ;;  %v1882_v45 = vmax.f32 %v1792_v52, 0.0 }
 0x537   :  { %v1885_v51 = vmax.f32 %v1803_v49, 0.0 }
 0x538   :  { %v1883_v57 = vmax.f32 %v1795_v35, 0.0  ;;  %v3242_v35 = vld [vmem:[%s5274_s15 + $0x38] sm:$0xff]  }
 0x539   :  { %v1909_v18 = vpack.c.bf16 %v1885_v51, %v1884_v38  ;;  %3142 = vmatprep.subr.bf16.mxu1 %v3242_v35  ;;  %v5176_v38 = vld [vmem:[%s5273_s14] ss:$0 sm:$0xff] }
 0x53a   :  { %v1908_v43 = vpack.c.bf16 %v1883_v57, %v1882_v45  ;;  %v3066_v32 = vpop.f32.mrb[48].mxu1  ;;  %3143 = vmatpush3.bf16.msra.mxu1 %v3242_v35 }
 0x53b   :  { %v1816_v26 = vadd.f32 %v3066_v32, %v5136_v23  ;;  %v1807_v46 = vpop.f32.mrb[49].mxu1 }
 0x53c   :  { %v1808_v54 = vadd.f32 %v5136_v23, %v1807_v46  ;;  %v3067_v13 = vpop.f32.mrb[50].mxu1  ;;  %3108 = vmatprep.mubr.bf16.mxu0 %v1908_v43 }
 0x53d   :  { %v1819_v40 = vadd.f32 %v3067_v13, %v5136_v23  ;;  %v1810_v36 = vpop.f32.mrb[51].mxu1  ;;  %3109 = vmatmul.mubr.bf16.gmra.mrb[76].mxu0 %v1909_v18  ;;  %v1888_v34 = vmax.f32 %v1816_v26, 0.0 }
 0x53e   :  { %v1811_v27 = vadd.f32 %v5136_v23, %v1810_v36  ;;  %v1886_v30 = vmax.f32 %v1808_v54, 0.0 }
 0x53f   :  { %v1889_v24 = vmax.f32 %v1819_v40, 0.0 }
 0x540   :  { %v1887_v10 = vmax.f32 %v1811_v27, 0.0 }
 0x541   :  { %v1911_v60 = vpack.c.bf16 %v1889_v24, %v1888_v34 }
 0x542   :  { %v1910_v37 = vpack.c.bf16 %v1887_v10, %v1886_v30  ;;  %v3070_v11 = vpop.f32.mrb[52].mxu1 }
 0x543   :  { %v1832_v25 = vadd.f32 %v3070_v11, %v5136_v23  ;;  %v1823_v42 = vpop.f32.mrb[53].mxu1 }
 0x544   :  { %v1824_v55 = vadd.f32 %v5136_v23, %v1823_v42  ;;  %v3071_v56 = vpop.f32.mrb[54].mxu1  ;;  %3112 = vmatprep.mubr.bf16.mxu0 %v1910_v37 }
 0x545   :  { %v1835_v15 = vadd.f32 %v3071_v56, %v5136_v23  ;;  %v1826_v6 = vpop.f32.mrb[55].mxu1  ;;  %3113 = vmatmul.mubr.bf16.gmra.mrb[80].mxu0 %v1911_v60  ;;  %v1892_v16 = vmax.f32 %v1832_v25, 0.0 }
 0x546   :  { %v1827_v7 = vadd.f32 %v5136_v23, %v1826_v6  ;;  %v1890_v50 = vmax.f32 %v1824_v55, 0.0 }
 0x547   :  { %v1893_v47 = vmax.f32 %v1835_v15, 0.0 }
 0x548   :  { %v1891_v8 = vmax.f32 %v1827_v7, 0.0 }
 0x549   :  { %v1913_v48 = vpack.c.bf16 %v1893_v47, %v1892_v16 }
 0x54a   :  { %v1912_v12 = vpack.c.bf16 %v1891_v8, %v1890_v50  ;;  %v3074_v29 = vpop.f32.mrb[56].mxu1 }
 0x54b   :  { %v1848_v44 = vadd.f32 %v3074_v29, %v5136_v23  ;;  %v1839_v59 = vpop.f32.mrb[57].mxu1 }
 0x54c   :  { %v1840_v39 = vadd.f32 %v5136_v23, %v1839_v59  ;;  %v3075_v14 = vpop.f32.mrb[58].mxu1  ;;  %3116 = vmatprep.mubr.bf16.mxu0 %v1912_v12 }
 0x54d   :  { %v1851_v20 = vadd.f32 %v3075_v14, %v5136_v23  ;;  %v1842_v3 = vpop.f32.mrb[59].mxu1  ;;  %3117 = vmatmul.mubr.bf16.gmra.mrb[84].mxu0 %v1913_v48  ;;  %v1896_v22 = vmax.f32 %v1848_v44, 0.0 }
 0x54e   :  { %v1843_v61 = vadd.f32 %v5136_v23, %v1842_v3  ;;  %v1894_v1 = vmax.f32 %v1840_v39, 0.0 }
 0x54f   :  { %v1897_v4 = vmax.f32 %v1851_v20, 0.0 }
 0x550   :  { %v1895_v0 = vmax.f32 %v1843_v61, 0.0 }
 0x551   :  { %v1915_v9 = vpack.c.bf16 %v1897_v4, %v1896_v22 }
 0x552   :  { %v1914_v5 = vpack.c.bf16 %v1895_v0, %v1894_v1  ;;  %v3078_v63 = vpop.f32.mrb[60].mxu1 }
 0x553   :  { %v1864_v19 = vadd.f32 %v3078_v63, %v5136_v23  ;;  %v1855_v31 = vpop.f32.mrb[61].mxu1 }
 0x554   :  { %v1856_v28 = vadd.f32 %v5136_v23, %v1855_v31  ;;  %v3079_v21 = vpop.f32.mrb[62].mxu1  ;;  %3120 = vmatprep.mubr.bf16.mxu0 %v1914_v5 }
 0x555   :  { %v1867_v62 = vadd.f32 %v3079_v21, %v5136_v23  ;;  %v1858_v58 = vpop.f32.mrb[63].mxu1  ;;  %3121 = vmatmul.mubr.bf16.gmra.mrb[88].mxu0 %v1915_v9  ;;  %v1900_v41 = vmax.f32 %v1864_v19, 0.0 }
 0x556   :  { %v1859_v2 = vadd.f32 %v5136_v23, %v1858_v58  ;;  %v1898_v52 = vmax.f32 %v1856_v28, 0.0 }
 0x557   :  { %v1901_v33 = vmax.f32 %v1867_v62, 0.0 }
 0x558   :  { %v1899_v17 = vmax.f32 %v1859_v2, 0.0 }
 0x559   :  { %v1917_v49 = vpack.c.bf16 %v1901_v33, %v1900_v41 }
 0x55a   :  { %v1916_v53 = vpack.c.bf16 %v1899_v17, %v1898_v52 }
 0x55c   :  { %3124 = vmatprep.mubr.bf16.mxu0 %v1916_v53 }
 0x55d   :  { %3125 = vmatmul.mubr.bf16.gmra.mrb[92].mxu0 %v1917_v49 }
 0x5f8   :  { %v3098_v23 = vpop.f32.mrb[64].mxu0 }
 0x5f9   :  { %v2031_v51 = vadd.f32 %v3098_v23, %v5176_v38  ;;  %v2022_v45 = vpop.f32.mrb[65].mxu0 }
 0x5fa   :  { %v2023_v57 = vadd.f32 %v5176_v38, %v2022_v45  ;;  %v3099_v18 = vpop.f32.mrb[66].mxu0 }
 0x5fb   :  { %v2034_v43 = vadd.f32 %v3099_v18, %v5176_v38  ;;  %v2025_v32 = vpop.f32.mrb[67].mxu0  ;;  %v2151_v46 = vmax.f32 %v2031_v51, 0.0 }
 0x5fc   :  { %v2026_v26 = vadd.f32 %v5176_v38, %v2025_v32  ;;  %v2149_v13 = vmax.f32 %v2023_v57, 0.0 }
 0x5fd   :  { %v2152_v54 = vmax.f32 %v2034_v43, 0.0 }
 0x5fe   :  { %v2150_v40 = vmax.f32 %v2026_v26, 0.0 }
 0x5ff   :  { %v2182_v36 = vpack.c.bf16 %v2152_v54, %v2151_v46 }
 0x600   :  { %v2181_v27 = vpack.c.bf16 %v2150_v40, %v2149_v13  ;;  %v3102_v34 = vpop.f32.mrb[68].mxu0 }
 0x601   :  { %v2047_v24 = vadd.f32 %v3102_v34, %v5176_v38  ;;  %v2038_v30 = vpop.f32.mrb[69].mxu0 }
 0x602   :  { %v2039_v10 = vadd.f32 %v5176_v38, %v2038_v30  ;;  %v3103_v60 = vpop.f32.mrb[70].mxu0  ;;  %3144 = vmatprep.mubr.bf16.mxu1 %v2181_v27 }
 0x603   :  { %v2050_v37 = vadd.f32 %v3103_v60, %v5176_v38  ;;  %v2041_v11 = vpop.f32.mrb[71].mxu0  ;;  %3145 = vmatmul.mubr.bf16.vlgmr.msra.gmra.mrb[64].mxu1 %v2182_v36  ;;  %v2155_v42 = vmax.f32 %v2047_v24, 0.0 }
 0x604   :  { %v2042_v25 = vadd.f32 %v5176_v38, %v2041_v11  ;;  %v2153_v56 = vmax.f32 %v2039_v10, 0.0 }
 0x605   :  { %v2156_v55 = vmax.f32 %v2050_v37, 0.0 }
 0x606   :  { %v2154_v15 = vmax.f32 %v2042_v25, 0.0 }
 0x607   :  { %v2184_v6 = vpack.c.bf16 %v2156_v55, %v2155_v42 }
 0x608   :  { %v2183_v7 = vpack.c.bf16 %v2154_v15, %v2153_v56  ;;  %v3106_v16 = vpop.f32.mrb[72].mxu0 }
 0x609   :  { %v2063_v47 = vadd.f32 %v3106_v16, %v5176_v38  ;;  %v2054_v50 = vpop.f32.mrb[73].mxu0 }
 0x60a   :  { %v2055_v8 = vadd.f32 %v5176_v38, %v2054_v50  ;;  %v3107_v48 = vpop.f32.mrb[74].mxu0  ;;  %3148 = vmatprep.mubr.bf16.mxu1 %v2183_v7 }
 0x60b   :  { %v2066_v12 = vadd.f32 %v3107_v48, %v5176_v38  ;;  %v2057_v29 = vpop.f32.mrb[75].mxu0  ;;  %3149 = vmatmul.mubr.bf16.gmra.mrb[68].mxu1 %v2184_v6  ;;  %v2159_v59 = vmax.f32 %v2063_v47, 0.0 }
 0x60c   :  { %v2058_v44 = vadd.f32 %v5176_v38, %v2057_v29  ;;  %v2157_v14 = vmax.f32 %v2055_v8, 0.0 }
 0x60d   :  { %v2160_v39 = vmax.f32 %v2066_v12, 0.0 }
 0x60e   :  { %v2158_v20 = vmax.f32 %v2058_v44, 0.0 }
 0x60f   :  { %v2186_v3 = vpack.c.bf16 %v2160_v39, %v2159_v59 }
 0x610   :  { %v2185_v61 = vpack.c.bf16 %v2158_v20, %v2157_v14  ;;  %v3110_v22 = vpop.f32.mrb[76].mxu0 }
 0x611   :  { %v2079_v4 = vadd.f32 %v3110_v22, %v5176_v38  ;;  %v2070_v1 = vpop.f32.mrb[77].mxu0 }
 0x612   :  { %v2071_v0 = vadd.f32 %v5176_v38, %v2070_v1  ;;  %v3111_v9 = vpop.f32.mrb[78].mxu0  ;;  %3152 = vmatprep.mubr.bf16.mxu1 %v2185_v61 }
 0x613   :  { %v2082_v5 = vadd.f32 %v3111_v9, %v5176_v38  ;;  %v2073_v63 = vpop.f32.mrb[79].mxu0  ;;  %3153 = vmatmul.mubr.bf16.gmra.mrb[72].mxu1 %v2186_v3  ;;  %v2163_v31 = vmax.f32 %v2079_v4, 0.0 }
 0x614   :  { %v2074_v19 = vadd.f32 %v5176_v38, %v2073_v63  ;;  %v2161_v21 = vmax.f32 %v2071_v0, 0.0 }
 0x615   :  { %v2164_v28 = vmax.f32 %v2082_v5, 0.0 }
 0x616   :  { %v2162_v62 = vmax.f32 %v2074_v19, 0.0  ;;  %v5213_v19 = vld [vmem:[%s5275_s16] ss:$0 sm:$0xff]  ;;  %s3463_s16 = smov [#allocation2]  }
 0x617   :  { %v2188_v58 = vpack.c.bf16 %v2164_v28, %v2163_v31  ;;  %s2657_s29 = sshll.u32 %s3463_s16, 4  ;;  %s2658_s29 = int_to_ptr.vmem [resolvable:$true] %s2657_s29 }
 0x618   :  { %v2187_v2 = vpack.c.bf16 %v2162_v62, %v2161_v21  ;;  %v3114_v41 = vpop.f32.mrb[80].mxu0  ;;  %s3439_s9 = scalar_lea.vmem %s2658_s29, 4096  ;;  %p3444_p1 = scmp.lt.s32.totalorder %s2658_s29, %s2658_s29 }
 0x619   :  { %v2095_v33 = vadd.f32 %v3114_v41, %v5176_v38  ;;  %v2086_v52 = vpop.f32.mrb[81].mxu0  ;;  %p3440_p0 = scmp.ne.s32.totalorder %s2658_s29, %s3439_s9  ;;  %p3445_p2 = scmp.lt.s32.totalorder %s3439_s9, %s3439_s9 }
 0x61a   :  { %v2087_v17 = vadd.f32 %v5176_v38, %v2086_v52  ;;  %v3115_v49 = vpop.f32.mrb[82].mxu0  ;;  %3156 = vmatprep.mubr.bf16.mxu1 %v2187_v2 }
 0x61b   :  { %v2098_v53 = vadd.f32 %v3115_v49, %v5176_v38  ;;  %v2089_v35 = vpop.f32.mrb[83].mxu0  ;;  %3157 = vmatmul.mubr.bf16.gmra.mrb[76].mxu1 %v2188_v58  ;;  %v2167_v51 = vmax.f32 %v2095_v33, 0.0  ;;  %p3446_p3 = por %p3445_p2, %p3444_p1 }
 0x61c   :  { %v2090_v23 = vadd.f32 %v5176_v38, %v2089_v35  ;;  %v2165_v57 = vmax.f32 %v2087_v17, 0.0 }
 0x61d   :  { %v2168_v45 = vmax.f32 %v2098_v53, 0.0  ;;  %p3447_p4 = pnand %p3446_p3, %p3440_p0 }
 0x61e   :  { %v2166_v18 = vmax.f32 %v2090_v23, 0.0 }
 0x61f   :  { %v2190_v43 = vpack.c.bf16 %v2168_v45, %v2167_v51 }
 0x620   :  { %v2189_v32 = vpack.c.bf16 %v2166_v18, %v2165_v57  ;;  %v3118_v26 = vpop.f32.mrb[84].mxu0 }
 0x621   :  { %v2111_v46 = vadd.f32 %v3118_v26, %v5176_v38  ;;  %v2102_v54 = vpop.f32.mrb[85].mxu0 }
 0x622   :  { %v2103_v13 = vadd.f32 %v5176_v38, %v2102_v54  ;;  %v3119_v40 = vpop.f32.mrb[86].mxu0  ;;  %3160 = vmatprep.mubr.bf16.mxu1 %v2189_v32 }
 0x623   :  { %v2114_v36 = vadd.f32 %v3119_v40, %v5176_v38  ;;  %v2105_v27 = vpop.f32.mrb[87].mxu0  ;;  %3161 = vmatmul.mubr.bf16.gmra.mrb[80].mxu1 %v2190_v43  ;;  %v2171_v24 = vmax.f32 %v2111_v46, 0.0 }
 0x624   :  { %v2106_v34 = vadd.f32 %v5176_v38, %v2105_v27  ;;  %v2169_v10 = vmax.f32 %v2103_v13, 0.0 }
 0x625   :  { %v2172_v30 = vmax.f32 %v2114_v36, 0.0 }
 0x626   :  { %v2170_v60 = vmax.f32 %v2106_v34, 0.0 }
 0x627   :  { %v2192_v37 = vpack.c.bf16 %v2172_v30, %v2171_v24 }
 0x628   :  { %v2191_v11 = vpack.c.bf16 %v2170_v60, %v2169_v10  ;;  %v3122_v25 = vpop.f32.mrb[88].mxu0 }
 0x629   :  { %v2127_v42 = vadd.f32 %v3122_v25, %v5176_v38  ;;  %v2118_v55 = vpop.f32.mrb[89].mxu0 }
 0x62a   :  { %v2119_v56 = vadd.f32 %v5176_v38, %v2118_v55  ;;  %v3123_v15 = vpop.f32.mrb[90].mxu0  ;;  %3164 = vmatprep.mubr.bf16.mxu1 %v2191_v11 }
 0x62b   :  { %v2130_v6 = vadd.f32 %v3123_v15, %v5176_v38  ;;  %v2121_v7 = vpop.f32.mrb[91].mxu0  ;;  %3165 = vmatmul.mubr.bf16.gmra.mrb[84].mxu1 %v2192_v37  ;;  %v2175_v47 = vmax.f32 %v2127_v42, 0.0 }
 0x62c   :  { %v2122_v16 = vadd.f32 %v5176_v38, %v2121_v7  ;;  %v2173_v8 = vmax.f32 %v2119_v56, 0.0 }
 0x62d   :  { %v2176_v50 = vmax.f32 %v2130_v6, 0.0 }
 0x62e   :  { %v2174_v48 = vmax.f32 %v2122_v16, 0.0 }
 0x62f   :  { %v2194_v12 = vpack.c.bf16 %v2176_v50, %v2175_v47 }
 0x630   :  { %v2193_v29 = vpack.c.bf16 %v2174_v48, %v2173_v8  ;;  %v3126_v44 = vpop.f32.mrb[92].mxu0 }
 0x631   :  { %v2143_v59 = vadd.f32 %v3126_v44, %v5176_v38  ;;  %v2134_v39 = vpop.f32.mrb[93].mxu0 }
 0x632   :  { %v2135_v14 = vadd.f32 %v5176_v38, %v2134_v39  ;;  %v3127_v20 = vpop.f32.mrb[94].mxu0  ;;  %3168 = vmatprep.mubr.bf16.mxu1 %v2193_v29 }
 0x633   :  { %v2146_v3 = vadd.f32 %v3127_v20, %v5176_v38  ;;  %v2137_v61 = vpop.f32.mrb[95].mxu0  ;;  %3169 = vmatmul.mubr.bf16.gmra.mrb[88].mxu1 %v2194_v12  ;;  %v2179_v4 = vmax.f32 %v2143_v59, 0.0 }
 0x634   :  { %v2138_v22 = vadd.f32 %v5176_v38, %v2137_v61  ;;  %v2177_v0 = vmax.f32 %v2135_v14, 0.0 }
 0x635   :  { %v2180_v1 = vmax.f32 %v2146_v3, 0.0 }
 0x636   :  { %v2178_v9 = vmax.f32 %v2138_v22, 0.0 }
 0x637   :  { %v2196_v5 = vpack.c.bf16 %v2180_v1, %v2179_v4 }
 0x638   :  { %v2195_v63 = vpack.c.bf16 %v2178_v9, %v2177_v0 }
 0x63a   :  { %3172 = vmatprep.mubr.bf16.mxu1 %v2195_v63 }
 0x63b   :  { %3173 = vmatmul.mubr.bf16.gmra.mrb[92].mxu1 %v2196_v5 }
 0x6d6   :  { %v3146_v31 = vpop.f32.mrb[64].mxu1 }
 0x6d7   :  { %v2310_v28 = vadd.f32 %v3146_v31, %v5213_v19  ;;  %v2301_v21 = vpop.f32.mrb[65].mxu1 }
 0x6d8   :  { %v2302_v62 = vadd.f32 %v5213_v19, %v2301_v21  ;;  %v3147_v38 = vpop.f32.mrb[66].mxu1 }
 0x6d9   :  { %v2430_v58 = vsub.f32 0.0, %v2310_v28  ;;  %v2313_v2 = vadd.f32 %v3147_v38, %v5213_v19  ;;  %v2304_v41 = vpop.f32.mrb[67].mxu1 }
 0x6da   :  { %v2428_v33 = vsub.f32 0.0, %v2302_v62  ;;  %v2305_v52 = vadd.f32 %v5213_v19, %v2304_v41 }
 0x6db   :  { %v2464_v17 = vmul.f32 1.442695, %v2430_v58  ;;  %v2431_v49 = vsub.f32 0.0, %v2313_v2 }
 0x6dc   :  { %v2460_v53 = vmul.f32 1.442695, %v2428_v33  ;;  %v2429_v35 = vsub.f32 0.0, %v2305_v52 }
 0x6dd   :  { %3311 = vpow2.f32 %v2464_v17  ;;  %v2466_v23 = vmul.f32 1.442695, %v2431_v49 }
 0x6de   :  { %3313 = vpow2.f32 %v2460_v53  ;;  %v2462_v51 = vmul.f32 1.442695, %v2429_v35  ;;  %v3150_v45 = vpop.f32.mrb[68].mxu1 }
 0x6df   :  { %3315 = vpow2.f32 %v2466_v23  ;;  %v2326_v57 = vadd.f32 %v3150_v45, %v5213_v19  ;;  %v2317_v18 = vpop.f32.mrb[69].mxu1 }
 0x6e0   :  { %3317 = vpow2.f32 %v2462_v51  ;;  %v2318_v43 = vadd.f32 %v5213_v19, %v2317_v18  ;;  %v3151_v32 = vpop.f32.mrb[70].mxu1 }
 0x6e1   :  { %v2434_v26 = vsub.f32 0.0, %v2326_v57  ;;  %v2329_v46 = vadd.f32 %v3151_v32, %v5213_v19  ;;  %v2320_v54 = vpop.f32.mrb[71].mxu1 }
 0x6e2   :  { %v2432_v13 = vsub.f32 0.0, %v2318_v43  ;;  %v2321_v40 = vadd.f32 %v5213_v19, %v2320_v54 }
 0x6e3   :  { %v2472_v36 = vmul.f32 1.442695, %v2434_v26  ;;  %v2435_v27 = vsub.f32 0.0, %v2329_v46 }
 0x6e4   :  { %v2468_v34 = vmul.f32 1.442695, %v2432_v13  ;;  %v2433_v24 = vsub.f32 0.0, %v2321_v40 }
 0x6e5   :  { %3319 = vpow2.f32 %v2472_v36  ;;  %v2474_v30 = vmul.f32 1.442695, %v2435_v27 }
 0x6e6   :  { %3321 = vpow2.f32 %v2468_v34  ;;  %v2470_v10 = vmul.f32 1.442695, %v2433_v24  ;;  %v3154_v60 = vpop.f32.mrb[72].mxu1 }
 0x6e7   :  { %v3312_v37 = vpop.eup %3311  ;;  %3323 = vpow2.f32 %v2474_v30  ;;  %v2342_v11 = vadd.f32 %v3154_v60, %v5213_v19  ;;  %v2333_v25 = vpop.f32.mrb[73].mxu1 }
 0x6e8   :  { %v3314_v42 = vpop.eup %3313  ;;  %v2526_v55 = vadd.f32 1.0, %v3312_v37  ;;  %3325 = vpow2.f32 %v2470_v10  ;;  %v2334_v56 = vadd.f32 %v5213_v19, %v2333_v25  ;;  %v3155_v15 = vpop.f32.mrb[74].mxu1 }
 0x6e9   :  { %v3316_v6 = vpop.eup %3315  ;;  %v2524_v7 = vadd.f32 1.0, %v3314_v42  ;;  %v2438_v16 = vsub.f32 0.0, %v2342_v11  ;;  %v2345_v47 = vadd.f32 %v3155_v15, %v5213_v19  ;;  %v2336_v50 = vpop.f32.mrb[75].mxu1 }
 0x6ea   :  { %v3318_v8 = vpop.eup %3317  ;;  %3327 = vrcp.f32 %v2526_v55  ;;  %v2527_v48 = vadd.f32 1.0, %v3316_v6  ;;  %v2436_v12 = vsub.f32 0.0, %v2334_v56  ;;  %v2337_v29 = vadd.f32 %v5213_v19, %v2336_v50 }
 0x6eb   :  { %3329 = vrcp.f32 %v2524_v7  ;;  %v2525_v44 = vadd.f32 1.0, %v3318_v8  ;;  %v2480_v59 = vmul.f32 1.442695, %v2438_v16  ;;  %v2439_v39 = vsub.f32 0.0, %v2345_v47 }
 0x6ec   :  { %3331 = vrcp.f32 %v2527_v48  ;;  %v2476_v14 = vmul.f32 1.442695, %v2436_v12  ;;  %v2437_v20 = vsub.f32 0.0, %v2337_v29 }
 0x6ed   :  { %3333 = vrcp.f32 %v2525_v44  ;;  %v2482_v3 = vmul.f32 1.442695, %v2439_v39 }
 0x6ee   :  { %3335 = vpow2.f32 %v2480_v59  ;;  %v2478_v61 = vmul.f32 1.442695, %v2437_v20  ;;  %v3158_v22 = vpop.f32.mrb[76].mxu1 }
 0x6ef   :  { %v3320_v4 = vpop.eup %3319  ;;  %3337 = vpow2.f32 %v2476_v14  ;;  %v2358_v1 = vadd.f32 %v3158_v22, %v5213_v19  ;;  %v2349_v0 = vpop.f32.mrb[77].mxu1 }
 0x6f0   :  { %v3322_v9 = vpop.eup %3321  ;;  %v2530_v5 = vadd.f32 1.0, %v3320_v4  ;;  %3339 = vpow2.f32 %v2482_v3  ;;  %v2350_v63 = vadd.f32 %v5213_v19, %v2349_v0  ;;  %v3159_v31 = vpop.f32.mrb[78].mxu1 }
 0x6f1   :  { %v3324_v28 = vpop.eup %3323  ;;  %v2528_v21 = vadd.f32 1.0, %v3322_v9  ;;  %3341 = vpow2.f32 %v2478_v61  ;;  %v2442_v62 = vsub.f32 0.0, %v2358_v1  ;;  %v2361_v38 = vadd.f32 %v3159_v31, %v5213_v19  ;;  %v2352_v58 = vpop.f32.mrb[79].mxu1 }
 0x6f2   :  { %v3326_v2 = vpop.eup %3325  ;;  %3343 = vrcp.f32 %v2530_v5  ;;  %v2531_v41 = vadd.f32 1.0, %v3324_v28  ;;  %v2440_v33 = vsub.f32 0.0, %v2350_v63  ;;  %v2353_v52 = vadd.f32 %v5213_v19, %v2352_v58 }
 0x6f3   :  { %3345 = vrcp.f32 %v2528_v21  ;;  %v2529_v17 = vadd.f32 1.0, %v3326_v2  ;;  %v2488_v49 = vmul.f32 1.442695, %v2442_v62  ;;  %v2443_v53 = vsub.f32 0.0, %v2361_v38 }
 0x6f4   :  { %v3328_v35 = vpop.eup %3327  ;;  %3347 = vrcp.f32 %v2531_v41  ;;  %v2484_v23 = vmul.f32 1.442695, %v2440_v33  ;;  %v2441_v51 = vsub.f32 0.0, %v2353_v52 }
 0x6f5   :  { %v3330_v45 = vpop.eup %3329  ;;  %2590 = vst [vmem:[#allocation2 + $0x10] sm:$0xff] %v3328_v35  ;;  %3349 = vrcp.f32 %v2529_v17  ;;  %v2490_v57 = vmul.f32 1.442695, %v2443_v53 }
 0x6f6   :  { %v3332_v18 = vpop.eup %3331  ;;  %2588 = vst [vmem:[#allocation2] sm:$0xff] %v3330_v45  ;;  %3351 = vpow2.f32 %v2488_v49  ;;  %v2486_v43 = vmul.f32 1.442695, %v2441_v51  ;;  %v3162_v32 = vpop.f32.mrb[80].mxu1 }
 0x6f7   :  { %v3334_v26 = vpop.eup %3333  ;;  %2591 = vst [vmem:[#allocation2 + $0x18] sm:$0xff] %v3332_v18  ;;  %3353 = vpow2.f32 %v2484_v23  ;;  %v2374_v46 = vadd.f32 %v3162_v32, %v5213_v19  ;;  %v2365_v54 = vpop.f32.mrb[81].mxu1 }
 0x6f8   :  { %v3336_v13 = vpop.eup %3335  ;;  %2589 = vst [vmem:[#allocation2 + $0x8] sm:$0xff] %v3334_v26  ;;  %3355 = vpow2.f32 %v2490_v57  ;;  %v2366_v40 = vadd.f32 %v5213_v19, %v2365_v54  ;;  %v3163_v36 = vpop.f32.mrb[82].mxu1 }
 0x6f9   :  { %v3338_v27 = vpop.eup %3337  ;;  %v2534_v34 = vadd.f32 1.0, %v3336_v13  ;;  %3357 = vpow2.f32 %v2486_v43  ;;  %v2446_v24 = vsub.f32 0.0, %v2374_v46  ;;  %v2377_v30 = vadd.f32 %v3163_v36, %v5213_v19  ;;  %v2368_v10 = vpop.f32.mrb[83].mxu1 }
 0x6fa   :  { %v3340_v60 = vpop.eup %3339  ;;  %v2532_v37 = vadd.f32 1.0, %v3338_v27  ;;  %v2444_v11 = vsub.f32 0.0, %v2366_v40  ;;  %v2369_v25 = vadd.f32 %v5213_v19, %v2368_v10 }
 0x6fb   :  { %v3342_v42 = vpop.eup %3341  ;;  %3359 = vrcp.f32 %v2534_v34  ;;  %v2535_v55 = vadd.f32 1.0, %v3340_v60  ;;  %v2496_v56 = vmul.f32 1.442695, %v2446_v24  ;;  %v2447_v15 = vsub.f32 0.0, %v2377_v30 }
 0x6fc   :  { %v3344_v6 = vpop.eup %3343  ;;  %3361 = vrcp.f32 %v2532_v37  ;;  %v2533_v7 = vadd.f32 1.0, %v3342_v42  ;;  %v2492_v16 = vmul.f32 1.442695, %v2444_v11  ;;  %v2445_v47 = vsub.f32 0.0, %v2369_v25 }
 0x6fd   :  { %v3346_v50 = vpop.eup %3345  ;;  %2594 = vst [vmem:[#allocation2 + $0x30] sm:$0xff] %v3344_v6  ;;  %3363 = vrcp.f32 %v2535_v55  ;;  %v2498_v8 = vmul.f32 1.442695, %v2447_v15 }
 0x6fe   :  { %v3348_v48 = vpop.eup %3347  ;;  %2592 = vst [vmem:[#allocation2 + $0x20] sm:$0xff] %v3346_v50  ;;  %3365 = vrcp.f32 %v2533_v7  ;;  %v2494_v12 = vmul.f32 1.442695, %v2445_v47  ;;  %v3166_v29 = vpop.f32.mrb[84].mxu1 }
 0x6ff   :  { %v3350_v44 = vpop.eup %3349  ;;  %2595 = vst [vmem:[#allocation2 + $0x38] sm:$0xff] %v3348_v48  ;;  %3367 = vpow2.f32 %v2496_v56  ;;  %v2390_v59 = vadd.f32 %v3166_v29, %v5213_v19  ;;  %v2381_v39 = vpop.f32.mrb[85].mxu1 }
 0x700   :  { %v3352_v14 = vpop.eup %3351  ;;  %2593 = vst [vmem:[#allocation2 + $0x28] sm:$0xff] %v3350_v44  ;;  %3369 = vpow2.f32 %v2492_v16  ;;  %v2382_v20 = vadd.f32 %v5213_v19, %v2381_v39  ;;  %v3167_v3 = vpop.f32.mrb[86].mxu1 }
 0x701   :  { %v3354_v61 = vpop.eup %3353  ;;  %v2538_v22 = vadd.f32 1.0, %v3352_v14  ;;  %3371 = vpow2.f32 %v2498_v8  ;;  %v2450_v4 = vsub.f32 0.0, %v2390_v59  ;;  %v2393_v1 = vadd.f32 %v3167_v3, %v5213_v19  ;;  %v2384_v0 = vpop.f32.mrb[87].mxu1 }
 0x702   :  { %v3356_v9 = vpop.eup %3355  ;;  %v2536_v5 = vadd.f32 1.0, %v3354_v61  ;;  %3373 = vpow2.f32 %v2494_v12  ;;  %v2448_v63 = vsub.f32 0.0, %v2382_v20  ;;  %v2385_v31 = vadd.f32 %v5213_v19, %v2384_v0 }
 0x703   :  { %v3358_v28 = vpop.eup %3357  ;;  %3375 = vrcp.f32 %v2538_v22  ;;  %v2539_v21 = vadd.f32 1.0, %v3356_v9  ;;  %v2504_v62 = vmul.f32 1.442695, %v2450_v4  ;;  %v2451_v38 = vsub.f32 0.0, %v2393_v1 }
 0x704   :  { %3377 = vrcp.f32 %v2536_v5  ;;  %v2537_v58 = vadd.f32 1.0, %v3358_v28  ;;  %v2500_v2 = vmul.f32 1.442695, %v2448_v63  ;;  %v2449_v41 = vsub.f32 0.0, %v2385_v31 }
 0x705   :  { %v3360_v33 = vpop.eup %3359  ;;  %3379 = vrcp.f32 %v2539_v21  ;;  %v2506_v52 = vmul.f32 1.442695, %v2451_v38 }
 0x706   :  { %v3362_v17 = vpop.eup %3361  ;;  %2598 = vst [vmem:[#allocation2 + $0x50] sm:$0xff] %v3360_v33  ;;  %3381 = vrcp.f32 %v2537_v58  ;;  %v2502_v49 = vmul.f32 1.442695, %v2449_v41  ;;  %v3170_v53 = vpop.f32.mrb[88].mxu1 }
 0x707   :  { %v3364_v35 = vpop.eup %3363  ;;  %2596 = vst [vmem:[#allocation2 + $0x40] sm:$0xff] %v3362_v17  ;;  %3383 = vpow2.f32 %v2504_v62  ;;  %v2406_v23 = vadd.f32 %v3170_v53, %v5213_v19  ;;  %v2397_v51 = vpop.f32.mrb[89].mxu1 }
 0x708   :  { %v3366_v45 = vpop.eup %3365  ;;  %2599 = vst [vmem:[#allocation2 + $0x58] sm:$0xff] %v3364_v35  ;;  %3385 = vpow2.f32 %v2500_v2  ;;  %v2398_v57 = vadd.f32 %v5213_v19, %v2397_v51  ;;  %v3171_v18 = vpop.f32.mrb[90].mxu1 }
 0x709   :  { %v3368_v43 = vpop.eup %3367  ;;  %2597 = vst [vmem:[#allocation2 + $0x48] sm:$0xff] %v3366_v45  ;;  %3387 = vpow2.f32 %v2506_v52  ;;  %v2454_v32 = vsub.f32 0.0, %v2406_v23  ;;  %v2409_v26 = vadd.f32 %v3171_v18, %v5213_v19  ;;  %v2400_v46 = vpop.f32.mrb[91].mxu1 }
 0x70a   :  { %v3370_v54 = vpop.eup %3369  ;;  %v2542_v13 = vadd.f32 1.0, %v3368_v43  ;;  %3389 = vpow2.f32 %v2502_v49  ;;  %v2452_v40 = vsub.f32 0.0, %v2398_v57  ;;  %v2401_v36 = vadd.f32 %v5213_v19, %v2400_v46 }
 0x70b   :  { %v3372_v27 = vpop.eup %3371  ;;  %v2540_v34 = vadd.f32 1.0, %v3370_v54  ;;  %v2455_v24 = vsub.f32 0.0, %v2409_v26  ;;  %v2512_v60 = vmul.f32 1.442695, %v2454_v32 }
 0x70c   :  { %v3374_v30 = vpop.eup %3373  ;;  %3391 = vrcp.f32 %v2542_v13  ;;  %v2543_v10 = vadd.f32 1.0, %v3372_v27  ;;  %v2453_v37 = vsub.f32 0.0, %v2401_v36  ;;  %v2508_v42 = vmul.f32 1.442695, %v2452_v40 }
 0x70d   :  { %v3376_v11 = vpop.eup %3375  ;;  %3393 = vrcp.f32 %v2540_v34  ;;  %v2541_v25 = vadd.f32 1.0, %v3374_v30  ;;  %v2514_v56 = vmul.f32 1.442695, %v2455_v24 }
 0x70e   :  { %v3378_v55 = vpop.eup %3377  ;;  %2602 = vst [vmem:[#allocation2 + $0x70] sm:$0xff] %v3376_v11  ;;  %3395 = vrcp.f32 %v2543_v10  ;;  %v3174_v15 = vpop.f32.mrb[92].mxu1  ;;  %v2510_v7 = vmul.f32 1.442695, %v2453_v37 }
 0x70f   :  { %v3380_v6 = vpop.eup %3379  ;;  %2600 = vst [vmem:[#allocation2 + $0x60] sm:$0xff] %v3378_v55  ;;  %3397 = vrcp.f32 %v2541_v25  ;;  %v2422_v16 = vadd.f32 %v3174_v15, %v5213_v19  ;;  %v2413_v47 = vpop.f32.mrb[93].mxu1 }
 0x710   :  { %v3382_v50 = vpop.eup %3381  ;;  %2603 = vst [vmem:[#allocation2 + $0x78] sm:$0xff] %v3380_v6  ;;  %3399 = vpow2.f32 %v2512_v60  ;;  %v2414_v8 = vadd.f32 %v5213_v19, %v2413_v47  ;;  %v3175_v48 = vpop.f32.mrb[94].mxu1 }
 0x711   :  { %v3384_v12 = vpop.eup %3383  ;;  %2601 = vst [vmem:[#allocation2 + $0x68] sm:$0xff] %v3382_v50  ;;  %3401 = vpow2.f32 %v2508_v42  ;;  %v2458_v29 = vsub.f32 0.0, %v2422_v16  ;;  %v2425_v44 = vadd.f32 %v3175_v48, %v5213_v19  ;;  %v2416_v59 = vpop.f32.mrb[95].mxu1 }
 0x712   :  { %v3386_v39 = vpop.eup %3385  ;;  %v2546_v14 = vadd.f32 1.0, %v3384_v12  ;;  %3403 = vpow2.f32 %v2514_v56  ;;  %v2456_v20 = vsub.f32 0.0, %v2414_v8  ;;  %v2417_v3 = vadd.f32 %v5213_v19, %v2416_v59 }
 0x713   :  { %v3388_v61 = vpop.eup %3387  ;;  %v2544_v22 = vadd.f32 1.0, %v3386_v39  ;;  %3405 = vpow2.f32 %v2510_v7  ;;  %v2459_v4 = vsub.f32 0.0, %v2425_v44  ;;  %v2520_v9 = vmul.f32 1.442695, %v2458_v29 }
 0x714   :  { %v3390_v1 = vpop.eup %3389  ;;  %3407 = vrcp.f32 %v2546_v14  ;;  %v2547_v0 = vadd.f32 1.0, %v3388_v61  ;;  %v2457_v5 = vsub.f32 0.0, %v2417_v3  ;;  %v2516_v31 = vmul.f32 1.442695, %v2456_v20 }
 0x715   :  { %3409 = vrcp.f32 %v2544_v22  ;;  %v2545_v63 = vadd.f32 1.0, %v3390_v1  ;;  %v2522_v21 = vmul.f32 1.442695, %v2459_v4 }
 0x716   :  { %v3392_v28 = vpop.eup %3391  ;;  %3411 = vrcp.f32 %v2547_v0  ;;  %v2518_v38 = vmul.f32 1.442695, %v2457_v5 }
 0x717   :  { %v3394_v62 = vpop.eup %3393  ;;  %2606 = vst [vmem:[#allocation2 + $0x90] sm:$0xff] %v3392_v28  ;;  %3413 = vrcp.f32 %v2545_v63 }
 0x718   :  { %v3396_v19 = vpop.eup %3395  ;;  %2604 = vst [vmem:[#allocation2 + $0x80] sm:$0xff] %v3394_v62  ;;  %3415 = vpow2.f32 %v2520_v9 }
 0x719   :  { %v3398_v58 = vpop.eup %3397  ;;  %2607 = vst [vmem:[#allocation2 + $0x98] sm:$0xff] %v3396_v19  ;;  %3417 = vpow2.f32 %v2516_v31 }
 0x71a   :  { %v3400_v2 = vpop.eup %3399  ;;  %2605 = vst [vmem:[#allocation2 + $0x88] sm:$0xff] %v3398_v58  ;;  %3419 = vpow2.f32 %v2522_v21 }
 0x71b   :  { %v3402_v41 = vpop.eup %3401  ;;  %v2550_v33 = vadd.f32 1.0, %v3400_v2  ;;  %3421 = vpow2.f32 %v2518_v38 }
 0x71c   :  { %v3404_v52 = vpop.eup %3403  ;;  %v2548_v17 = vadd.f32 1.0, %v3402_v41 }
 0x71d   :  { %v3406_v49 = vpop.eup %3405  ;;  %3423 = vrcp.f32 %v2550_v33  ;;  %v2551_v53 = vadd.f32 1.0, %v3404_v52 }
 0x71e   :  { %v3408_v35 = vpop.eup %3407  ;;  %3425 = vrcp.f32 %v2548_v17  ;;  %v2549_v23 = vadd.f32 1.0, %v3406_v49 }
 0x71f   :  { %v3410_v51 = vpop.eup %3409  ;;  %2610 = vst [vmem:[#allocation2 + $0xb0] sm:$0xff] %v3408_v35  ;;  %3427 = vrcp.f32 %v2551_v53 }
 0x720   :  { %v3412_v45 = vpop.eup %3411  ;;  %2608 = vst [vmem:[#allocation2 + $0xa0] sm:$0xff] %v3410_v51  ;;  %3429 = vrcp.f32 %v2549_v23 }
 0x721   :  { %v3414_v57 = vpop.eup %3413  ;;  %2611 = vst [vmem:[#allocation2 + $0xb8] sm:$0xff] %v3412_v45 }
 0x722   :  { %v3416_v18 = vpop.eup %3415  ;;  %2609 = vst [vmem:[#allocation2 + $0xa8] sm:$0xff] %v3414_v57 }
 0x723   :  { %v3418_v43 = vpop.eup %3417  ;;  %v2554_v32 = vadd.f32 1.0, %v3416_v18 }
 0x724   :  { %v3420_v26 = vpop.eup %3419  ;;  %v2552_v46 = vadd.f32 1.0, %v3418_v43 }
 0x725   :  { %v3422_v54 = vpop.eup %3421  ;;  %3431 = vrcp.f32 %v2554_v32  ;;  %v2555_v13 = vadd.f32 1.0, %v3420_v26 }
 0x726   :  { %3433 = vrcp.f32 %v2552_v46  ;;  %v2553_v40 = vadd.f32 1.0, %v3422_v54 }
 0x727   :  { %v3424_v36 = vpop.eup %3423  ;;  %3435 = vrcp.f32 %v2555_v13 }
 0x728   :  { %v3426_v27 = vpop.eup %3425  ;;  %2614 = vst [vmem:[#allocation2 + $0xd0] sm:$0xff] %v3424_v36  ;;  %3437 = vrcp.f32 %v2553_v40 }
 0x729   :  { %v3428_v34 = vpop.eup %3427  ;;  %2612 = vst [vmem:[#allocation2 + $0xc0] sm:$0xff] %v3426_v27 }
 0x72a   :  { %v3430_v24 = vpop.eup %3429  ;;  %2615 = vst [vmem:[#allocation2 + $0xd8] sm:$0xff] %v3428_v34 }
 0x72b   :  { %2613 = vst [vmem:[#allocation2 + $0xc8] sm:$0xff] %v3430_v24 }
 0x72f   :  { %v3432_v30 = vpop.eup %3431 }
 0x730   :  { %v3434_v10 = vpop.eup %3433  ;;  %2618 = vst [vmem:[#allocation2 + $0xf0] sm:$0xff] %v3432_v30 }
 0x731   :  { %v3436_v60 = vpop.eup %3435  ;;  %2616 = vst [vmem:[#allocation2 + $0xe0] sm:$0xff] %v3434_v10 }
 0x732   :  { %v3438_v37 = vpop.eup %3437  ;;  %2619 = vst [vmem:[#allocation2 + $0xf8] sm:$0xff] %v3436_v60 }
 0x733   :  { %2617 = vst [vmem:[#allocation2 + $0xe8] sm:$0xff] %v3438_v37 }
 0x734   :  { %3450 = shalt.err (!%p3447_p4)
}
 0x735   :  { %s3451_s6 = scalar_lea.hbm %s5277_s18, 4096 }
 0x736   :  { %p3452_p5 = scmp.ne.s32.totalorder %s5277_s18, %s3451_s6  ;;  %p3455_p6 = scmp.lt.u32.totalorder %s3451_s6, %s5277_s18 }
 0x738   :  { %p3457_p7 = pnand %p3455_p6, %p3452_p5 }
 0x73a   :  { %3460 = shalt.err (!%p3457_p7)
}
 0x73b   :  { %s3464_s1 = smov 128   ;;  %s3465_s22 = smov 8  }
 0x73c   :  { %2663 = dma.vmem_to_hbm [thread:$0]  %s2658_s29, 4096, %s5277_s18, [#allocation3], %s3464_s1, %s3464_s1, %s3465_s22  }
 0x73d   :  { %3461 = dma.done.wait [#allocation3], 4096  }
 0x73e   :  { %3462 = vsyncadd [#allocation3], 4294963200 }
 0x73f   :  { %2671 = vsyncpa [#allocation3], 1 }

</bundles_post_ra>
